<compile_context>
chip_gen: v7x
topology: tpu7x:2x2x1
jax: 0.10.0
libtpu: 0.0.40
codegen_flags: <defaults>
</compile_context>

<pallas_src>
import functools

import jax
import jax.numpy as jnp
from jax.experimental import pallas as pl
from jax.experimental.pallas import tpu as pltpu


# ----------------------------------------------------------------------------
# Fused kernel
# ----------------------------------------------------------------------------
def hpa_fused_kernel(x_ref, w0_ref, b0_ref, w1_ref, b1_ref,
                     wf1_ref, bf1_ref, wf2_ref, bf2_ref, alpha_ref,
                     final_ref, sig_ref, pooled_ref, *, batch, cells, hw):
    """Whole HpaModel forward for every image in one invocation.

    x_ref   : (N, C*HW) f32 VMEM   N = batch*cells; per-image CHW flattened
    w0/b0   : (3, C) / (3,)  f32 SMEM  init 1x1 conv, normalization folded in
    w1/b1   : (F, 3) / (F,)  f32 SMEM  backbone stand-in 1x1 conv
    wf1/bf1 : (F, 512) bf16 / (1, 512) f32
    wf2/bf2 : (512, classes) bf16 / (1, classes) f32
    alpha   : (1, classes) f32
    final   : (batch, classes) f32        sig: (batch, cells, classes) f32
    pooled  : (N, F) f32 VMEM scratch
    """
    c0, cin = w0_ref.shape
    feats = w1_ref.shape[0]

    x = x_ref[...]                                      # (N, C*HW), lane-dense

    # ---- init 1x1 conv (normalization folded into w0/b0) + ReLU ------------
    # Channel k of every image occupies lane block [k*HW, (k+1)*HW); weights
    # are SMEM scalars so each output channel is a few scalar*vector FMAs.
    h = []
    for c in range(c0):
        acc = w0_ref[c, 0] * x[:, 0:hw]
        for k in range(1, cin):
            acc = acc + w0_ref[c, k] * x[:, k * hw:(k + 1) * hw]
        h.append(jnp.maximum(acc + b0_ref[c], 0.0))     # (N, HW)

    # ---- backbone stand-in 1x1 conv + ReLU + global average pool -----------
    # TODO(synk): torch.hub pretrained backbone replaced by a deterministic
    # 1x1 conv (3 -> features) + ReLU stand-in.
    for fo in range(feats):
        acc = w1_ref[fo, 0] * h[0]
        for c in range(1, c0):
            acc = acc + w1_ref[fo, c] * h[c]
        acc = jnp.maximum(acc + b1_ref[fo], 0.0)        # (N, HW)
        # GAP over the HW lanes -> one pooled column per feature (XLU reduce).
        pooled_ref[:, fo:fo + 1] = jnp.mean(acc, axis=1, keepdims=True)

    pooled = pooled_ref[...]                            # (N, F)

    # ---- HpaSub head: Linear -> ReLU -> Dropout -> Linear (MXU, bf16) ------
    h1 = jnp.dot(pooled.astype(jnp.bfloat16), wf1_ref[...],
                 preferred_element_type=jnp.float32) + bf1_ref[...]
    h1 = jnp.maximum(h1, 0.0)                           # (N, 512)
    # TODO(synk): nn.Dropout(p=0.2) is the identity (eval-mode semantics).
    spe = jnp.dot(h1.astype(jnp.bfloat16), wf2_ref[...],
                  preferred_element_type=jnp.float32) + bf2_ref[...]  # (N, classes)

    # ---- Autopool over the cells axis ---------------------------------------
    sig = jax.nn.sigmoid(spe)                           # (N, classes), f32
    alpha = alpha_ref[...]                              # (1, classes)
    for b in range(batch):                              # batch tiny: static unroll
        sig_b = sig[b * cells:(b + 1) * cells, :]       # (cells, classes)
        sig_ref[b] = sig_b
        a = sig_b * alpha
        m = jnp.max(a, axis=0, keepdims=True)           # (1, classes)
        num = jnp.exp(a - m)
        den = jnp.sum(num, axis=0, keepdims=True)
        w = num / den
        final_ref[b:b + 1, :] = jnp.sum(sig_b * w, axis=0, keepdims=True)


# ----------------------------------------------------------------------------
# Wrapper
# ----------------------------------------------------------------------------
def _vmem_spec(shape):
    """Full-array VMEM block spec (grid-less call)."""
    return pl.BlockSpec(shape, lambda *_: (0,) * len(shape))


_SMEM_SPEC = pl.BlockSpec(memory_space=pltpu.MemorySpace.SMEM)


def hpa_forward(x, params):
    """x: (batch, cells, C=4, H, W) float32 (PyTorch NCHW convention)."""
    B, cells, C, H, W = x.shape
    N, HW = B * cells, H * W
    feats = params["w_fc1"].shape[0]
    classes = params["w_fc2"].shape[1]

    # Pure, memory-order-preserving reshape: images in sublanes, per-image
    # channel-major pixels packed densely along lanes.  No transpose anywhere.
    x_flat = x.reshape(N, C * HW)

    kern = functools.partial(hpa_fused_kernel, batch=B, cells=cells, hw=HW)
    final_out, sig_out = pl.pallas_call(
        kern,
        out_shape=(jax.ShapeDtypeStruct((B, classes), jnp.float32),
                   jax.ShapeDtypeStruct((B, cells, classes), jnp.float32)),
        in_specs=[
            _vmem_spec(x_flat.shape),
            _SMEM_SPEC, _SMEM_SPEC, _SMEM_SPEC, _SMEM_SPEC,
            _vmem_spec(params["w_fc1"].shape),
            _vmem_spec(params["b_fc1"].shape),
            _vmem_spec(params["w_fc2"].shape),
            _vmem_spec(params["b_fc2"].shape),
            _vmem_spec(params["alpha"].shape),
        ],
        out_specs=(_vmem_spec((B, classes)),
                   _vmem_spec((B, cells, classes))),
        scratch_shapes=[pltpu.VMEM((N, feats), jnp.float32)],
    )(x_flat, params["w0"], params["b0"], params["w_back"], params["b_back"],
      params["w_fc1"], params["b_fc1"], params["w_fc2"], params["b_fc2"],
      params["alpha"])
    return {"final_output": final_out, "sigmoid_output": sig_out}


# ----------------------------------------------------------------------------
# Parameters
# ----------------------------------------------------------------------------
def init_params(key, features, classes, hidden):
    ks = jax.random.split(key, 5)
    mean = jnp.array([0.083170892049318, 0.08627143702844145,
                      0.05734662013795027, 0.06582942296076659], jnp.float32)
    std = jnp.array([0.13561066140407024, 0.13301454127989584,
                     0.09142918497144226, 0.15651865713966945], jnp.float32)
    inv_std = 1.0 / std

    # init_layer: Conv2d(4, 3, kernel_size=1) -> weight (Cout, Cin)
    w_init = 0.1 * jax.random.normal(ks[0], (3, 4), jnp.float32)
    b_init = 0.1 * jax.random.normal(ks[1], (3,), jnp.float32)
    # Fold (x - mean)/std into the init conv (exact):
    #   W @ ((x - mean)*inv_std) + b == (W*inv_std) @ x + (b - W @ (mean*inv_std))
    w0 = w_init * inv_std[None, :]                      # (3, 4)
    b0 = b_init - w_init @ (mean * inv_std)             # (3,)

    return {
        "w0": w0,
        "b0": b0,
        # backbone stand-in: 1x1 conv (3 -> features) + ReLU
        "w_back": 0.1 * jax.random.normal(ks[2], (features, 3), jnp.float32),
        "b_back": jnp.zeros((features,), jnp.float32),
        # HpaSub.species: Linear(features, 512) -> ReLU -> Dropout -> Linear(512, classes)
        # weights stored bf16 (MXU operands); biases / elementwise stay f32.
        "w_fc1": (0.05 * jax.random.normal(ks[3], (features, hidden),
                                           jnp.float32)).astype(jnp.bfloat16),
        "b_fc1": jnp.zeros((1, hidden), jnp.float32),
        "w_fc2": (0.05 * jax.random.normal(ks[4], (hidden, classes),
                                           jnp.float32)).astype(jnp.bfloat16),
        "b_fc2": jnp.zeros((1, classes), jnp.float32),
        # Autopool.alpha = ones(classes)
        "alpha": jnp.ones((1, classes), jnp.float32),
    }


if __name__ == "__main__":
    B, cells, C, H, W = 2, 4, 4, 16, 16
    features, classes, hidden = 32, 8, 512

    key = jax.random.PRNGKey(0)
    k_x, k_p = jax.random.split(key)
    x = jax.random.uniform(k_x, (B, cells, C, H, W), jnp.float32)
    params = init_params(k_p, features, classes, hidden)

    out = jax.jit(hpa_forward)(x, params)
    jax.block_until_ready(out)

    assert out["final_output"].shape == (B, classes)
    assert out["sigmoid_output"].shape == (B, cells, classes)
    assert bool(jnp.all(jnp.isfinite(out["final_output"])))
    assert bool(jnp.all(jnp.isfinite(out["sigmoid_output"])))
    print("KERNEL_OK")
</pallas_src>

<mosaic_0001>
module attributes {stable_mosaic.version = 11 : i64} {
  func.func @hpa_fused_kernel(%arg0: memref<8x1024xf32, #tpu.memory_space<vmem>>, %arg1: memref<3x4xf32, #tpu.memory_space<smem>>, %arg2: memref<3xf32, #tpu.memory_space<smem>>, %arg3: memref<32x3xf32, #tpu.memory_space<smem>>, %arg4: memref<32xf32, #tpu.memory_space<smem>>, %arg5: memref<32x512xbf16, #tpu.memory_space<vmem>>, %arg6: memref<1x512xf32, #tpu.memory_space<vmem>>, %arg7: memref<512x8xbf16, #tpu.memory_space<vmem>>, %arg8: memref<1x8xf32, #tpu.memory_space<vmem>>, %arg9: memref<1x8xf32, #tpu.memory_space<vmem>>, %arg10: memref<2x8xf32, #tpu.memory_space<vmem>>, %arg11: memref<2x4x8xf32, #tpu.memory_space<vmem>>, %arg12: memref<8x32xf32, #tpu.memory_space<vmem>>) attributes {dimension_semantics = [], scalar_prefetch = 0 : i64, scratch_operands = 1 : i64, tpu.core_type = #tpu.core_type<tc>} {
    %c0 = arith.constant 0 : index
    %c0_0 = arith.constant 0 : index
    %0 = vector.load %arg0[%c0, %c0_0] : memref<8x1024xf32, #tpu.memory_space<vmem>>, vector<8x1024xf32>
    %c0_1 = arith.constant 0 : index
    %c0_2 = arith.constant 0 : index
    %1 = memref.load %arg1[%c0_1, %c0_2] : memref<3x4xf32, #tpu.memory_space<smem>>
    %2 = vector.extract_strided_slice %0 {offsets = [0, 0], sizes = [8, 256], strides = [1, 1]} : vector<8x1024xf32> to vector<8x256xf32>
    %3 = vector.broadcast %1 : f32 to vector<8x256xf32>
    %4 = arith.mulf %3, %2 : vector<8x256xf32>
    %c0_3 = arith.constant 0 : index
    %c1 = arith.constant 1 : index
    %5 = memref.load %arg1[%c0_3, %c1] : memref<3x4xf32, #tpu.memory_space<smem>>
    %6 = vector.extract_strided_slice %0 {offsets = [0, 256], sizes = [8, 256], strides = [1, 1]} : vector<8x1024xf32> to vector<8x256xf32>
    %7 = vector.broadcast %5 : f32 to vector<8x256xf32>
    %8 = arith.mulf %7, %6 : vector<8x256xf32>
    %9 = arith.addf %4, %8 : vector<8x256xf32>
    %c0_4 = arith.constant 0 : index
    %c2 = arith.constant 2 : index
    %10 = memref.load %arg1[%c0_4, %c2] : memref<3x4xf32, #tpu.memory_space<smem>>
    %11 = vector.extract_strided_slice %0 {offsets = [0, 512], sizes = [8, 256], strides = [1, 1]} : vector<8x1024xf32> to vector<8x256xf32>
    %12 = vector.broadcast %10 : f32 to vector<8x256xf32>
    %13 = arith.mulf %12, %11 : vector<8x256xf32>
    %14 = arith.addf %9, %13 : vector<8x256xf32>
    %c0_5 = arith.constant 0 : index
    %c3 = arith.constant 3 : index
    %15 = memref.load %arg1[%c0_5, %c3] : memref<3x4xf32, #tpu.memory_space<smem>>
    %16 = vector.extract_strided_slice %0 {offsets = [0, 768], sizes = [8, 256], strides = [1, 1]} : vector<8x1024xf32> to vector<8x256xf32>
    %17 = vector.broadcast %15 : f32 to vector<8x256xf32>
    %18 = arith.mulf %17, %16 : vector<8x256xf32>
    %19 = arith.addf %14, %18 : vector<8x256xf32>
    %c0_6 = arith.constant 0 : index
    %20 = memref.load %arg2[%c0_6] : memref<3xf32, #tpu.memory_space<smem>>
    %21 = vector.broadcast %20 : f32 to vector<8x256xf32>
    %22 = arith.addf %19, %21 : vector<8x256xf32>
    %cst = arith.constant 0.000000e+00 : f32
    %23 = vector.broadcast %cst : f32 to vector<8x256xf32>
    %24 = arith.maximumf %22, %23 : vector<8x256xf32>
    %c1_7 = arith.constant 1 : index
    %c0_8 = arith.constant 0 : index
    %25 = memref.load %arg1[%c1_7, %c0_8] : memref<3x4xf32, #tpu.memory_space<smem>>
    %26 = vector.extract_strided_slice %0 {offsets = [0, 0], sizes = [8, 256], strides = [1, 1]} : vector<8x1024xf32> to vector<8x256xf32>
    %27 = vector.broadcast %25 : f32 to vector<8x256xf32>
    %28 = arith.mulf %27, %26 : vector<8x256xf32>
    %c1_9 = arith.constant 1 : index
    %c1_10 = arith.constant 1 : index
    %29 = memref.load %arg1[%c1_9, %c1_10] : memref<3x4xf32, #tpu.memory_space<smem>>
    %30 = vector.extract_strided_slice %0 {offsets = [0, 256], sizes = [8, 256], strides = [1, 1]} : vector<8x1024xf32> to vector<8x256xf32>
    %31 = vector.broadcast %29 : f32 to vector<8x256xf32>
    %32 = arith.mulf %31, %30 : vector<8x256xf32>
    %33 = arith.addf %28, %32 : vector<8x256xf32>
    %c1_11 = arith.constant 1 : index
    %c2_12 = arith.constant 2 : index
    %34 = memref.load %arg1[%c1_11, %c2_12] : memref<3x4xf32, #tpu.memory_space<smem>>
    %35 = vector.extract_strided_slice %0 {offsets = [0, 512], sizes = [8, 256], strides = [1, 1]} : vector<8x1024xf32> to vector<8x256xf32>
    %36 = vector.broadcast %34 : f32 to vector<8x256xf32>
    %37 = arith.mulf %36, %35 : vector<8x256xf32>
    %38 = arith.addf %33, %37 : vector<8x256xf32>
    %c1_13 = arith.constant 1 : index
    %c3_14 = arith.constant 3 : index
    %39 = memref.load %arg1[%c1_13, %c3_14] : memref<3x4xf32, #tpu.memory_space<smem>>
    %40 = vector.extract_strided_slice %0 {offsets = [0, 768], sizes = [8, 256], strides = [1, 1]} : vector<8x1024xf32> to vector<8x256xf32>
    %41 = vector.broadcast %39 : f32 to vector<8x256xf32>
    %42 = arith.mulf %41, %40 : vector<8x256xf32>
    %43 = arith.addf %38, %42 : vector<8x256xf32>
    %c1_15 = arith.constant 1 : index
    %44 = memref.load %arg2[%c1_15] : memref<3xf32, #tpu.memory_space<smem>>
    %45 = vector.broadcast %44 : f32 to vector<8x256xf32>
    %46 = arith.addf %43, %45 : vector<8x256xf32>
    %cst_16 = arith.constant 0.000000e+00 : f32
    %47 = vector.broadcast %cst_16 : f32 to vector<8x256xf32>
    %48 = arith.maximumf %46, %47 : vector<8x256xf32>
    %c2_17 = arith.constant 2 : index
    %c0_18 = arith.constant 0 : index
    %49 = memref.load %arg1[%c2_17, %c0_18] : memref<3x4xf32, #tpu.memory_space<smem>>
    %50 = vector.extract_strided_slice %0 {offsets = [0, 0], sizes = [8, 256], strides = [1, 1]} : vector<8x1024xf32> to vector<8x256xf32>
    %51 = vector.broadcast %49 : f32 to vector<8x256xf32>
    %52 = arith.mulf %51, %50 : vector<8x256xf32>
    %c2_19 = arith.constant 2 : index
    %c1_20 = arith.constant 1 : index
    %53 = memref.load %arg1[%c2_19, %c1_20] : memref<3x4xf32, #tpu.memory_space<smem>>
    %54 = vector.extract_strided_slice %0 {offsets = [0, 256], sizes = [8, 256], strides = [1, 1]} : vector<8x1024xf32> to vector<8x256xf32>
    %55 = vector.broadcast %53 : f32 to vector<8x256xf32>
    %56 = arith.mulf %55, %54 : vector<8x256xf32>
    %57 = arith.addf %52, %56 : vector<8x256xf32>
    %c2_21 = arith.constant 2 : index
    %c2_22 = arith.constant 2 : index
    %58 = memref.load %arg1[%c2_21, %c2_22] : memref<3x4xf32, #tpu.memory_space<smem>>
    %59 = vector.extract_strided_slice %0 {offsets = [0, 512], sizes = [8, 256], strides = [1, 1]} : vector<8x1024xf32> to vector<8x256xf32>
    %60 = vector.broadcast %58 : f32 to vector<8x256xf32>
    %61 = arith.mulf %60, %59 : vector<8x256xf32>
    %62 = arith.addf %57, %61 : vector<8x256xf32>
    %c2_23 = arith.constant 2 : index
    %c3_24 = arith.constant 3 : index
    %63 = memref.load %arg1[%c2_23, %c3_24] : memref<3x4xf32, #tpu.memory_space<smem>>
    %64 = vector.extract_strided_slice %0 {offsets = [0, 768], sizes = [8, 256], strides = [1, 1]} : vector<8x1024xf32> to vector<8x256xf32>
    %65 = vector.broadcast %63 : f32 to vector<8x256xf32>
    %66 = arith.mulf %65, %64 : vector<8x256xf32>
    %67 = arith.addf %62, %66 : vector<8x256xf32>
    %c2_25 = arith.constant 2 : index
    %68 = memref.load %arg2[%c2_25] : memref<3xf32, #tpu.memory_space<smem>>
    %69 = vector.broadcast %68 : f32 to vector<8x256xf32>
    %70 = arith.addf %67, %69 : vector<8x256xf32>
    %cst_26 = arith.constant 0.000000e+00 : f32
    %71 = vector.broadcast %cst_26 : f32 to vector<8x256xf32>
    %72 = arith.maximumf %70, %71 : vector<8x256xf32>
    %c0_27 = arith.constant 0 : index
    %c0_28 = arith.constant 0 : index
    %73 = memref.load %arg3[%c0_27, %c0_28] : memref<32x3xf32, #tpu.memory_space<smem>>
    %74 = vector.broadcast %73 : f32 to vector<8x256xf32>
    %75 = arith.mulf %74, %24 : vector<8x256xf32>
    %c0_29 = arith.constant 0 : index
    %c1_30 = arith.constant 1 : index
    %76 = memref.load %arg3[%c0_29, %c1_30] : memref<32x3xf32, #tpu.memory_space<smem>>
    %77 = vector.broadcast %76 : f32 to vector<8x256xf32>
    %78 = arith.mulf %77, %48 : vector<8x256xf32>
    %79 = arith.addf %75, %78 : vector<8x256xf32>
    %c0_31 = arith.constant 0 : index
    %c2_32 = arith.constant 2 : index
    %80 = memref.load %arg3[%c0_31, %c2_32] : memref<32x3xf32, #tpu.memory_space<smem>>
    %81 = vector.broadcast %80 : f32 to vector<8x256xf32>
    %82 = arith.mulf %81, %72 : vector<8x256xf32>
    %83 = arith.addf %79, %82 : vector<8x256xf32>
    %c0_33 = arith.constant 0 : index
    %84 = memref.load %arg4[%c0_33] : memref<32xf32, #tpu.memory_space<smem>>
    %85 = vector.broadcast %84 : f32 to vector<8x256xf32>
    %86 = arith.addf %83, %85 : vector<8x256xf32>
    %cst_34 = arith.constant 0.000000e+00 : f32
    %87 = vector.broadcast %cst_34 : f32 to vector<8x256xf32>
    %88 = arith.maximumf %86, %87 : vector<8x256xf32>
    %cst_35 = arith.constant dense<0.000000e+00> : vector<8xf32>
    %89 = vector.multi_reduction <add>, %88, %cst_35 [1] : vector<8x256xf32> to vector<8xf32>
    %90 = vector.shape_cast %89 : vector<8xf32> to vector<8x1xf32>
    %cst_36 = arith.constant 2.560000e+02 : f32
    %91 = vector.broadcast %cst_36 : f32 to vector<8x1xf32>
    %92 = arith.divf %90, %91 : vector<8x1xf32>
    %c0_37 = arith.constant 0 : index
    %c0_38 = arith.constant 0 : index
    %93 = vector.load %arg12[%c0_37, %c0_38] : memref<8x32xf32, #tpu.memory_space<vmem>>, vector<8x1xf32>
    tpu.vector_store %arg12[%c0_37, %c0_38], %92 {strides = array<i32>} : memref<8x32xf32, #tpu.memory_space<vmem>>, vector<8x1xf32>,
    %c1_39 = arith.constant 1 : index
    %c0_40 = arith.constant 0 : index
    %94 = memref.load %arg3[%c1_39, %c0_40] : memref<32x3xf32, #tpu.memory_space<smem>>
    %95 = vector.broadcast %94 : f32 to vector<8x256xf32>
    %96 = arith.mulf %95, %24 : vector<8x256xf32>
    %c1_41 = arith.constant 1 : index
    %c1_42 = arith.constant 1 : index
    %97 = memref.load %arg3[%c1_41, %c1_42] : memref<32x3xf32, #tpu.memory_space<smem>>
    %98 = vector.broadcast %97 : f32 to vector<8x256xf32>
    %99 = arith.mulf %98, %48 : vector<8x256xf32>
    %100 = arith.addf %96, %99 : vector<8x256xf32>
    %c1_43 = arith.constant 1 : index
    %c2_44 = arith.constant 2 : index
    %101 = memref.load %arg3[%c1_43, %c2_44] : memref<32x3xf32, #tpu.memory_space<smem>>
    %102 = vector.broadcast %101 : f32 to vector<8x256xf32>
    %103 = arith.mulf %102, %72 : vector<8x256xf32>
    %104 = arith.addf %100, %103 : vector<8x256xf32>
    %c1_45 = arith.constant 1 : index
    %105 = memref.load %arg4[%c1_45] : memref<32xf32, #tpu.memory_space<smem>>
    %106 = vector.broadcast %105 : f32 to vector<8x256xf32>
    %107 = arith.addf %104, %106 : vector<8x256xf32>
    %cst_46 = arith.constant 0.000000e+00 : f32
    %108 = vector.broadcast %cst_46 : f32 to vector<8x256xf32>
    %109 = arith.maximumf %107, %108 : vector<8x256xf32>
    %cst_47 = arith.constant dense<0.000000e+00> : vector<8xf32>
    %110 = vector.multi_reduction <add>, %109, %cst_47 [1] : vector<8x256xf32> to vector<8xf32>
    %111 = vector.shape_cast %110 : vector<8xf32> to vector<8x1xf32>
    %cst_48 = arith.constant 2.560000e+02 : f32
    %112 = vector.broadcast %cst_48 : f32 to vector<8x1xf32>
    %113 = arith.divf %111, %112 : vector<8x1xf32>
    %c0_49 = arith.constant 0 : index
    %c1_50 = arith.constant 1 : index
    %114 = vector.load %arg12[%c0_49, %c1_50] : memref<8x32xf32, #tpu.memory_space<vmem>>, vector<8x1xf32>
    tpu.vector_store %arg12[%c0_49, %c1_50], %113 {strides = array<i32>} : memref<8x32xf32, #tpu.memory_space<vmem>>, vector<8x1xf32>,
    %c2_51 = arith.constant 2 : index
    %c0_52 = arith.constant 0 : index
    %115 = memref.load %arg3[%c2_51, %c0_52] : memref<32x3xf32, #tpu.memory_space<smem>>
    %116 = vector.broadcast %115 : f32 to vector<8x256xf32>
    %117 = arith.mulf %116, %24 : vector<8x256xf32>
    %c2_53 = arith.constant 2 : index
    %c1_54 = arith.constant 1 : index
    %118 = memref.load %arg3[%c2_53, %c1_54] : memref<32x3xf32, #tpu.memory_space<smem>>
    %119 = vector.broadcast %118 : f32 to vector<8x256xf32>
    %120 = arith.mulf %119, %48 : vector<8x256xf32>
    %121 = arith.addf %117, %120 : vector<8x256xf32>
    %c2_55 = arith.constant 2 : index
    %c2_56 = arith.constant 2 : index
    %122 = memref.load %arg3[%c2_55, %c2_56] : memref<32x3xf32, #tpu.memory_space<smem>>
    %123 = vector.broadcast %122 : f32 to vector<8x256xf32>
    %124 = arith.mulf %123, %72 : vector<8x256xf32>
    %125 = arith.addf %121, %124 : vector<8x256xf32>
    %c2_57 = arith.constant 2 : index
    %126 = memref.load %arg4[%c2_57] : memref<32xf32, #tpu.memory_space<smem>>
    %127 = vector.broadcast %126 : f32 to vector<8x256xf32>
    %128 = arith.addf %125, %127 : vector<8x256xf32>
    %cst_58 = arith.constant 0.000000e+00 : f32
    %129 = vector.broadcast %cst_58 : f32 to vector<8x256xf32>
    %130 = arith.maximumf %128, %129 : vector<8x256xf32>
    %cst_59 = arith.constant dense<0.000000e+00> : vector<8xf32>
    %131 = vector.multi_reduction <add>, %130, %cst_59 [1] : vector<8x256xf32> to vector<8xf32>
    %132 = vector.shape_cast %131 : vector<8xf32> to vector<8x1xf32>
    %cst_60 = arith.constant 2.560000e+02 : f32
    %133 = vector.broadcast %cst_60 : f32 to vector<8x1xf32>
    %134 = arith.divf %132, %133 : vector<8x1xf32>
    %c0_61 = arith.constant 0 : index
    %c2_62 = arith.constant 2 : index
    %135 = vector.load %arg12[%c0_61, %c2_62] : memref<8x32xf32, #tpu.memory_space<vmem>>, vector<8x1xf32>
    tpu.vector_store %arg12[%c0_61, %c2_62], %134 {strides = array<i32>} : memref<8x32xf32, #tpu.memory_space<vmem>>, vector<8x1xf32>,
    %c3_63 = arith.constant 3 : index
    %c0_64 = arith.constant 0 : index
    %136 = memref.load %arg3[%c3_63, %c0_64] : memref<32x3xf32, #tpu.memory_space<smem>>
    %137 = vector.broadcast %136 : f32 to vector<8x256xf32>
    %138 = arith.mulf %137, %24 : vector<8x256xf32>
    %c3_65 = arith.constant 3 : index
    %c1_66 = arith.constant 1 : index
    %139 = memref.load %arg3[%c3_65, %c1_66] : memref<32x3xf32, #tpu.memory_space<smem>>
    %140 = vector.broadcast %139 : f32 to vector<8x256xf32>
    %141 = arith.mulf %140, %48 : vector<8x256xf32>
    %142 = arith.addf %138, %141 : vector<8x256xf32>
    %c3_67 = arith.constant 3 : index
    %c2_68 = arith.constant 2 : index
    %143 = memref.load %arg3[%c3_67, %c2_68] : memref<32x3xf32, #tpu.memory_space<smem>>
    %144 = vector.broadcast %143 : f32 to vector<8x256xf32>
    %145 = arith.mulf %144, %72 : vector<8x256xf32>
    %146 = arith.addf %142, %145 : vector<8x256xf32>
    %c3_69 = arith.constant 3 : index
    %147 = memref.load %arg4[%c3_69] : memref<32xf32, #tpu.memory_space<smem>>
    %148 = vector.broadcast %147 : f32 to vector<8x256xf32>
    %149 = arith.addf %146, %148 : vector<8x256xf32>
    %cst_70 = arith.constant 0.000000e+00 : f32
    %150 = vector.broadcast %cst_70 : f32 to vector<8x256xf32>
    %151 = arith.maximumf %149, %150 : vector<8x256xf32>
    %cst_71 = arith.constant dense<0.000000e+00> : vector<8xf32>
    %152 = vector.multi_reduction <add>, %151, %cst_71 [1] : vector<8x256xf32> to vector<8xf32>
    %153 = vector.shape_cast %152 : vector<8xf32> to vector<8x1xf32>
    %cst_72 = arith.constant 2.560000e+02 : f32
    %154 = vector.broadcast %cst_72 : f32 to vector<8x1xf32>
    %155 = arith.divf %153, %154 : vector<8x1xf32>
    %c0_73 = arith.constant 0 : index
    %c3_74 = arith.constant 3 : index
    %156 = vector.load %arg12[%c0_73, %c3_74] : memref<8x32xf32, #tpu.memory_space<vmem>>, vector<8x1xf32>
    tpu.vector_store %arg12[%c0_73, %c3_74], %155 {strides = array<i32>} : memref<8x32xf32, #tpu.memory_space<vmem>>, vector<8x1xf32>,
    %c4 = arith.constant 4 : index
    %c0_75 = arith.constant 0 : index
    %157 = memref.load %arg3[%c4, %c0_75] : memref<32x3xf32, #tpu.memory_space<smem>>
    %158 = vector.broadcast %157 : f32 to vector<8x256xf32>
    %159 = arith.mulf %158, %24 : vector<8x256xf32>
    %c4_76 = arith.constant 4 : index
    %c1_77 = arith.constant 1 : index
    %160 = memref.load %arg3[%c4_76, %c1_77] : memref<32x3xf32, #tpu.memory_space<smem>>
    %161 = vector.broadcast %160 : f32 to vector<8x256xf32>
    %162 = arith.mulf %161, %48 : vector<8x256xf32>
    %163 = arith.addf %159, %162 : vector<8x256xf32>
    %c4_78 = arith.constant 4 : index
    %c2_79 = arith.constant 2 : index
    %164 = memref.load %arg3[%c4_78, %c2_79] : memref<32x3xf32, #tpu.memory_space<smem>>
    %165 = vector.broadcast %164 : f32 to vector<8x256xf32>
    %166 = arith.mulf %165, %72 : vector<8x256xf32>
    %167 = arith.addf %163, %166 : vector<8x256xf32>
    %c4_80 = arith.constant 4 : index
    %168 = memref.load %arg4[%c4_80] : memref<32xf32, #tpu.memory_space<smem>>
    %169 = vector.broadcast %168 : f32 to vector<8x256xf32>
    %170 = arith.addf %167, %169 : vector<8x256xf32>
    %cst_81 = arith.constant 0.000000e+00 : f32
    %171 = vector.broadcast %cst_81 : f32 to vector<8x256xf32>
    %172 = arith.maximumf %170, %171 : vector<8x256xf32>
    %cst_82 = arith.constant dense<0.000000e+00> : vector<8xf32>
    %173 = vector.multi_reduction <add>, %172, %cst_82 [1] : vector<8x256xf32> to vector<8xf32>
    %174 = vector.shape_cast %173 : vector<8xf32> to vector<8x1xf32>
    %cst_83 = arith.constant 2.560000e+02 : f32
    %175 = vector.broadcast %cst_83 : f32 to vector<8x1xf32>
    %176 = arith.divf %174, %175 : vector<8x1xf32>
    %c0_84 = arith.constant 0 : index
    %c4_85 = arith.constant 4 : index
    %177 = vector.load %arg12[%c0_84, %c4_85] : memref<8x32xf32, #tpu.memory_space<vmem>>, vector<8x1xf32>
    tpu.vector_store %arg12[%c0_84, %c4_85], %176 {strides = array<i32>} : memref<8x32xf32, #tpu.memory_space<vmem>>, vector<8x1xf32>,
    %c5 = arith.constant 5 : index
    %c0_86 = arith.constant 0 : index
    %178 = memref.load %arg3[%c5, %c0_86] : memref<32x3xf32, #tpu.memory_space<smem>>
    %179 = vector.broadcast %178 : f32 to vector<8x256xf32>
    %180 = arith.mulf %179, %24 : vector<8x256xf32>
    %c5_87 = arith.constant 5 : index
    %c1_88 = arith.constant 1 : index
    %181 = memref.load %arg3[%c5_87, %c1_88] : memref<32x3xf32, #tpu.memory_space<smem>>
    %182 = vector.broadcast %181 : f32 to vector<8x256xf32>
    %183 = arith.mulf %182, %48 : vector<8x256xf32>
    %184 = arith.addf %180, %183 : vector<8x256xf32>
    %c5_89 = arith.constant 5 : index
    %c2_90 = arith.constant 2 : index
    %185 = memref.load %arg3[%c5_89, %c2_90] : memref<32x3xf32, #tpu.memory_space<smem>>
    %186 = vector.broadcast %185 : f32 to vector<8x256xf32>
    %187 = arith.mulf %186, %72 : vector<8x256xf32>
    %188 = arith.addf %184, %187 : vector<8x256xf32>
    %c5_91 = arith.constant 5 : index
    %189 = memref.load %arg4[%c5_91] : memref<32xf32, #tpu.memory_space<smem>>
    %190 = vector.broadcast %189 : f32 to vector<8x256xf32>
    %191 = arith.addf %188, %190 : vector<8x256xf32>
    %cst_92 = arith.constant 0.000000e+00 : f32
    %192 = vector.broadcast %cst_92 : f32 to vector<8x256xf32>
    %193 = arith.maximumf %191, %192 : vector<8x256xf32>
    %cst_93 = arith.constant dense<0.000000e+00> : vector<8xf32>
    %194 = vector.multi_reduction <add>, %193, %cst_93 [1] : vector<8x256xf32> to vector<8xf32>
    %195 = vector.shape_cast %194 : vector<8xf32> to vector<8x1xf32>
    %cst_94 = arith.constant 2.560000e+02 : f32
    %196 = vector.broadcast %cst_94 : f32 to vector<8x1xf32>
    %197 = arith.divf %195, %196 : vector<8x1xf32>
    %c0_95 = arith.constant 0 : index
    %c5_96 = arith.constant 5 : index
    %198 = vector.load %arg12[%c0_95, %c5_96] : memref<8x32xf32, #tpu.memory_space<vmem>>, vector<8x1xf32>
    tpu.vector_store %arg12[%c0_95, %c5_96], %197 {strides = array<i32>} : memref<8x32xf32, #tpu.memory_space<vmem>>, vector<8x1xf32>,
    %c6 = arith.constant 6 : index
    %c0_97 = arith.constant 0 : index
    %199 = memref.load %arg3[%c6, %c0_97] : memref<32x3xf32, #tpu.memory_space<smem>>
    %200 = vector.broadcast %199 : f32 to vector<8x256xf32>
    %201 = arith.mulf %200, %24 : vector<8x256xf32>
    %c6_98 = arith.constant 6 : index
    %c1_99 = arith.constant 1 : index
    %202 = memref.load %arg3[%c6_98, %c1_99] : memref<32x3xf32, #tpu.memory_space<smem>>
    %203 = vector.broadcast %202 : f32 to vector<8x256xf32>
    %204 = arith.mulf %203, %48 : vector<8x256xf32>
    %205 = arith.addf %201, %204 : vector<8x256xf32>
    %c6_100 = arith.constant 6 : index
    %c2_101 = arith.constant 2 : index
    %206 = memref.load %arg3[%c6_100, %c2_101] : memref<32x3xf32, #tpu.memory_space<smem>>
    %207 = vector.broadcast %206 : f32 to vector<8x256xf32>
    %208 = arith.mulf %207, %72 : vector<8x256xf32>
    %209 = arith.addf %205, %208 : vector<8x256xf32>
    %c6_102 = arith.constant 6 : index
    %210 = memref.load %arg4[%c6_102] : memref<32xf32, #tpu.memory_space<smem>>
    %211 = vector.broadcast %210 : f32 to vector<8x256xf32>
    %212 = arith.addf %209, %211 : vector<8x256xf32>
    %cst_103 = arith.constant 0.000000e+00 : f32
    %213 = vector.broadcast %cst_103 : f32 to vector<8x256xf32>
    %214 = arith.maximumf %212, %213 : vector<8x256xf32>
    %cst_104 = arith.constant dense<0.000000e+00> : vector<8xf32>
    %215 = vector.multi_reduction <add>, %214, %cst_104 [1] : vector<8x256xf32> to vector<8xf32>
    %216 = vector.shape_cast %215 : vector<8xf32> to vector<8x1xf32>
    %cst_105 = arith.constant 2.560000e+02 : f32
    %217 = vector.broadcast %cst_105 : f32 to vector<8x1xf32>
    %218 = arith.divf %216, %217 : vector<8x1xf32>
    %c0_106 = arith.constant 0 : index
    %c6_107 = arith.constant 6 : index
    %219 = vector.load %arg12[%c0_106, %c6_107] : memref<8x32xf32, #tpu.memory_space<vmem>>, vector<8x1xf32>
    tpu.vector_store %arg12[%c0_106, %c6_107], %218 {strides = array<i32>} : memref<8x32xf32, #tpu.memory_space<vmem>>, vector<8x1xf32>,
    %c7 = arith.constant 7 : index
    %c0_108 = arith.constant 0 : index
    %220 = memref.load %arg3[%c7, %c0_108] : memref<32x3xf32, #tpu.memory_space<smem>>
    %221 = vector.broadcast %220 : f32 to vector<8x256xf32>
    %222 = arith.mulf %221, %24 : vector<8x256xf32>
    %c7_109 = arith.constant 7 : index
    %c1_110 = arith.constant 1 : index
    %223 = memref.load %arg3[%c7_109, %c1_110] : memref<32x3xf32, #tpu.memory_space<smem>>
    %224 = vector.broadcast %223 : f32 to vector<8x256xf32>
    %225 = arith.mulf %224, %48 : vector<8x256xf32>
    %226 = arith.addf %222, %225 : vector<8x256xf32>
    %c7_111 = arith.constant 7 : index
    %c2_112 = arith.constant 2 : index
    %227 = memref.load %arg3[%c7_111, %c2_112] : memref<32x3xf32, #tpu.memory_space<smem>>
    %228 = vector.broadcast %227 : f32 to vector<8x256xf32>
    %229 = arith.mulf %228, %72 : vector<8x256xf32>
    %230 = arith.addf %226, %229 : vector<8x256xf32>
    %c7_113 = arith.constant 7 : index
    %231 = memref.load %arg4[%c7_113] : memref<32xf32, #tpu.memory_space<smem>>
    %232 = vector.broadcast %231 : f32 to vector<8x256xf32>
    %233 = arith.addf %230, %232 : vector<8x256xf32>
    %cst_114 = arith.constant 0.000000e+00 : f32
    %234 = vector.broadcast %cst_114 : f32 to vector<8x256xf32>
    %235 = arith.maximumf %233, %234 : vector<8x256xf32>
    %cst_115 = arith.constant dense<0.000000e+00> : vector<8xf32>
    %236 = vector.multi_reduction <add>, %235, %cst_115 [1] : vector<8x256xf32> to vector<8xf32>
    %237 = vector.shape_cast %236 : vector<8xf32> to vector<8x1xf32>
    %cst_116 = arith.constant 2.560000e+02 : f32
    %238 = vector.broadcast %cst_116 : f32 to vector<8x1xf32>
    %239 = arith.divf %237, %238 : vector<8x1xf32>
    %c0_117 = arith.constant 0 : index
    %c7_118 = arith.constant 7 : index
    %240 = vector.load %arg12[%c0_117, %c7_118] : memref<8x32xf32, #tpu.memory_space<vmem>>, vector<8x1xf32>
    tpu.vector_store %arg12[%c0_117, %c7_118], %239 {strides = array<i32>} : memref<8x32xf32, #tpu.memory_space<vmem>>, vector<8x1xf32>,
    %c8 = arith.constant 8 : index
    %c0_119 = arith.constant 0 : index
    %241 = memref.load %arg3[%c8, %c0_119] : memref<32x3xf32, #tpu.memory_space<smem>>
    %242 = vector.broadcast %241 : f32 to vector<8x256xf32>
    %243 = arith.mulf %242, %24 : vector<8x256xf32>
    %c8_120 = arith.constant 8 : index
    %c1_121 = arith.constant 1 : index
    %244 = memref.load %arg3[%c8_120, %c1_121] : memref<32x3xf32, #tpu.memory_space<smem>>
    %245 = vector.broadcast %244 : f32 to vector<8x256xf32>
    %246 = arith.mulf %245, %48 : vector<8x256xf32>
    %247 = arith.addf %243, %246 : vector<8x256xf32>
    %c8_122 = arith.constant 8 : index
    %c2_123 = arith.constant 2 : index
    %248 = memref.load %arg3[%c8_122, %c2_123] : memref<32x3xf32, #tpu.memory_space<smem>>
    %249 = vector.broadcast %248 : f32 to vector<8x256xf32>
    %250 = arith.mulf %249, %72 : vector<8x256xf32>
    %251 = arith.addf %247, %250 : vector<8x256xf32>
    %c8_124 = arith.constant 8 : index
    %252 = memref.load %arg4[%c8_124] : memref<32xf32, #tpu.memory_space<smem>>
    %253 = vector.broadcast %252 : f32 to vector<8x256xf32>
    %254 = arith.addf %251, %253 : vector<8x256xf32>
    %cst_125 = arith.constant 0.000000e+00 : f32
    %255 = vector.broadcast %cst_125 : f32 to vector<8x256xf32>
    %256 = arith.maximumf %254, %255 : vector<8x256xf32>
    %cst_126 = arith.constant dense<0.000000e+00> : vector<8xf32>
    %257 = vector.multi_reduction <add>, %256, %cst_126 [1] : vector<8x256xf32> to vector<8xf32>
    %258 = vector.shape_cast %257 : vector<8xf32> to vector<8x1xf32>
    %cst_127 = arith.constant 2.560000e+02 : f32
    %259 = vector.broadcast %cst_127 : f32 to vector<8x1xf32>
    %260 = arith.divf %258, %259 : vector<8x1xf32>
    %c0_128 = arith.constant 0 : index
    %c8_129 = arith.constant 8 : index
    %261 = vector.load %arg12[%c0_128, %c8_129] : memref<8x32xf32, #tpu.memory_space<vmem>>, vector<8x1xf32>
    tpu.vector_store %arg12[%c0_128, %c8_129], %260 {strides = array<i32>} : memref<8x32xf32, #tpu.memory_space<vmem>>, vector<8x1xf32>,
    %c9 = arith.constant 9 : index
    %c0_130 = arith.constant 0 : index
    %262 = memref.load %arg3[%c9, %c0_130] : memref<32x3xf32, #tpu.memory_space<smem>>
    %263 = vector.broadcast %262 : f32 to vector<8x256xf32>
    %264 = arith.mulf %263, %24 : vector<8x256xf32>
    %c9_131 = arith.constant 9 : index
    %c1_132 = arith.constant 1 : index
    %265 = memref.load %arg3[%c9_131, %c1_132] : memref<32x3xf32, #tpu.memory_space<smem>>
    %266 = vector.broadcast %265 : f32 to vector<8x256xf32>
    %267 = arith.mulf %266, %48 : vector<8x256xf32>
    %268 = arith.addf %264, %267 : vector<8x256xf32>
    %c9_133 = arith.constant 9 : index
    %c2_134 = arith.constant 2 : index
    %269 = memref.load %arg3[%c9_133, %c2_134] : memref<32x3xf32, #tpu.memory_space<smem>>
    %270 = vector.broadcast %269 : f32 to vector<8x256xf32>
    %271 = arith.mulf %270, %72 : vector<8x256xf32>
    %272 = arith.addf %268, %271 : vector<8x256xf32>
    %c9_135 = arith.constant 9 : index
    %273 = memref.load %arg4[%c9_135] : memref<32xf32, #tpu.memory_space<smem>>
    %274 = vector.broadcast %273 : f32 to vector<8x256xf32>
    %275 = arith.addf %272, %274 : vector<8x256xf32>
    %cst_136 = arith.constant 0.000000e+00 : f32
    %276 = vector.broadcast %cst_136 : f32 to vector<8x256xf32>
    %277 = arith.maximumf %275, %276 : vector<8x256xf32>
    %cst_137 = arith.constant dense<0.000000e+00> : vector<8xf32>
    %278 = vector.multi_reduction <add>, %277, %cst_137 [1] : vector<8x256xf32> to vector<8xf32>
    %279 = vector.shape_cast %278 : vector<8xf32> to vector<8x1xf32>
    %cst_138 = arith.constant 2.560000e+02 : f32
    %280 = vector.broadcast %cst_138 : f32 to vector<8x1xf32>
    %281 = arith.divf %279, %280 : vector<8x1xf32>
    %c0_139 = arith.constant 0 : index
    %c9_140 = arith.constant 9 : index
    %282 = vector.load %arg12[%c0_139, %c9_140] : memref<8x32xf32, #tpu.memory_space<vmem>>, vector<8x1xf32>
    tpu.vector_store %arg12[%c0_139, %c9_140], %281 {strides = array<i32>} : memref<8x32xf32, #tpu.memory_space<vmem>>, vector<8x1xf32>,
    %c10 = arith.constant 10 : index
    %c0_141 = arith.constant 0 : index
    %283 = memref.load %arg3[%c10, %c0_141] : memref<32x3xf32, #tpu.memory_space<smem>>
    %284 = vector.broadcast %283 : f32 to vector<8x256xf32>
    %285 = arith.mulf %284, %24 : vector<8x256xf32>
    %c10_142 = arith.constant 10 : index
    %c1_143 = arith.constant 1 : index
    %286 = memref.load %arg3[%c10_142, %c1_143] : memref<32x3xf32, #tpu.memory_space<smem>>
    %287 = vector.broadcast %286 : f32 to vector<8x256xf32>
    %288 = arith.mulf %287, %48 : vector<8x256xf32>
    %289 = arith.addf %285, %288 : vector<8x256xf32>
    %c10_144 = arith.constant 10 : index
    %c2_145 = arith.constant 2 : index
    %290 = memref.load %arg3[%c10_144, %c2_145] : memref<32x3xf32, #tpu.memory_space<smem>>
    %291 = vector.broadcast %290 : f32 to vector<8x256xf32>
    %292 = arith.mulf %291, %72 : vector<8x256xf32>
    %293 = arith.addf %289, %292 : vector<8x256xf32>
    %c10_146 = arith.constant 10 : index
    %294 = memref.load %arg4[%c10_146] : memref<32xf32, #tpu.memory_space<smem>>
    %295 = vector.broadcast %294 : f32 to vector<8x256xf32>
    %296 = arith.addf %293, %295 : vector<8x256xf32>
    %cst_147 = arith.constant 0.000000e+00 : f32
    %297 = vector.broadcast %cst_147 : f32 to vector<8x256xf32>
    %298 = arith.maximumf %296, %297 : vector<8x256xf32>
    %cst_148 = arith.constant dense<0.000000e+00> : vector<8xf32>
    %299 = vector.multi_reduction <add>, %298, %cst_148 [1] : vector<8x256xf32> to vector<8xf32>
    %300 = vector.shape_cast %299 : vector<8xf32> to vector<8x1xf32>
    %cst_149 = arith.constant 2.560000e+02 : f32
    %301 = vector.broadcast %cst_149 : f32 to vector<8x1xf32>
    %302 = arith.divf %300, %301 : vector<8x1xf32>
    %c0_150 = arith.constant 0 : index
    %c10_151 = arith.constant 10 : index
    %303 = vector.load %arg12[%c0_150, %c10_151] : memref<8x32xf32, #tpu.memory_space<vmem>>, vector<8x1xf32>
    tpu.vector_store %arg12[%c0_150, %c10_151], %302 {strides = array<i32>} : memref<8x32xf32, #tpu.memory_space<vmem>>, vector<8x1xf32>,
    %c11 = arith.constant 11 : index
    %c0_152 = arith.constant 0 : index
    %304 = memref.load %arg3[%c11, %c0_152] : memref<32x3xf32, #tpu.memory_space<smem>>
    %305 = vector.broadcast %304 : f32 to vector<8x256xf32>
    %306 = arith.mulf %305, %24 : vector<8x256xf32>
    %c11_153 = arith.constant 11 : index
    %c1_154 = arith.constant 1 : index
    %307 = memref.load %arg3[%c11_153, %c1_154] : memref<32x3xf32, #tpu.memory_space<smem>>
    %308 = vector.broadcast %307 : f32 to vector<8x256xf32>
    %309 = arith.mulf %308, %48 : vector<8x256xf32>
    %310 = arith.addf %306, %309 : vector<8x256xf32>
    %c11_155 = arith.constant 11 : index
    %c2_156 = arith.constant 2 : index
    %311 = memref.load %arg3[%c11_155, %c2_156] : memref<32x3xf32, #tpu.memory_space<smem>>
    %312 = vector.broadcast %311 : f32 to vector<8x256xf32>
    %313 = arith.mulf %312, %72 : vector<8x256xf32>
    %314 = arith.addf %310, %313 : vector<8x256xf32>
    %c11_157 = arith.constant 11 : index
    %315 = memref.load %arg4[%c11_157] : memref<32xf32, #tpu.memory_space<smem>>
    %316 = vector.broadcast %315 : f32 to vector<8x256xf32>
    %317 = arith.addf %314, %316 : vector<8x256xf32>
    %cst_158 = arith.constant 0.000000e+00 : f32
    %318 = vector.broadcast %cst_158 : f32 to vector<8x256xf32>
    %319 = arith.maximumf %317, %318 : vector<8x256xf32>
    %cst_159 = arith.constant dense<0.000000e+00> : vector<8xf32>
    %320 = vector.multi_reduction <add>, %319, %cst_159 [1] : vector<8x256xf32> to vector<8xf32>
    %321 = vector.shape_cast %320 : vector<8xf32> to vector<8x1xf32>
    %cst_160 = arith.constant 2.560000e+02 : f32
    %322 = vector.broadcast %cst_160 : f32 to vector<8x1xf32>
    %323 = arith.divf %321, %322 : vector<8x1xf32>
    %c0_161 = arith.constant 0 : index
    %c11_162 = arith.constant 11 : index
    %324 = vector.load %arg12[%c0_161, %c11_162] : memref<8x32xf32, #tpu.memory_space<vmem>>, vector<8x1xf32>
    tpu.vector_store %arg12[%c0_161, %c11_162], %323 {strides = array<i32>} : memref<8x32xf32, #tpu.memory_space<vmem>>, vector<8x1xf32>,
    %c12 = arith.constant 12 : index
    %c0_163 = arith.constant 0 : index
    %325 = memref.load %arg3[%c12, %c0_163] : memref<32x3xf32, #tpu.memory_space<smem>>
    %326 = vector.broadcast %325 : f32 to vector<8x256xf32>
    %327 = arith.mulf %326, %24 : vector<8x256xf32>
    %c12_164 = arith.constant 12 : index
    %c1_165 = arith.constant 1 : index
    %328 = memref.load %arg3[%c12_164, %c1_165] : memref<32x3xf32, #tpu.memory_space<smem>>
    %329 = vector.broadcast %328 : f32 to vector<8x256xf32>
    %330 = arith.mulf %329, %48 : vector<8x256xf32>
    %331 = arith.addf %327, %330 : vector<8x256xf32>
    %c12_166 = arith.constant 12 : index
    %c2_167 = arith.constant 2 : index
    %332 = memref.load %arg3[%c12_166, %c2_167] : memref<32x3xf32, #tpu.memory_space<smem>>
    %333 = vector.broadcast %332 : f32 to vector<8x256xf32>
    %334 = arith.mulf %333, %72 : vector<8x256xf32>
    %335 = arith.addf %331, %334 : vector<8x256xf32>
    %c12_168 = arith.constant 12 : index
    %336 = memref.load %arg4[%c12_168] : memref<32xf32, #tpu.memory_space<smem>>
    %337 = vector.broadcast %336 : f32 to vector<8x256xf32>
    %338 = arith.addf %335, %337 : vector<8x256xf32>
    %cst_169 = arith.constant 0.000000e+00 : f32
    %339 = vector.broadcast %cst_169 : f32 to vector<8x256xf32>
    %340 = arith.maximumf %338, %339 : vector<8x256xf32>
    %cst_170 = arith.constant dense<0.000000e+00> : vector<8xf32>
    %341 = vector.multi_reduction <add>, %340, %cst_170 [1] : vector<8x256xf32> to vector<8xf32>
    %342 = vector.shape_cast %341 : vector<8xf32> to vector<8x1xf32>
    %cst_171 = arith.constant 2.560000e+02 : f32
    %343 = vector.broadcast %cst_171 : f32 to vector<8x1xf32>
    %344 = arith.divf %342, %343 : vector<8x1xf32>
    %c0_172 = arith.constant 0 : index
    %c12_173 = arith.constant 12 : index
    %345 = vector.load %arg12[%c0_172, %c12_173] : memref<8x32xf32, #tpu.memory_space<vmem>>, vector<8x1xf32>
    tpu.vector_store %arg12[%c0_172, %c12_173], %344 {strides = array<i32>} : memref<8x32xf32, #tpu.memory_space<vmem>>, vector<8x1xf32>,
    %c13 = arith.constant 13 : index
    %c0_174 = arith.constant 0 : index
    %346 = memref.load %arg3[%c13, %c0_174] : memref<32x3xf32, #tpu.memory_space<smem>>
    %347 = vector.broadcast %346 : f32 to vector<8x256xf32>
    %348 = arith.mulf %347, %24 : vector<8x256xf32>
    %c13_175 = arith.constant 13 : index
    %c1_176 = arith.constant 1 : index
    %349 = memref.load %arg3[%c13_175, %c1_176] : memref<32x3xf32, #tpu.memory_space<smem>>
    %350 = vector.broadcast %349 : f32 to vector<8x256xf32>
    %351 = arith.mulf %350, %48 : vector<8x256xf32>
    %352 = arith.addf %348, %351 : vector<8x256xf32>
    %c13_177 = arith.constant 13 : index
    %c2_178 = arith.constant 2 : index
    %353 = memref.load %arg3[%c13_177, %c2_178] : memref<32x3xf32, #tpu.memory_space<smem>>
    %354 = vector.broadcast %353 : f32 to vector<8x256xf32>
    %355 = arith.mulf %354, %72 : vector<8x256xf32>
    %356 = arith.addf %352, %355 : vector<8x256xf32>
    %c13_179 = arith.constant 13 : index
    %357 = memref.load %arg4[%c13_179] : memref<32xf32, #tpu.memory_space<smem>>
    %358 = vector.broadcast %357 : f32 to vector<8x256xf32>
    %359 = arith.addf %356, %358 : vector<8x256xf32>
    %cst_180 = arith.constant 0.000000e+00 : f32
    %360 = vector.broadcast %cst_180 : f32 to vector<8x256xf32>
    %361 = arith.maximumf %359, %360 : vector<8x256xf32>
    %cst_181 = arith.constant dense<0.000000e+00> : vector<8xf32>
    %362 = vector.multi_reduction <add>, %361, %cst_181 [1] : vector<8x256xf32> to vector<8xf32>
    %363 = vector.shape_cast %362 : vector<8xf32> to vector<8x1xf32>
    %cst_182 = arith.constant 2.560000e+02 : f32
    %364 = vector.broadcast %cst_182 : f32 to vector<8x1xf32>
    %365 = arith.divf %363, %364 : vector<8x1xf32>
    %c0_183 = arith.constant 0 : index
    %c13_184 = arith.constant 13 : index
    %366 = vector.load %arg12[%c0_183, %c13_184] : memref<8x32xf32, #tpu.memory_space<vmem>>, vector<8x1xf32>
    tpu.vector_store %arg12[%c0_183, %c13_184], %365 {strides = array<i32>} : memref<8x32xf32, #tpu.memory_space<vmem>>, vector<8x1xf32>,
    %c14 = arith.constant 14 : index
    %c0_185 = arith.constant 0 : index
    %367 = memref.load %arg3[%c14, %c0_185] : memref<32x3xf32, #tpu.memory_space<smem>>
    %368 = vector.broadcast %367 : f32 to vector<8x256xf32>
    %369 = arith.mulf %368, %24 : vector<8x256xf32>
    %c14_186 = arith.constant 14 : index
    %c1_187 = arith.constant 1 : index
    %370 = memref.load %arg3[%c14_186, %c1_187] : memref<32x3xf32, #tpu.memory_space<smem>>
    %371 = vector.broadcast %370 : f32 to vector<8x256xf32>
    %372 = arith.mulf %371, %48 : vector<8x256xf32>
    %373 = arith.addf %369, %372 : vector<8x256xf32>
    %c14_188 = arith.constant 14 : index
    %c2_189 = arith.constant 2 : index
    %374 = memref.load %arg3[%c14_188, %c2_189] : memref<32x3xf32, #tpu.memory_space<smem>>
    %375 = vector.broadcast %374 : f32 to vector<8x256xf32>
    %376 = arith.mulf %375, %72 : vector<8x256xf32>
    %377 = arith.addf %373, %376 : vector<8x256xf32>
    %c14_190 = arith.constant 14 : index
    %378 = memref.load %arg4[%c14_190] : memref<32xf32, #tpu.memory_space<smem>>
    %379 = vector.broadcast %378 : f32 to vector<8x256xf32>
    %380 = arith.addf %377, %379 : vector<8x256xf32>
    %cst_191 = arith.constant 0.000000e+00 : f32
    %381 = vector.broadcast %cst_191 : f32 to vector<8x256xf32>
    %382 = arith.maximumf %380, %381 : vector<8x256xf32>
    %cst_192 = arith.constant dense<0.000000e+00> : vector<8xf32>
    %383 = vector.multi_reduction <add>, %382, %cst_192 [1] : vector<8x256xf32> to vector<8xf32>
    %384 = vector.shape_cast %383 : vector<8xf32> to vector<8x1xf32>
    %cst_193 = arith.constant 2.560000e+02 : f32
    %385 = vector.broadcast %cst_193 : f32 to vector<8x1xf32>
    %386 = arith.divf %384, %385 : vector<8x1xf32>
    %c0_194 = arith.constant 0 : index
    %c14_195 = arith.constant 14 : index
    %387 = vector.load %arg12[%c0_194, %c14_195] : memref<8x32xf32, #tpu.memory_space<vmem>>, vector<8x1xf32>
    tpu.vector_store %arg12[%c0_194, %c14_195], %386 {strides = array<i32>} : memref<8x32xf32, #tpu.memory_space<vmem>>, vector<8x1xf32>,
    %c15 = arith.constant 15 : index
    %c0_196 = arith.constant 0 : index
    %388 = memref.load %arg3[%c15, %c0_196] : memref<32x3xf32, #tpu.memory_space<smem>>
    %389 = vector.broadcast %388 : f32 to vector<8x256xf32>
    %390 = arith.mulf %389, %24 : vector<8x256xf32>
    %c15_197 = arith.constant 15 : index
    %c1_198 = arith.constant 1 : index
    %391 = memref.load %arg3[%c15_197, %c1_198] : memref<32x3xf32, #tpu.memory_space<smem>>
    %392 = vector.broadcast %391 : f32 to vector<8x256xf32>
    %393 = arith.mulf %392, %48 : vector<8x256xf32>
    %394 = arith.addf %390, %393 : vector<8x256xf32>
    %c15_199 = arith.constant 15 : index
    %c2_200 = arith.constant 2 : index
    %395 = memref.load %arg3[%c15_199, %c2_200] : memref<32x3xf32, #tpu.memory_space<smem>>
    %396 = vector.broadcast %395 : f32 to vector<8x256xf32>
    %397 = arith.mulf %396, %72 : vector<8x256xf32>
    %398 = arith.addf %394, %397 : vector<8x256xf32>
    %c15_201 = arith.constant 15 : index
    %399 = memref.load %arg4[%c15_201] : memref<32xf32, #tpu.memory_space<smem>>
    %400 = vector.broadcast %399 : f32 to vector<8x256xf32>
    %401 = arith.addf %398, %400 : vector<8x256xf32>
    %cst_202 = arith.constant 0.000000e+00 : f32
    %402 = vector.broadcast %cst_202 : f32 to vector<8x256xf32>
    %403 = arith.maximumf %401, %402 : vector<8x256xf32>
    %cst_203 = arith.constant dense<0.000000e+00> : vector<8xf32>
    %404 = vector.multi_reduction <add>, %403, %cst_203 [1] : vector<8x256xf32> to vector<8xf32>
    %405 = vector.shape_cast %404 : vector<8xf32> to vector<8x1xf32>
    %cst_204 = arith.constant 2.560000e+02 : f32
    %406 = vector.broadcast %cst_204 : f32 to vector<8x1xf32>
    %407 = arith.divf %405, %406 : vector<8x1xf32>
    %c0_205 = arith.constant 0 : index
    %c15_206 = arith.constant 15 : index
    %408 = vector.load %arg12[%c0_205, %c15_206] : memref<8x32xf32, #tpu.memory_space<vmem>>, vector<8x1xf32>
    tpu.vector_store %arg12[%c0_205, %c15_206], %407 {strides = array<i32>} : memref<8x32xf32, #tpu.memory_space<vmem>>, vector<8x1xf32>,
    %c16 = arith.constant 16 : index
    %c0_207 = arith.constant 0 : index
    %409 = memref.load %arg3[%c16, %c0_207] : memref<32x3xf32, #tpu.memory_space<smem>>
    %410 = vector.broadcast %409 : f32 to vector<8x256xf32>
    %411 = arith.mulf %410, %24 : vector<8x256xf32>
    %c16_208 = arith.constant 16 : index
    %c1_209 = arith.constant 1 : index
    %412 = memref.load %arg3[%c16_208, %c1_209] : memref<32x3xf32, #tpu.memory_space<smem>>
    %413 = vector.broadcast %412 : f32 to vector<8x256xf32>
    %414 = arith.mulf %413, %48 : vector<8x256xf32>
    %415 = arith.addf %411, %414 : vector<8x256xf32>
    %c16_210 = arith.constant 16 : index
    %c2_211 = arith.constant 2 : index
    %416 = memref.load %arg3[%c16_210, %c2_211] : memref<32x3xf32, #tpu.memory_space<smem>>
    %417 = vector.broadcast %416 : f32 to vector<8x256xf32>
    %418 = arith.mulf %417, %72 : vector<8x256xf32>
    %419 = arith.addf %415, %418 : vector<8x256xf32>
    %c16_212 = arith.constant 16 : index
    %420 = memref.load %arg4[%c16_212] : memref<32xf32, #tpu.memory_space<smem>>
    %421 = vector.broadcast %420 : f32 to vector<8x256xf32>
    %422 = arith.addf %419, %421 : vector<8x256xf32>
    %cst_213 = arith.constant 0.000000e+00 : f32
    %423 = vector.broadcast %cst_213 : f32 to vector<8x256xf32>
    %424 = arith.maximumf %422, %423 : vector<8x256xf32>
    %cst_214 = arith.constant dense<0.000000e+00> : vector<8xf32>
    %425 = vector.multi_reduction <add>, %424, %cst_214 [1] : vector<8x256xf32> to vector<8xf32>
    %426 = vector.shape_cast %425 : vector<8xf32> to vector<8x1xf32>
    %cst_215 = arith.constant 2.560000e+02 : f32
    %427 = vector.broadcast %cst_215 : f32 to vector<8x1xf32>
    %428 = arith.divf %426, %427 : vector<8x1xf32>
    %c0_216 = arith.constant 0 : index
    %c16_217 = arith.constant 16 : index
    %429 = vector.load %arg12[%c0_216, %c16_217] : memref<8x32xf32, #tpu.memory_space<vmem>>, vector<8x1xf32>
    tpu.vector_store %arg12[%c0_216, %c16_217], %428 {strides = array<i32>} : memref<8x32xf32, #tpu.memory_space<vmem>>, vector<8x1xf32>,
    %c17 = arith.constant 17 : index
    %c0_218 = arith.constant 0 : index
    %430 = memref.load %arg3[%c17, %c0_218] : memref<32x3xf32, #tpu.memory_space<smem>>
    %431 = vector.broadcast %430 : f32 to vector<8x256xf32>
    %432 = arith.mulf %431, %24 : vector<8x256xf32>
    %c17_219 = arith.constant 17 : index
    %c1_220 = arith.constant 1 : index
    %433 = memref.load %arg3[%c17_219, %c1_220] : memref<32x3xf32, #tpu.memory_space<smem>>
    %434 = vector.broadcast %433 : f32 to vector<8x256xf32>
    %435 = arith.mulf %434, %48 : vector<8x256xf32>
    %436 = arith.addf %432, %435 : vector<8x256xf32>
    %c17_221 = arith.constant 17 : index
    %c2_222 = arith.constant 2 : index
    %437 = memref.load %arg3[%c17_221, %c2_222] : memref<32x3xf32, #tpu.memory_space<smem>>
    %438 = vector.broadcast %437 : f32 to vector<8x256xf32>
    %439 = arith.mulf %438, %72 : vector<8x256xf32>
    %440 = arith.addf %436, %439 : vector<8x256xf32>
    %c17_223 = arith.constant 17 : index
    %441 = memref.load %arg4[%c17_223] : memref<32xf32, #tpu.memory_space<smem>>
    %442 = vector.broadcast %441 : f32 to vector<8x256xf32>
    %443 = arith.addf %440, %442 : vector<8x256xf32>
    %cst_224 = arith.constant 0.000000e+00 : f32
    %444 = vector.broadcast %cst_224 : f32 to vector<8x256xf32>
    %445 = arith.maximumf %443, %444 : vector<8x256xf32>
    %cst_225 = arith.constant dense<0.000000e+00> : vector<8xf32>
    %446 = vector.multi_reduction <add>, %445, %cst_225 [1] : vector<8x256xf32> to vector<8xf32>
    %447 = vector.shape_cast %446 : vector<8xf32> to vector<8x1xf32>
    %cst_226 = arith.constant 2.560000e+02 : f32
    %448 = vector.broadcast %cst_226 : f32 to vector<8x1xf32>
    %449 = arith.divf %447, %448 : vector<8x1xf32>
    %c0_227 = arith.constant 0 : index
    %c17_228 = arith.constant 17 : index
    %450 = vector.load %arg12[%c0_227, %c17_228] : memref<8x32xf32, #tpu.memory_space<vmem>>, vector<8x1xf32>
    tpu.vector_store %arg12[%c0_227, %c17_228], %449 {strides = array<i32>} : memref<8x32xf32, #tpu.memory_space<vmem>>, vector<8x1xf32>,
    %c18 = arith.constant 18 : index
    %c0_229 = arith.constant 0 : index
    %451 = memref.load %arg3[%c18, %c0_229] : memref<32x3xf32, #tpu.memory_space<smem>>
    %452 = vector.broadcast %451 : f32 to vector<8x256xf32>
    %453 = arith.mulf %452, %24 : vector<8x256xf32>
    %c18_230 = arith.constant 18 : index
    %c1_231 = arith.constant 1 : index
    %454 = memref.load %arg3[%c18_230, %c1_231] : memref<32x3xf32, #tpu.memory_space<smem>>
    %455 = vector.broadcast %454 : f32 to vector<8x256xf32>
    %456 = arith.mulf %455, %48 : vector<8x256xf32>
    %457 = arith.addf %453, %456 : vector<8x256xf32>
    %c18_232 = arith.constant 18 : index
    %c2_233 = arith.constant 2 : index
    %458 = memref.load %arg3[%c18_232, %c2_233] : memref<32x3xf32, #tpu.memory_space<smem>>
    %459 = vector.broadcast %458 : f32 to vector<8x256xf32>
    %460 = arith.mulf %459, %72 : vector<8x256xf32>
    %461 = arith.addf %457, %460 : vector<8x256xf32>
    %c18_234 = arith.constant 18 : index
    %462 = memref.load %arg4[%c18_234] : memref<32xf32, #tpu.memory_space<smem>>
    %463 = vector.broadcast %462 : f32 to vector<8x256xf32>
    %464 = arith.addf %461, %463 : vector<8x256xf32>
    %cst_235 = arith.constant 0.000000e+00 : f32
    %465 = vector.broadcast %cst_235 : f32 to vector<8x256xf32>
    %466 = arith.maximumf %464, %465 : vector<8x256xf32>
    %cst_236 = arith.constant dense<0.000000e+00> : vector<8xf32>
    %467 = vector.multi_reduction <add>, %466, %cst_236 [1] : vector<8x256xf32> to vector<8xf32>
    %468 = vector.shape_cast %467 : vector<8xf32> to vector<8x1xf32>
    %cst_237 = arith.constant 2.560000e+02 : f32
    %469 = vector.broadcast %cst_237 : f32 to vector<8x1xf32>
    %470 = arith.divf %468, %469 : vector<8x1xf32>
    %c0_238 = arith.constant 0 : index
    %c18_239 = arith.constant 18 : index
    %471 = vector.load %arg12[%c0_238, %c18_239] : memref<8x32xf32, #tpu.memory_space<vmem>>, vector<8x1xf32>
    tpu.vector_store %arg12[%c0_238, %c18_239], %470 {strides = array<i32>} : memref<8x32xf32, #tpu.memory_space<vmem>>, vector<8x1xf32>,
    %c19 = arith.constant 19 : index
    %c0_240 = arith.constant 0 : index
    %472 = memref.load %arg3[%c19, %c0_240] : memref<32x3xf32, #tpu.memory_space<smem>>
    %473 = vector.broadcast %472 : f32 to vector<8x256xf32>
    %474 = arith.mulf %473, %24 : vector<8x256xf32>
    %c19_241 = arith.constant 19 : index
    %c1_242 = arith.constant 1 : index
    %475 = memref.load %arg3[%c19_241, %c1_242] : memref<32x3xf32, #tpu.memory_space<smem>>
    %476 = vector.broadcast %475 : f32 to vector<8x256xf32>
    %477 = arith.mulf %476, %48 : vector<8x256xf32>
    %478 = arith.addf %474, %477 : vector<8x256xf32>
    %c19_243 = arith.constant 19 : index
    %c2_244 = arith.constant 2 : index
    %479 = memref.load %arg3[%c19_243, %c2_244] : memref<32x3xf32, #tpu.memory_space<smem>>
    %480 = vector.broadcast %479 : f32 to vector<8x256xf32>
    %481 = arith.mulf %480, %72 : vector<8x256xf32>
    %482 = arith.addf %478, %481 : vector<8x256xf32>
    %c19_245 = arith.constant 19 : index
    %483 = memref.load %arg4[%c19_245] : memref<32xf32, #tpu.memory_space<smem>>
    %484 = vector.broadcast %483 : f32 to vector<8x256xf32>
    %485 = arith.addf %482, %484 : vector<8x256xf32>
    %cst_246 = arith.constant 0.000000e+00 : f32
    %486 = vector.broadcast %cst_246 : f32 to vector<8x256xf32>
    %487 = arith.maximumf %485, %486 : vector<8x256xf32>
    %cst_247 = arith.constant dense<0.000000e+00> : vector<8xf32>
    %488 = vector.multi_reduction <add>, %487, %cst_247 [1] : vector<8x256xf32> to vector<8xf32>
    %489 = vector.shape_cast %488 : vector<8xf32> to vector<8x1xf32>
    %cst_248 = arith.constant 2.560000e+02 : f32
    %490 = vector.broadcast %cst_248 : f32 to vector<8x1xf32>
    %491 = arith.divf %489, %490 : vector<8x1xf32>
    %c0_249 = arith.constant 0 : index
    %c19_250 = arith.constant 19 : index
    %492 = vector.load %arg12[%c0_249, %c19_250] : memref<8x32xf32, #tpu.memory_space<vmem>>, vector<8x1xf32>
    tpu.vector_store %arg12[%c0_249, %c19_250], %491 {strides = array<i32>} : memref<8x32xf32, #tpu.memory_space<vmem>>, vector<8x1xf32>,
    %c20 = arith.constant 20 : index
    %c0_251 = arith.constant 0 : index
    %493 = memref.load %arg3[%c20, %c0_251] : memref<32x3xf32, #tpu.memory_space<smem>>
    %494 = vector.broadcast %493 : f32 to vector<8x256xf32>
    %495 = arith.mulf %494, %24 : vector<8x256xf32>
    %c20_252 = arith.constant 20 : index
    %c1_253 = arith.constant 1 : index
    %496 = memref.load %arg3[%c20_252, %c1_253] : memref<32x3xf32, #tpu.memory_space<smem>>
    %497 = vector.broadcast %496 : f32 to vector<8x256xf32>
    %498 = arith.mulf %497, %48 : vector<8x256xf32>
    %499 = arith.addf %495, %498 : vector<8x256xf32>
    %c20_254 = arith.constant 20 : index
    %c2_255 = arith.constant 2 : index
    %500 = memref.load %arg3[%c20_254, %c2_255] : memref<32x3xf32, #tpu.memory_space<smem>>
    %501 = vector.broadcast %500 : f32 to vector<8x256xf32>
    %502 = arith.mulf %501, %72 : vector<8x256xf32>
    %503 = arith.addf %499, %502 : vector<8x256xf32>
    %c20_256 = arith.constant 20 : index
    %504 = memref.load %arg4[%c20_256] : memref<32xf32, #tpu.memory_space<smem>>
    %505 = vector.broadcast %504 : f32 to vector<8x256xf32>
    %506 = arith.addf %503, %505 : vector<8x256xf32>
    %cst_257 = arith.constant 0.000000e+00 : f32
    %507 = vector.broadcast %cst_257 : f32 to vector<8x256xf32>
    %508 = arith.maximumf %506, %507 : vector<8x256xf32>
    %cst_258 = arith.constant dense<0.000000e+00> : vector<8xf32>
    %509 = vector.multi_reduction <add>, %508, %cst_258 [1] : vector<8x256xf32> to vector<8xf32>
    %510 = vector.shape_cast %509 : vector<8xf32> to vector<8x1xf32>
    %cst_259 = arith.constant 2.560000e+02 : f32
    %511 = vector.broadcast %cst_259 : f32 to vector<8x1xf32>
    %512 = arith.divf %510, %511 : vector<8x1xf32>
    %c0_260 = arith.constant 0 : index
    %c20_261 = arith.constant 20 : index
    %513 = vector.load %arg12[%c0_260, %c20_261] : memref<8x32xf32, #tpu.memory_space<vmem>>, vector<8x1xf32>
    tpu.vector_store %arg12[%c0_260, %c20_261], %512 {strides = array<i32>} : memref<8x32xf32, #tpu.memory_space<vmem>>, vector<8x1xf32>,
    %c21 = arith.constant 21 : index
    %c0_262 = arith.constant 0 : index
    %514 = memref.load %arg3[%c21, %c0_262] : memref<32x3xf32, #tpu.memory_space<smem>>
    %515 = vector.broadcast %514 : f32 to vector<8x256xf32>
    %516 = arith.mulf %515, %24 : vector<8x256xf32>
    %c21_263 = arith.constant 21 : index
    %c1_264 = arith.constant 1 : index
    %517 = memref.load %arg3[%c21_263, %c1_264] : memref<32x3xf32, #tpu.memory_space<smem>>
    %518 = vector.broadcast %517 : f32 to vector<8x256xf32>
    %519 = arith.mulf %518, %48 : vector<8x256xf32>
    %520 = arith.addf %516, %519 : vector<8x256xf32>
    %c21_265 = arith.constant 21 : index
    %c2_266 = arith.constant 2 : index
    %521 = memref.load %arg3[%c21_265, %c2_266] : memref<32x3xf32, #tpu.memory_space<smem>>
    %522 = vector.broadcast %521 : f32 to vector<8x256xf32>
    %523 = arith.mulf %522, %72 : vector<8x256xf32>
    %524 = arith.addf %520, %523 : vector<8x256xf32>
    %c21_267 = arith.constant 21 : index
    %525 = memref.load %arg4[%c21_267] : memref<32xf32, #tpu.memory_space<smem>>
    %526 = vector.broadcast %525 : f32 to vector<8x256xf32>
    %527 = arith.addf %524, %526 : vector<8x256xf32>
    %cst_268 = arith.constant 0.000000e+00 : f32
    %528 = vector.broadcast %cst_268 : f32 to vector<8x256xf32>
    %529 = arith.maximumf %527, %528 : vector<8x256xf32>
    %cst_269 = arith.constant dense<0.000000e+00> : vector<8xf32>
    %530 = vector.multi_reduction <add>, %529, %cst_269 [1] : vector<8x256xf32> to vector<8xf32>
    %531 = vector.shape_cast %530 : vector<8xf32> to vector<8x1xf32>
    %cst_270 = arith.constant 2.560000e+02 : f32
    %532 = vector.broadcast %cst_270 : f32 to vector<8x1xf32>
    %533 = arith.divf %531, %532 : vector<8x1xf32>
    %c0_271 = arith.constant 0 : index
    %c21_272 = arith.constant 21 : index
    %534 = vector.load %arg12[%c0_271, %c21_272] : memref<8x32xf32, #tpu.memory_space<vmem>>, vector<8x1xf32>
    tpu.vector_store %arg12[%c0_271, %c21_272], %533 {strides = array<i32>} : memref<8x32xf32, #tpu.memory_space<vmem>>, vector<8x1xf32>,
    %c22 = arith.constant 22 : index
    %c0_273 = arith.constant 0 : index
    %535 = memref.load %arg3[%c22, %c0_273] : memref<32x3xf32, #tpu.memory_space<smem>>
    %536 = vector.broadcast %535 : f32 to vector<8x256xf32>
    %537 = arith.mulf %536, %24 : vector<8x256xf32>
    %c22_274 = arith.constant 22 : index
    %c1_275 = arith.constant 1 : index
    %538 = memref.load %arg3[%c22_274, %c1_275] : memref<32x3xf32, #tpu.memory_space<smem>>
    %539 = vector.broadcast %538 : f32 to vector<8x256xf32>
    %540 = arith.mulf %539, %48 : vector<8x256xf32>
    %541 = arith.addf %537, %540 : vector<8x256xf32>
    %c22_276 = arith.constant 22 : index
    %c2_277 = arith.constant 2 : index
    %542 = memref.load %arg3[%c22_276, %c2_277] : memref<32x3xf32, #tpu.memory_space<smem>>
    %543 = vector.broadcast %542 : f32 to vector<8x256xf32>
    %544 = arith.mulf %543, %72 : vector<8x256xf32>
    %545 = arith.addf %541, %544 : vector<8x256xf32>
    %c22_278 = arith.constant 22 : index
    %546 = memref.load %arg4[%c22_278] : memref<32xf32, #tpu.memory_space<smem>>
    %547 = vector.broadcast %546 : f32 to vector<8x256xf32>
    %548 = arith.addf %545, %547 : vector<8x256xf32>
    %cst_279 = arith.constant 0.000000e+00 : f32
    %549 = vector.broadcast %cst_279 : f32 to vector<8x256xf32>
    %550 = arith.maximumf %548, %549 : vector<8x256xf32>
    %cst_280 = arith.constant dense<0.000000e+00> : vector<8xf32>
    %551 = vector.multi_reduction <add>, %550, %cst_280 [1] : vector<8x256xf32> to vector<8xf32>
    %552 = vector.shape_cast %551 : vector<8xf32> to vector<8x1xf32>
    %cst_281 = arith.constant 2.560000e+02 : f32
    %553 = vector.broadcast %cst_281 : f32 to vector<8x1xf32>
    %554 = arith.divf %552, %553 : vector<8x1xf32>
    %c0_282 = arith.constant 0 : index
    %c22_283 = arith.constant 22 : index
    %555 = vector.load %arg12[%c0_282, %c22_283] : memref<8x32xf32, #tpu.memory_space<vmem>>, vector<8x1xf32>
    tpu.vector_store %arg12[%c0_282, %c22_283], %554 {strides = array<i32>} : memref<8x32xf32, #tpu.memory_space<vmem>>, vector<8x1xf32>,
    %c23 = arith.constant 23 : index
    %c0_284 = arith.constant 0 : index
    %556 = memref.load %arg3[%c23, %c0_284] : memref<32x3xf32, #tpu.memory_space<smem>>
    %557 = vector.broadcast %556 : f32 to vector<8x256xf32>
    %558 = arith.mulf %557, %24 : vector<8x256xf32>
    %c23_285 = arith.constant 23 : index
    %c1_286 = arith.constant 1 : index
    %559 = memref.load %arg3[%c23_285, %c1_286] : memref<32x3xf32, #tpu.memory_space<smem>>
    %560 = vector.broadcast %559 : f32 to vector<8x256xf32>
    %561 = arith.mulf %560, %48 : vector<8x256xf32>
    %562 = arith.addf %558, %561 : vector<8x256xf32>
    %c23_287 = arith.constant 23 : index
    %c2_288 = arith.constant 2 : index
    %563 = memref.load %arg3[%c23_287, %c2_288] : memref<32x3xf32, #tpu.memory_space<smem>>
    %564 = vector.broadcast %563 : f32 to vector<8x256xf32>
    %565 = arith.mulf %564, %72 : vector<8x256xf32>
    %566 = arith.addf %562, %565 : vector<8x256xf32>
    %c23_289 = arith.constant 23 : index
    %567 = memref.load %arg4[%c23_289] : memref<32xf32, #tpu.memory_space<smem>>
    %568 = vector.broadcast %567 : f32 to vector<8x256xf32>
    %569 = arith.addf %566, %568 : vector<8x256xf32>
    %cst_290 = arith.constant 0.000000e+00 : f32
    %570 = vector.broadcast %cst_290 : f32 to vector<8x256xf32>
    %571 = arith.maximumf %569, %570 : vector<8x256xf32>
    %cst_291 = arith.constant dense<0.000000e+00> : vector<8xf32>
    %572 = vector.multi_reduction <add>, %571, %cst_291 [1] : vector<8x256xf32> to vector<8xf32>
    %573 = vector.shape_cast %572 : vector<8xf32> to vector<8x1xf32>
    %cst_292 = arith.constant 2.560000e+02 : f32
    %574 = vector.broadcast %cst_292 : f32 to vector<8x1xf32>
    %575 = arith.divf %573, %574 : vector<8x1xf32>
    %c0_293 = arith.constant 0 : index
    %c23_294 = arith.constant 23 : index
    %576 = vector.load %arg12[%c0_293, %c23_294] : memref<8x32xf32, #tpu.memory_space<vmem>>, vector<8x1xf32>
    tpu.vector_store %arg12[%c0_293, %c23_294], %575 {strides = array<i32>} : memref<8x32xf32, #tpu.memory_space<vmem>>, vector<8x1xf32>,
    %c24 = arith.constant 24 : index
    %c0_295 = arith.constant 0 : index
    %577 = memref.load %arg3[%c24, %c0_295] : memref<32x3xf32, #tpu.memory_space<smem>>
    %578 = vector.broadcast %577 : f32 to vector<8x256xf32>
    %579 = arith.mulf %578, %24 : vector<8x256xf32>
    %c24_296 = arith.constant 24 : index
    %c1_297 = arith.constant 1 : index
    %580 = memref.load %arg3[%c24_296, %c1_297] : memref<32x3xf32, #tpu.memory_space<smem>>
    %581 = vector.broadcast %580 : f32 to vector<8x256xf32>
    %582 = arith.mulf %581, %48 : vector<8x256xf32>
    %583 = arith.addf %579, %582 : vector<8x256xf32>
    %c24_298 = arith.constant 24 : index
    %c2_299 = arith.constant 2 : index
    %584 = memref.load %arg3[%c24_298, %c2_299] : memref<32x3xf32, #tpu.memory_space<smem>>
    %585 = vector.broadcast %584 : f32 to vector<8x256xf32>
    %586 = arith.mulf %585, %72 : vector<8x256xf32>
    %587 = arith.addf %583, %586 : vector<8x256xf32>
    %c24_300 = arith.constant 24 : index
    %588 = memref.load %arg4[%c24_300] : memref<32xf32, #tpu.memory_space<smem>>
    %589 = vector.broadcast %588 : f32 to vector<8x256xf32>
    %590 = arith.addf %587, %589 : vector<8x256xf32>
    %cst_301 = arith.constant 0.000000e+00 : f32
    %591 = vector.broadcast %cst_301 : f32 to vector<8x256xf32>
    %592 = arith.maximumf %590, %591 : vector<8x256xf32>
    %cst_302 = arith.constant dense<0.000000e+00> : vector<8xf32>
    %593 = vector.multi_reduction <add>, %592, %cst_302 [1] : vector<8x256xf32> to vector<8xf32>
    %594 = vector.shape_cast %593 : vector<8xf32> to vector<8x1xf32>
    %cst_303 = arith.constant 2.560000e+02 : f32
    %595 = vector.broadcast %cst_303 : f32 to vector<8x1xf32>
    %596 = arith.divf %594, %595 : vector<8x1xf32>
    %c0_304 = arith.constant 0 : index
    %c24_305 = arith.constant 24 : index
    %597 = vector.load %arg12[%c0_304, %c24_305] : memref<8x32xf32, #tpu.memory_space<vmem>>, vector<8x1xf32>
    tpu.vector_store %arg12[%c0_304, %c24_305], %596 {strides = array<i32>} : memref<8x32xf32, #tpu.memory_space<vmem>>, vector<8x1xf32>,
    %c25 = arith.constant 25 : index
    %c0_306 = arith.constant 0 : index
    %598 = memref.load %arg3[%c25, %c0_306] : memref<32x3xf32, #tpu.memory_space<smem>>
    %599 = vector.broadcast %598 : f32 to vector<8x256xf32>
    %600 = arith.mulf %599, %24 : vector<8x256xf32>
    %c25_307 = arith.constant 25 : index
    %c1_308 = arith.constant 1 : index
    %601 = memref.load %arg3[%c25_307, %c1_308] : memref<32x3xf32, #tpu.memory_space<smem>>
    %602 = vector.broadcast %601 : f32 to vector<8x256xf32>
    %603 = arith.mulf %602, %48 : vector<8x256xf32>
    %604 = arith.addf %600, %603 : vector<8x256xf32>
    %c25_309 = arith.constant 25 : index
    %c2_310 = arith.constant 2 : index
    %605 = memref.load %arg3[%c25_309, %c2_310] : memref<32x3xf32, #tpu.memory_space<smem>>
    %606 = vector.broadcast %605 : f32 to vector<8x256xf32>
    %607 = arith.mulf %606, %72 : vector<8x256xf32>
    %608 = arith.addf %604, %607 : vector<8x256xf32>
    %c25_311 = arith.constant 25 : index
    %609 = memref.load %arg4[%c25_311] : memref<32xf32, #tpu.memory_space<smem>>
    %610 = vector.broadcast %609 : f32 to vector<8x256xf32>
    %611 = arith.addf %608, %610 : vector<8x256xf32>
    %cst_312 = arith.constant 0.000000e+00 : f32
    %612 = vector.broadcast %cst_312 : f32 to vector<8x256xf32>
    %613 = arith.maximumf %611, %612 : vector<8x256xf32>
    %cst_313 = arith.constant dense<0.000000e+00> : vector<8xf32>
    %614 = vector.multi_reduction <add>, %613, %cst_313 [1] : vector<8x256xf32> to vector<8xf32>
    %615 = vector.shape_cast %614 : vector<8xf32> to vector<8x1xf32>
    %cst_314 = arith.constant 2.560000e+02 : f32
    %616 = vector.broadcast %cst_314 : f32 to vector<8x1xf32>
    %617 = arith.divf %615, %616 : vector<8x1xf32>
    %c0_315 = arith.constant 0 : index
    %c25_316 = arith.constant 25 : index
    %618 = vector.load %arg12[%c0_315, %c25_316] : memref<8x32xf32, #tpu.memory_space<vmem>>, vector<8x1xf32>
    tpu.vector_store %arg12[%c0_315, %c25_316], %617 {strides = array<i32>} : memref<8x32xf32, #tpu.memory_space<vmem>>, vector<8x1xf32>,
    %c26 = arith.constant 26 : index
    %c0_317 = arith.constant 0 : index
    %619 = memref.load %arg3[%c26, %c0_317] : memref<32x3xf32, #tpu.memory_space<smem>>
    %620 = vector.broadcast %619 : f32 to vector<8x256xf32>
    %621 = arith.mulf %620, %24 : vector<8x256xf32>
    %c26_318 = arith.constant 26 : index
    %c1_319 = arith.constant 1 : index
    %622 = memref.load %arg3[%c26_318, %c1_319] : memref<32x3xf32, #tpu.memory_space<smem>>
    %623 = vector.broadcast %622 : f32 to vector<8x256xf32>
    %624 = arith.mulf %623, %48 : vector<8x256xf32>
    %625 = arith.addf %621, %624 : vector<8x256xf32>
    %c26_320 = arith.constant 26 : index
    %c2_321 = arith.constant 2 : index
    %626 = memref.load %arg3[%c26_320, %c2_321] : memref<32x3xf32, #tpu.memory_space<smem>>
    %627 = vector.broadcast %626 : f32 to vector<8x256xf32>
    %628 = arith.mulf %627, %72 : vector<8x256xf32>
    %629 = arith.addf %625, %628 : vector<8x256xf32>
    %c26_322 = arith.constant 26 : index
    %630 = memref.load %arg4[%c26_322] : memref<32xf32, #tpu.memory_space<smem>>
    %631 = vector.broadcast %630 : f32 to vector<8x256xf32>
    %632 = arith.addf %629, %631 : vector<8x256xf32>
    %cst_323 = arith.constant 0.000000e+00 : f32
    %633 = vector.broadcast %cst_323 : f32 to vector<8x256xf32>
    %634 = arith.maximumf %632, %633 : vector<8x256xf32>
    %cst_324 = arith.constant dense<0.000000e+00> : vector<8xf32>
    %635 = vector.multi_reduction <add>, %634, %cst_324 [1] : vector<8x256xf32> to vector<8xf32>
    %636 = vector.shape_cast %635 : vector<8xf32> to vector<8x1xf32>
    %cst_325 = arith.constant 2.560000e+02 : f32
    %637 = vector.broadcast %cst_325 : f32 to vector<8x1xf32>
    %638 = arith.divf %636, %637 : vector<8x1xf32>
    %c0_326 = arith.constant 0 : index
    %c26_327 = arith.constant 26 : index
    %639 = vector.load %arg12[%c0_326, %c26_327] : memref<8x32xf32, #tpu.memory_space<vmem>>, vector<8x1xf32>
    tpu.vector_store %arg12[%c0_326, %c26_327], %638 {strides = array<i32>} : memref<8x32xf32, #tpu.memory_space<vmem>>, vector<8x1xf32>,
    %c27 = arith.constant 27 : index
    %c0_328 = arith.constant 0 : index
    %640 = memref.load %arg3[%c27, %c0_328] : memref<32x3xf32, #tpu.memory_space<smem>>
    %641 = vector.broadcast %640 : f32 to vector<8x256xf32>
    %642 = arith.mulf %641, %24 : vector<8x256xf32>
    %c27_329 = arith.constant 27 : index
    %c1_330 = arith.constant 1 : index
    %643 = memref.load %arg3[%c27_329, %c1_330] : memref<32x3xf32, #tpu.memory_space<smem>>
    %644 = vector.broadcast %643 : f32 to vector<8x256xf32>
    %645 = arith.mulf %644, %48 : vector<8x256xf32>
    %646 = arith.addf %642, %645 : vector<8x256xf32>
    %c27_331 = arith.constant 27 : index
    %c2_332 = arith.constant 2 : index
    %647 = memref.load %arg3[%c27_331, %c2_332] : memref<32x3xf32, #tpu.memory_space<smem>>
    %648 = vector.broadcast %647 : f32 to vector<8x256xf32>
    %649 = arith.mulf %648, %72 : vector<8x256xf32>
    %650 = arith.addf %646, %649 : vector<8x256xf32>
    %c27_333 = arith.constant 27 : index
    %651 = memref.load %arg4[%c27_333] : memref<32xf32, #tpu.memory_space<smem>>
    %652 = vector.broadcast %651 : f32 to vector<8x256xf32>
    %653 = arith.addf %650, %652 : vector<8x256xf32>
    %cst_334 = arith.constant 0.000000e+00 : f32
    %654 = vector.broadcast %cst_334 : f32 to vector<8x256xf32>
    %655 = arith.maximumf %653, %654 : vector<8x256xf32>
    %cst_335 = arith.constant dense<0.000000e+00> : vector<8xf32>
    %656 = vector.multi_reduction <add>, %655, %cst_335 [1] : vector<8x256xf32> to vector<8xf32>
    %657 = vector.shape_cast %656 : vector<8xf32> to vector<8x1xf32>
    %cst_336 = arith.constant 2.560000e+02 : f32
    %658 = vector.broadcast %cst_336 : f32 to vector<8x1xf32>
    %659 = arith.divf %657, %658 : vector<8x1xf32>
    %c0_337 = arith.constant 0 : index
    %c27_338 = arith.constant 27 : index
    %660 = vector.load %arg12[%c0_337, %c27_338] : memref<8x32xf32, #tpu.memory_space<vmem>>, vector<8x1xf32>
    tpu.vector_store %arg12[%c0_337, %c27_338], %659 {strides = array<i32>} : memref<8x32xf32, #tpu.memory_space<vmem>>, vector<8x1xf32>,
    %c28 = arith.constant 28 : index
    %c0_339 = arith.constant 0 : index
    %661 = memref.load %arg3[%c28, %c0_339] : memref<32x3xf32, #tpu.memory_space<smem>>
    %662 = vector.broadcast %661 : f32 to vector<8x256xf32>
    %663 = arith.mulf %662, %24 : vector<8x256xf32>
    %c28_340 = arith.constant 28 : index
    %c1_341 = arith.constant 1 : index
    %664 = memref.load %arg3[%c28_340, %c1_341] : memref<32x3xf32, #tpu.memory_space<smem>>
    %665 = vector.broadcast %664 : f32 to vector<8x256xf32>
    %666 = arith.mulf %665, %48 : vector<8x256xf32>
    %667 = arith.addf %663, %666 : vector<8x256xf32>
    %c28_342 = arith.constant 28 : index
    %c2_343 = arith.constant 2 : index
    %668 = memref.load %arg3[%c28_342, %c2_343] : memref<32x3xf32, #tpu.memory_space<smem>>
    %669 = vector.broadcast %668 : f32 to vector<8x256xf32>
    %670 = arith.mulf %669, %72 : vector<8x256xf32>
    %671 = arith.addf %667, %670 : vector<8x256xf32>
    %c28_344 = arith.constant 28 : index
    %672 = memref.load %arg4[%c28_344] : memref<32xf32, #tpu.memory_space<smem>>
    %673 = vector.broadcast %672 : f32 to vector<8x256xf32>
    %674 = arith.addf %671, %673 : vector<8x256xf32>
    %cst_345 = arith.constant 0.000000e+00 : f32
    %675 = vector.broadcast %cst_345 : f32 to vector<8x256xf32>
    %676 = arith.maximumf %674, %675 : vector<8x256xf32>
    %cst_346 = arith.constant dense<0.000000e+00> : vector<8xf32>
    %677 = vector.multi_reduction <add>, %676, %cst_346 [1] : vector<8x256xf32> to vector<8xf32>
    %678 = vector.shape_cast %677 : vector<8xf32> to vector<8x1xf32>
    %cst_347 = arith.constant 2.560000e+02 : f32
    %679 = vector.broadcast %cst_347 : f32 to vector<8x1xf32>
    %680 = arith.divf %678, %679 : vector<8x1xf32>
    %c0_348 = arith.constant 0 : index
    %c28_349 = arith.constant 28 : index
    %681 = vector.load %arg12[%c0_348, %c28_349] : memref<8x32xf32, #tpu.memory_space<vmem>>, vector<8x1xf32>
    tpu.vector_store %arg12[%c0_348, %c28_349], %680 {strides = array<i32>} : memref<8x32xf32, #tpu.memory_space<vmem>>, vector<8x1xf32>,
    %c29 = arith.constant 29 : index
    %c0_350 = arith.constant 0 : index
    %682 = memref.load %arg3[%c29, %c0_350] : memref<32x3xf32, #tpu.memory_space<smem>>
    %683 = vector.broadcast %682 : f32 to vector<8x256xf32>
    %684 = arith.mulf %683, %24 : vector<8x256xf32>
    %c29_351 = arith.constant 29 : index
    %c1_352 = arith.constant 1 : index
    %685 = memref.load %arg3[%c29_351, %c1_352] : memref<32x3xf32, #tpu.memory_space<smem>>
    %686 = vector.broadcast %685 : f32 to vector<8x256xf32>
    %687 = arith.mulf %686, %48 : vector<8x256xf32>
    %688 = arith.addf %684, %687 : vector<8x256xf32>
    %c29_353 = arith.constant 29 : index
    %c2_354 = arith.constant 2 : index
    %689 = memref.load %arg3[%c29_353, %c2_354] : memref<32x3xf32, #tpu.memory_space<smem>>
    %690 = vector.broadcast %689 : f32 to vector<8x256xf32>
    %691 = arith.mulf %690, %72 : vector<8x256xf32>
    %692 = arith.addf %688, %691 : vector<8x256xf32>
    %c29_355 = arith.constant 29 : index
    %693 = memref.load %arg4[%c29_355] : memref<32xf32, #tpu.memory_space<smem>>
    %694 = vector.broadcast %693 : f32 to vector<8x256xf32>
    %695 = arith.addf %692, %694 : vector<8x256xf32>
    %cst_356 = arith.constant 0.000000e+00 : f32
    %696 = vector.broadcast %cst_356 : f32 to vector<8x256xf32>
    %697 = arith.maximumf %695, %696 : vector<8x256xf32>
    %cst_357 = arith.constant dense<0.000000e+00> : vector<8xf32>
    %698 = vector.multi_reduction <add>, %697, %cst_357 [1] : vector<8x256xf32> to vector<8xf32>
    %699 = vector.shape_cast %698 : vector<8xf32> to vector<8x1xf32>
    %cst_358 = arith.constant 2.560000e+02 : f32
    %700 = vector.broadcast %cst_358 : f32 to vector<8x1xf32>
    %701 = arith.divf %699, %700 : vector<8x1xf32>
    %c0_359 = arith.constant 0 : index
    %c29_360 = arith.constant 29 : index
    %702 = vector.load %arg12[%c0_359, %c29_360] : memref<8x32xf32, #tpu.memory_space<vmem>>, vector<8x1xf32>
    tpu.vector_store %arg12[%c0_359, %c29_360], %701 {strides = array<i32>} : memref<8x32xf32, #tpu.memory_space<vmem>>, vector<8x1xf32>,
    %c30 = arith.constant 30 : index
    %c0_361 = arith.constant 0 : index
    %703 = memref.load %arg3[%c30, %c0_361] : memref<32x3xf32, #tpu.memory_space<smem>>
    %704 = vector.broadcast %703 : f32 to vector<8x256xf32>
    %705 = arith.mulf %704, %24 : vector<8x256xf32>
    %c30_362 = arith.constant 30 : index
    %c1_363 = arith.constant 1 : index
    %706 = memref.load %arg3[%c30_362, %c1_363] : memref<32x3xf32, #tpu.memory_space<smem>>
    %707 = vector.broadcast %706 : f32 to vector<8x256xf32>
    %708 = arith.mulf %707, %48 : vector<8x256xf32>
    %709 = arith.addf %705, %708 : vector<8x256xf32>
    %c30_364 = arith.constant 30 : index
    %c2_365 = arith.constant 2 : index
    %710 = memref.load %arg3[%c30_364, %c2_365] : memref<32x3xf32, #tpu.memory_space<smem>>
    %711 = vector.broadcast %710 : f32 to vector<8x256xf32>
    %712 = arith.mulf %711, %72 : vector<8x256xf32>
    %713 = arith.addf %709, %712 : vector<8x256xf32>
    %c30_366 = arith.constant 30 : index
    %714 = memref.load %arg4[%c30_366] : memref<32xf32, #tpu.memory_space<smem>>
    %715 = vector.broadcast %714 : f32 to vector<8x256xf32>
    %716 = arith.addf %713, %715 : vector<8x256xf32>
    %cst_367 = arith.constant 0.000000e+00 : f32
    %717 = vector.broadcast %cst_367 : f32 to vector<8x256xf32>
    %718 = arith.maximumf %716, %717 : vector<8x256xf32>
    %cst_368 = arith.constant dense<0.000000e+00> : vector<8xf32>
    %719 = vector.multi_reduction <add>, %718, %cst_368 [1] : vector<8x256xf32> to vector<8xf32>
    %720 = vector.shape_cast %719 : vector<8xf32> to vector<8x1xf32>
    %cst_369 = arith.constant 2.560000e+02 : f32
    %721 = vector.broadcast %cst_369 : f32 to vector<8x1xf32>
    %722 = arith.divf %720, %721 : vector<8x1xf32>
    %c0_370 = arith.constant 0 : index
    %c30_371 = arith.constant 30 : index
    %723 = vector.load %arg12[%c0_370, %c30_371] : memref<8x32xf32, #tpu.memory_space<vmem>>, vector<8x1xf32>
    tpu.vector_store %arg12[%c0_370, %c30_371], %722 {strides = array<i32>} : memref<8x32xf32, #tpu.memory_space<vmem>>, vector<8x1xf32>,
    %c31 = arith.constant 31 : index
    %c0_372 = arith.constant 0 : index
    %724 = memref.load %arg3[%c31, %c0_372] : memref<32x3xf32, #tpu.memory_space<smem>>
    %725 = vector.broadcast %724 : f32 to vector<8x256xf32>
    %726 = arith.mulf %725, %24 : vector<8x256xf32>
    %c31_373 = arith.constant 31 : index
    %c1_374 = arith.constant 1 : index
    %727 = memref.load %arg3[%c31_373, %c1_374] : memref<32x3xf32, #tpu.memory_space<smem>>
    %728 = vector.broadcast %727 : f32 to vector<8x256xf32>
    %729 = arith.mulf %728, %48 : vector<8x256xf32>
    %730 = arith.addf %726, %729 : vector<8x256xf32>
    %c31_375 = arith.constant 31 : index
    %c2_376 = arith.constant 2 : index
    %731 = memref.load %arg3[%c31_375, %c2_376] : memref<32x3xf32, #tpu.memory_space<smem>>
    %732 = vector.broadcast %731 : f32 to vector<8x256xf32>
    %733 = arith.mulf %732, %72 : vector<8x256xf32>
    %734 = arith.addf %730, %733 : vector<8x256xf32>
    %c31_377 = arith.constant 31 : index
    %735 = memref.load %arg4[%c31_377] : memref<32xf32, #tpu.memory_space<smem>>
    %736 = vector.broadcast %735 : f32 to vector<8x256xf32>
    %737 = arith.addf %734, %736 : vector<8x256xf32>
    %cst_378 = arith.constant 0.000000e+00 : f32
    %738 = vector.broadcast %cst_378 : f32 to vector<8x256xf32>
    %739 = arith.maximumf %737, %738 : vector<8x256xf32>
    %cst_379 = arith.constant dense<0.000000e+00> : vector<8xf32>
    %740 = vector.multi_reduction <add>, %739, %cst_379 [1] : vector<8x256xf32> to vector<8xf32>
    %741 = vector.shape_cast %740 : vector<8xf32> to vector<8x1xf32>
    %cst_380 = arith.constant 2.560000e+02 : f32
    %742 = vector.broadcast %cst_380 : f32 to vector<8x1xf32>
    %743 = arith.divf %741, %742 : vector<8x1xf32>
    %c0_381 = arith.constant 0 : index
    %c31_382 = arith.constant 31 : index
    %744 = vector.load %arg12[%c0_381, %c31_382] : memref<8x32xf32, #tpu.memory_space<vmem>>, vector<8x1xf32>
    tpu.vector_store %arg12[%c0_381, %c31_382], %743 {strides = array<i32>} : memref<8x32xf32, #tpu.memory_space<vmem>>, vector<8x1xf32>,
    %c0_383 = arith.constant 0 : index
    %c0_384 = arith.constant 0 : index
    %745 = vector.load %arg12[%c0_383, %c0_384] : memref<8x32xf32, #tpu.memory_space<vmem>>, vector<8x32xf32>
    %746 = arith.truncf %745 : vector<8x32xf32> to vector<8x32xbf16>
    %c0_385 = arith.constant 0 : index
    %c0_386 = arith.constant 0 : index
    %747 = vector.load %arg5[%c0_385, %c0_386] : memref<32x512xbf16, #tpu.memory_space<vmem>>, vector<32x512xbf16>
    %cst_387 = arith.constant dense<0.000000e+00> : vector<8x512xf32>
    %748 = tpu.matmul %746, %747, %cst_387 {dimension_numbers = #tpu.dot_dimension_numbers<[1], [0], [0], [1], [0, 0, 1, 1], [], []>} : vector<8x32xbf16>, vector<32x512xbf16>, vector<8x512xf32> -> vector<8x512xf32>
    %c0_388 = arith.constant 0 : index
    %c0_389 = arith.constant 0 : index
    %749 = vector.load %arg6[%c0_388, %c0_389] : memref<1x512xf32, #tpu.memory_space<vmem>>, vector<1x512xf32>
    %750 = vector.broadcast %749 : vector<1x512xf32> to vector<8x512xf32>
    %751 = arith.addf %748, %750 : vector<8x512xf32>
    %cst_390 = arith.constant 0.000000e+00 : f32
    %752 = vector.broadcast %cst_390 : f32 to vector<8x512xf32>
    %753 = arith.maximumf %751, %752 : vector<8x512xf32>
    %754 = arith.truncf %753 : vector<8x512xf32> to vector<8x512xbf16>
    %c0_391 = arith.constant 0 : index
    %c0_392 = arith.constant 0 : index
    %755 = vector.load %arg7[%c0_391, %c0_392] : memref<512x8xbf16, #tpu.memory_space<vmem>>, vector<512x8xbf16>
    %cst_393 = arith.constant dense<0.000000e+00> : vector<8x8xf32>
    %756 = tpu.matmul %754, %755, %cst_393 {dimension_numbers = #tpu.dot_dimension_numbers<[1], [0], [0], [1], [0, 0, 1, 1], [], []>} : vector<8x512xbf16>, vector<512x8xbf16>, vector<8x8xf32> -> vector<8x8xf32>
    %c0_394 = arith.constant 0 : index
    %c0_395 = arith.constant 0 : index
    %757 = vector.load %arg8[%c0_394, %c0_395] : memref<1x8xf32, #tpu.memory_space<vmem>>, vector<1x8xf32>
    %758 = vector.broadcast %757 : vector<1x8xf32> to vector<8x8xf32>
    %759 = arith.addf %756, %758 : vector<8x8xf32>
    %760 = arith.negf %759 : vector<8x8xf32>
    %761 = math.exp %760 : vector<8x8xf32>
    %cst_396 = arith.constant 1.000000e+00 : f32
    %762 = vector.broadcast %cst_396 : f32 to vector<8x8xf32>
    %763 = arith.addf %762, %761 : vector<8x8xf32>
    %764 = arith.divf %762, %763 : vector<8x8xf32>
    %c0_397 = arith.constant 0 : index
    %c0_398 = arith.constant 0 : index
    %765 = vector.load %arg9[%c0_397, %c0_398] : memref<1x8xf32, #tpu.memory_space<vmem>>, vector<1x8xf32>
    %766 = vector.extract_strided_slice %764 {offsets = [0, 0], sizes = [4, 8], strides = [1, 1]} : vector<8x8xf32> to vector<4x8xf32>
    %c0_399 = arith.constant 0 : index
    %c0_400 = arith.constant 0 : index
    %c0_401 = arith.constant 0 : index
    %767 = vector.load %arg11[%c0_399, %c0_400, %c0_401] : memref<2x4x8xf32, #tpu.memory_space<vmem>>, vector<1x4x8xf32>
    %768 = vector.shape_cast %767 : vector<1x4x8xf32> to vector<4x8xf32>
    %769 = vector.shape_cast %766 : vector<4x8xf32> to vector<1x4x8xf32>
    tpu.vector_store %arg11[%c0_399, %c0_400, %c0_401], %769 {strides = array<i32>} : memref<2x4x8xf32, #tpu.memory_space<vmem>>, vector<1x4x8xf32>,
    %770 = vector.broadcast %765 : vector<1x8xf32> to vector<4x8xf32>
    %771 = arith.mulf %766, %770 : vector<4x8xf32>
    %cst_402 = arith.constant dense<0xFF800000> : vector<8xf32>
    %772 = vector.multi_reduction <maximumf>, %771, %cst_402 [0] : vector<4x8xf32> to vector<8xf32>
    %773 = vector.shape_cast %772 : vector<8xf32> to vector<1x8xf32>
    %774 = vector.broadcast %773 : vector<1x8xf32> to vector<4x8xf32>
    %775 = arith.subf %771, %774 : vector<4x8xf32>
    %776 = math.exp %775 : vector<4x8xf32>
    %cst_403 = arith.constant dense<0.000000e+00> : vector<8xf32>
    %777 = vector.multi_reduction <add>, %776, %cst_403 [0] : vector<4x8xf32> to vector<8xf32>
    %778 = vector.shape_cast %777 : vector<8xf32> to vector<1x8xf32>
    %779 = vector.broadcast %778 : vector<1x8xf32> to vector<4x8xf32>
    %780 = arith.divf %776, %779 : vector<4x8xf32>
    %781 = arith.mulf %766, %780 : vector<4x8xf32>
    %cst_404 = arith.constant dense<0.000000e+00> : vector<8xf32>
    %782 = vector.multi_reduction <add>, %781, %cst_404 [0] : vector<4x8xf32> to vector<8xf32>
    %783 = vector.shape_cast %782 : vector<8xf32> to vector<1x8xf32>
    %c0_405 = arith.constant 0 : index
    %c0_406 = arith.constant 0 : index
    %784 = vector.load %arg10[%c0_405, %c0_406] : memref<2x8xf32, #tpu.memory_space<vmem>>, vector<1x8xf32>
    tpu.vector_store %arg10[%c0_405, %c0_406], %783 {strides = array<i32>} : memref<2x8xf32, #tpu.memory_space<vmem>>, vector<1x8xf32>,
    %785 = vector.extract_strided_slice %764 {offsets = [4, 0], sizes = [4, 8], strides = [1, 1]} : vector<8x8xf32> to vector<4x8xf32>
    %c1_407 = arith.constant 1 : index
    %c0_408 = arith.constant 0 : index
    %c0_409 = arith.constant 0 : index
    %786 = vector.load %arg11[%c1_407, %c0_408, %c0_409] : memref<2x4x8xf32, #tpu.memory_space<vmem>>, vector<1x4x8xf32>
    %787 = vector.shape_cast %786 : vector<1x4x8xf32> to vector<4x8xf32>
    %788 = vector.shape_cast %785 : vector<4x8xf32> to vector<1x4x8xf32>
    tpu.vector_store %arg11[%c1_407, %c0_408, %c0_409], %788 {strides = array<i32>} : memref<2x4x8xf32, #tpu.memory_space<vmem>>, vector<1x4x8xf32>,
    %789 = vector.broadcast %765 : vector<1x8xf32> to vector<4x8xf32>
    %790 = arith.mulf %785, %789 : vector<4x8xf32>
    %cst_410 = arith.constant dense<0xFF800000> : vector<8xf32>
    %791 = vector.multi_reduction <maximumf>, %790, %cst_410 [0] : vector<4x8xf32> to vector<8xf32>
    %792 = vector.shape_cast %791 : vector<8xf32> to vector<1x8xf32>
    %793 = vector.broadcast %792 : vector<1x8xf32> to vector<4x8xf32>
    %794 = arith.subf %790, %793 : vector<4x8xf32>
    %795 = math.exp %794 : vector<4x8xf32>
    %cst_411 = arith.constant dense<0.000000e+00> : vector<8xf32>
    %796 = vector.multi_reduction <add>, %795, %cst_411 [0] : vector<4x8xf32> to vector<8xf32>
    %797 = vector.shape_cast %796 : vector<8xf32> to vector<1x8xf32>
    %798 = vector.broadcast %797 : vector<1x8xf32> to vector<4x8xf32>
    %799 = arith.divf %795, %798 : vector<4x8xf32>
    %800 = arith.mulf %785, %799 : vector<4x8xf32>
    %cst_412 = arith.constant dense<0.000000e+00> : vector<8xf32>
    %801 = vector.multi_reduction <add>, %800, %cst_412 [0] : vector<4x8xf32> to vector<8xf32>
    %802 = vector.shape_cast %801 : vector<8xf32> to vector<1x8xf32>
    %c1_413 = arith.constant 1 : index
    %c0_414 = arith.constant 0 : index
    %803 = vector.load %arg10[%c1_413, %c0_414] : memref<2x8xf32, #tpu.memory_space<vmem>>, vector<1x8xf32>
    tpu.vector_store %arg10[%c1_413, %c0_414], %802 {strides = array<i32>} : memref<2x8xf32, #tpu.memory_space<vmem>>, vector<1x8xf32>,
    return
  }
}

</mosaic_0001>

<bundles_post_ra>
// kernel: hpa_forward.1
= control target key start
LH: loop header
LB: loop body
LE: loop exit
PB: predicated region body
PF: predicated region fallthrough
CT: control target
= control target key end

     0   :  { %17 = vsyncpa [#allocation5], 0  ;;  %s3033_s0 = inlined_call_operand.vmem [shape: f32[8,1024], index: 0, kind: input, shape index: {}]   ;;  %s3034_s1 = inlined_call_operand.vmem [shape: f32[3,4], index: 1, kind: input, shape index: {}]   ;;  %s3035_s2 = inlined_call_operand.vmem [shape: f32[3], index: 2, kind: input, shape index: {}]   ;;  %s3036_s3 = inlined_call_operand.vmem [shape: f32[32,3], index: 3, kind: input, shape index: {}]   ;;  %s3037_s4 = inlined_call_operand.vmem [shape: f32[32], index: 4, kind: input, shape index: {}]   ;;  %s3038_s5 = inlined_call_operand.vmem [shape: bf16[32,512], index: 5, kind: input, shape index: {}]   ;;  %s3039_s6 = inlined_call_operand.vmem [shape: f32[1,512], index: 6, kind: input, shape index: {}]   ;;  %s3040_s7 = inlined_call_operand.vmem [shape: bf16[512,8], index: 7, kind: input, shape index: {}]   ;;  %s3041_s8 = inlined_call_operand.vmem [shape: f32[1,8], index: 8, kind: input, shape index: {}]   ;;  %s3042_s9 = inlined_call_operand.vmem [shape: f32[1,8], index: 9, kind: input, shape index: {}]   ;;  %s3043_s10 = inlined_call_operand.hbm [shape: f32[2,8], index: 10, kind: output, shape index: {0}]   ;;  %s3044_s11 = inlined_call_operand.hbm [shape: f32[2,4,8], index: 11, kind: output, shape index: {1}]  }
   0x1   :  { %18 = vsyncpa [#allocation7], 0 }
   0x2   :  { %19 = vsyncpa [#allocation10], 0 }
   0x3   :  { %20 = vsyncpa [#allocation4], 0  ;;  %s40_s19 = sshll.u32 %s3035_s2, 4  ;;  %s41_s19 = int_to_ptr.vmem [resolvable:$true] %s40_s19 }
   0x4   :  { %21 = vsyncpa [#allocation13], 0  ;;  %s30_s22 = sshll.u32 %s3034_s1, 4  ;;  %s1998_s23 = scalar_lea.vmem %s41_s19, 16  ;;  %s31_s22 = int_to_ptr.vmem [resolvable:$true] %s30_s22 }
   0x5   :  { %p1999_p0 = scmp.ne.s32.totalorder %s41_s19, %s1998_s23  ;;  %p2003_p1 = scmp.lt.s32.totalorder %s41_s19, %s41_s19 }
   0x6   :  { %p2004_p2 = scmp.lt.s32.totalorder %s1998_s23, %s1998_s23 }
   0x8   :  { %p2005_p3 = por %p2004_p2, %p2003_p1 }
   0xa   :  { %p2006_p4 = pnand %p2005_p3, %p1999_p0 }
   0xc   :  { %2009 = shalt.err (!%p2006_p4)
}
   0xd   :  { %s2100_s24 = smov [#allocation6]   ;;  %s2010_s25 = scalar_lea.vmem %s31_s22, 64 }
   0xe   :  { %43 = dma.vmem_to_smem %s41_s19, 16, %s2100_s24, [#allocation7]  }
   0xf   :  { %p2011_p5 = scmp.ne.s32.totalorder %s31_s22, %s2010_s25  ;;  %p2015_p6 = scmp.lt.s32.totalorder %s31_s22, %s31_s22 }
  0x10   :  { %p2016_p7 = scmp.lt.s32.totalorder %s2010_s25, %s2010_s25 }
  0x12   :  { %p2017_p8 = por %p2016_p7, %p2015_p6 }
  0x14   :  { %p2018_p9 = pnand %p2017_p8, %p2011_p5 }
  0x16   :  { %2021 = shalt.err (!%p2018_p9)
}
  0x17   :  { %s2101_s2 = smov [#allocation3]   ;;  %s49_s27 = sshll.u32 %s3036_s3, 4  ;;  %s50_s27 = int_to_ptr.vmem [resolvable:$true] %s49_s27 }
  0x18   :  { %33 = dma.vmem_to_smem %s31_s22, 64, %s2101_s2, [#allocation5]  }
  0x19   :  { %s62_s30 = sshll.u32 %s3037_s4, 4  ;;  %s2022_s12 = scalar_lea.vmem %s50_s27, 512  ;;  %s63_s30 = int_to_ptr.vmem [resolvable:$true] %s62_s30 }
  0x1a   :  { %p2023_p10 = scmp.ne.s32.totalorder %s50_s27, %s2022_s12  ;;  %p2027_p11 = scmp.lt.s32.totalorder %s50_s27, %s50_s27 }
  0x1b   :  { %p2028_p12 = scmp.lt.s32.totalorder %s2022_s12, %s2022_s12 }
  0x1d   :  { %p2029_p13 = por %p2028_p12, %p2027_p11 }
  0x1f   :  { %p2030_p0 = pnand %p2029_p13, %p2023_p10 }
  0x21   :  { %2033 = shalt.err (!%p2030_p0)
}
  0x22   :  { %s2102_s13 = smov [#allocation8]   ;;  %s2103_s14 = smov 128  }
  0x23   :  { %s2104_s15 = smov 8   ;;  %s2034_s16 = scalar_lea.vmem %s63_s30, 16 }
  0x24   :  { %55 = dma.vmem_to_smem %s50_s27, 512, %s2102_s13, [#allocation7], %s2103_s14, %s2103_s14, %s2104_s15  }
  0x25   :  { %p2035_p1 = scmp.ne.s32.totalorder %s63_s30, %s2034_s16  ;;  %p2039_p2 = scmp.lt.s32.totalorder %s63_s30, %s63_s30 }
  0x26   :  { %p2040_p3 = scmp.lt.s32.totalorder %s2034_s16, %s2034_s16 }
  0x28   :  { %p2041_p4 = por %p2040_p3, %p2039_p2 }
  0x2a   :  { %p2042_p5 = pnand %p2041_p4, %p2035_p1 }
  0x2c   :  { %2045 = shalt.err (!%p2042_p5)
}
  0x2d   :  { %s2105_s3 = smov [#allocation9]  }
  0x2e   :  { %65 = dma.vmem_to_smem %s63_s30, 16, %s2105_s3, [#allocation10]  }
  0x2f   :  { %2090 = dma.done.wait [#allocation5], 64  }
  0x30   :  { %2091 = vsyncadd [#allocation5], 4294967232 }
  0x31   :  { %2092 = dma.done.wait [#allocation7], 528  }
  0x32   :  { %2093 = vsyncadd [#allocation7], 4294966768 }
  0x33   :  { %2094 = dma.done.wait [#allocation10], 16  }
  0x34   :  { %2095 = vsyncadd [#allocation10], 4294967280 }
  0x35   :  { %88 = sfence }
  0x36   :  { %s98_s4 = sld [smem:[#allocation3]]  ;;  %s1703_s17 = sld [smem:[#allocation3 + $0x1]]  ;;  %v2186_v0 = vld [vmem:[%s3033_s0] sm:$0xff]  ;;  %v2191_v1 = vld [vmem:[%s3033_s0 + $0x8] sm:$0xff]  ;;  %v2196_v2 = vld [vmem:[%s3033_s0 + $0x10] sm:$0xff]  ;;  %vm209_vm0 = vcmask 7168  }
  0x37   :  { %s1704_s22 = sld [smem:[#allocation3 + $0x2]]  ;;  %s1705_s23 = sld [smem:[#allocation3 + $0x3]]  ;;  %v2201_v3 = vld [vmem:[%s3033_s0 + $0x18] sm:$0xff]  ;;  %v2208_v4 = vld [vmem:[%s3033_s0 + $0x20] sm:$0xff]  ;;  %v2213_v5 = vld [vmem:[%s3033_s0 + $0x28] sm:$0xff]  ;;  %vm237_vm1 = vcmask 15368  }
  0x38   :  { %s2203_s26 = sld [smem:[#allocation6]]  ;;  %v2218_v6 = vld [vmem:[%s3033_s0 + $0x30] sm:$0xff]  ;;  %s2220_s15 = sld [smem:[#allocation3 + $0x81]]  ;;  %v2231_v7 = vld [vmem:[%s3033_s0 + $0x38] sm:$0xff]  ;;  %vm265_vm2 = vcmask 23568   ;;  %vm293_vm3 = vcmask 31768  }
  0x39   :  { %s1706_s27 = sld [smem:[#allocation3 + $0x80]]  ;;  %s2222_s16 = sld [smem:[#allocation3 + $0x82]]  ;;  %vm321_vm4 = vcmask 39968   ;;  %vm349_vm5 = vcmask 48168   ;;  %vm377_vm6 = vcmask 56368   ;;  %vm405_vm7 = vcmask 64568  }
  0x3a   :  { %s2224_s3 = sld [smem:[#allocation3 + $0x83]]  ;;  %s2226_s18 = sld [smem:[#allocation6 + $0x1]]  ;;  %vm433_vm8 = vcmask 72768   ;;  %vm461_vm9 = vcmask 80968   ;;  %vm489_vm10 = vcmask 89168   ;;  %vm517_vm11 = vcmask 97368  }
  0x3b   :  { %s2235_s21 = sld [smem:[#allocation3 + $0x100]]  ;;  %s2237_s24 = sld [smem:[#allocation3 + $0x101]]  ;;  %vm545_vm12 = vcmask 105568   ;;  %vm573_vm13 = vcmask 113768   ;;  %vm601_vm14 = vcmask 121968   ;;  %vm629_vm15 = vcmask 130168  }
  0x3c   :  { %v99_v8 = vstv %s98_s4  ;;  %v103_v11 = vstv %s1703_s17  ;;  %s2250_s0 = sld [smem:[#allocation3 + $0x102]]  ;;  %s2252_s4 = sld [smem:[#allocation3 + $0x103]] }
  0x3d   :  { %v100_v9 = vmul.f32 %v99_v8, %v2186_v0  ;;  %v101_v10 = vmul.f32 %v99_v8, %v2191_v1  ;;  %v104_v12 = vmul.f32 %v103_v11, %v2196_v2  ;;  %v105_v13 = vmul.f32 %v103_v11, %v2201_v3  ;;  %s2260_s17 = sld [smem:[#allocation6 + $0x2]]  ;;  %s2272_s2 = sld [smem:[#allocation9]] }
  0x3e   :  { %v109_v14 = vstv %s1704_s22  ;;  %v115_v15 = vstv %s1705_s23  ;;  %v121_v22 = vstv %s2203_s26  ;;  %v131_v26 = vstv %s2220_s15  ;;  %s2262_s22 = sld [smem:[#allocation8]]  ;;  %s2268_s23 = sld [smem:[#allocation8 + $0x1]] }
  0x3f   :  { %v110_v16 = vmul.f32 %v109_v14, %v2208_v4  ;;  %v111_v17 = vmul.f32 %v109_v14, %v2213_v5  ;;  %v116_v18 = vmul.f32 %v115_v15, %v2218_v6  ;;  %v117_v19 = vmul.f32 %v115_v15, %v2231_v7  ;;  %s2270_s25 = sld [smem:[#allocation8 + $0x2]]  ;;  %s2274_s1 = sld [smem:[#allocation8 + $0x100]] }
  0x40   :  { %v106_v20 = vadd.f32 %v104_v12, %v100_v9  ;;  %v107_v21 = vadd.f32 %v105_v13, %v101_v10  ;;  %v127_v23 = vstv %s1706_s27  ;;  %v137_v27 = vstv %s2222_s16  ;;  %s2280_s26 = sld [smem:[#allocation8 + $0x101]]  ;;  %s2282_s27 = sld [smem:[#allocation8 + $0x102]] }
  0x41   :  { %v128_v24 = vmul.f32 %v127_v23, %v2186_v0  ;;  %v129_v25 = vmul.f32 %v127_v23, %v2191_v1  ;;  %v132_v30 = vmul.f32 %v131_v26, %v2196_v2  ;;  %v133_v31 = vmul.f32 %v131_v26, %v2201_v3  ;;  %s2292_s28 = sld [smem:[#allocation9 + $0x2]]  ;;  %s2294_s29 = sld [smem:[#allocation8 + $0x80]] }
  0x42   :  { %v112_v28 = vadd.f32 %v110_v16, %v106_v20  ;;  %v113_v29 = vadd.f32 %v111_v17, %v107_v21  ;;  %v138_v32 = vmul.f32 %v137_v27, %v2208_v4  ;;  %v139_v33 = vmul.f32 %v137_v27, %v2213_v5  ;;  %s2304_s30 = sld [smem:[#allocation8 + $0x81]]  ;;  %s2306_s12 = sld [smem:[#allocation8 + $0x82]] }
  0x43   :  { %v143_v34 = vstv %s2224_s3  ;;  %v149_v35 = vstv %s2226_s18  ;;  %v134_v38 = vadd.f32 %v132_v30, %v128_v24  ;;  %v135_v39 = vadd.f32 %v133_v31, %v129_v25  ;;  %s2312_s13 = sld [smem:[#allocation9 + $0x1]]  ;;  %s2314_s14 = sld [smem:[#allocation8 + $0x180]] }
  0x44   :  { %v118_v36 = vadd.f32 %v116_v18, %v112_v28  ;;  %v119_v37 = vadd.f32 %v117_v19, %v113_v29  ;;  %v144_v40 = vmul.f32 %v143_v34, %v2218_v6  ;;  %v145_v41 = vmul.f32 %v143_v34, %v2231_v7  ;;  %s2334_s15 = sld [smem:[#allocation8 + $0x181]]  ;;  %s2336_s16 = sld [smem:[#allocation8 + $0x182]] }
  0x45   :  { %v155_v42 = vstv %s2235_s21  ;;  %v159_v43 = vstv %s2237_s24  ;;  %v140_v46 = vadd.f32 %v138_v32, %v134_v38  ;;  %v141_v47 = vadd.f32 %v139_v33, %v135_v39  ;;  %s2346_s3 = sld [smem:[#allocation9 + $0x3]]  ;;  %s2348_s18 = sld [smem:[#allocation8 + $0x200]] }
  0x46   :  { %v122_v44 = vadd.f32 %v121_v22, %v118_v36  ;;  %v123_v45 = vadd.f32 %v121_v22, %v119_v37  ;;  %v156_v48 = vmul.f32 %v155_v42, %v2186_v0  ;;  %v157_v49 = vmul.f32 %v155_v42, %v2191_v1  ;;  %s2354_s19 = sld [smem:[#allocation8 + $0x201]]  ;;  %s2356_s20 = sld [smem:[#allocation8 + $0x202]] }
  0x47   :  { %v160_v50 = vmul.f32 %v159_v43, %v2196_v2  ;;  %v161_v51 = vmul.f32 %v159_v43, %v2201_v3  ;;  %v146_v54 = vadd.f32 %v144_v40, %v140_v46  ;;  %v147_v55 = vadd.f32 %v145_v41, %v141_v47  ;;  %s2360_s21 = sld [smem:[#allocation9 + $0x4]]  ;;  %s2364_s24 = sld [smem:[#allocation8 + $0x280]] }
  0x48   :  { %v2284_v52 = vmax.f32 %v122_v44, 0.0  ;;  %v2286_v53 = vmax.f32 %v123_v45, 0.0  ;;  %v165_v58 = vstv %s2250_s0  ;;  %v171_v59 = vstv %s2252_s4  ;;  %s2366_s0 = sld [smem:[#allocation8 + $0x281]]  ;;  %s2372_s4 = sld [smem:[#allocation8 + $0x282]] }
  0x49   :  { %v162_v56 = vadd.f32 %v160_v50, %v156_v48  ;;  %v163_v57 = vadd.f32 %v161_v51, %v157_v49  ;;  %v150_v60 = vadd.f32 %v149_v35, %v146_v54  ;;  %v151_v61 = vadd.f32 %v149_v35, %v147_v55 }
  0x4a   :  { %v166_v62 = vmul.f32 %v165_v58, %v2208_v4  ;;  %v167_v63 = vmul.f32 %v165_v58, %v2213_v5  ;;  %v172_v0 = vmul.f32 %v171_v59, %v2218_v6  ;;  %v173_v1 = vmul.f32 %v171_v59, %v2231_v7 }
  0x4b   :  { %v177_v2 = vstv %s2260_s17  ;;  %v183_v3 = vstv %s2262_s22  ;;  %v2300_v8 = vmax.f32 %v150_v60, 0.0  ;;  %v2302_v9 = vmax.f32 %v151_v61, 0.0  ;;  %s2376_s17 = sld [smem:[#allocation9 + $0x5]]  ;;  %s2378_s22 = sld [smem:[#allocation8 + $0x300]] }
  0x4c   :  { %v168_v4 = vadd.f32 %v166_v62, %v162_v56  ;;  %v169_v5 = vadd.f32 %v167_v63, %v163_v57  ;;  %v184_v6 = vmul.f32 %v183_v3, %v2284_v52  ;;  %v185_v7 = vmul.f32 %v183_v3, %v2286_v53 }
  0x4d   :  { %v187_v10 = vstv %s2268_s23  ;;  %v193_v11 = vstv %s2270_s25  ;;  %v199_v16 = vstv %s2272_s2  ;;  %v240_v17 = vstv %s2274_s1  ;;  %s2387_s23 = sld [smem:[#allocation8 + $0x301]]  ;;  %s2389_s25 = sld [smem:[#allocation8 + $0x302]] }
  0x4e   :  { %v174_v12 = vadd.f32 %v172_v0, %v168_v4  ;;  %v175_v13 = vadd.f32 %v173_v1, %v169_v5  ;;  %v188_v14 = vmul.f32 %v187_v10, %v2300_v8  ;;  %v189_v15 = vmul.f32 %v187_v10, %v2302_v9  ;;  %s2395_s2 = sld [smem:[#allocation9 + $0x6]]  ;;  %s2399_s1 = sld [smem:[#allocation8 + $0x380]] }
  0x4f   :  { %v244_v18 = vstv %s2280_s26  ;;  %v250_v19 = vstv %s2282_s27  ;;  %v241_v24 = vmul.f32 %v240_v17, %v2284_v52  ;;  %v242_v25 = vmul.f32 %v240_v17, %v2286_v53  ;;  %s2401_s26 = sld [smem:[#allocation8 + $0x381]]  ;;  %s2405_s27 = sld [smem:[#allocation8 + $0x382]] }
  0x50   :  { %v178_v20 = vadd.f32 %v177_v2, %v174_v12  ;;  %v179_v21 = vadd.f32 %v177_v2, %v175_v13  ;;  %v190_v22 = vadd.f32 %v188_v14, %v184_v6  ;;  %v191_v23 = vadd.f32 %v189_v15, %v185_v7 }
  0x51   :  { %v245_v26 = vmul.f32 %v244_v18, %v2300_v8  ;;  %v246_v27 = vmul.f32 %v244_v18, %v2302_v9  ;;  %v256_v30 = vstv %s2292_s28  ;;  %v212_v31 = vstv %s2294_s29  ;;  %s2407_s28 = sld [smem:[#allocation9 + $0x7]]  ;;  %s2418_s29 = sld [smem:[#allocation8 + $0x400]] }
  0x52   :  { %v2326_v28 = vmax.f32 %v178_v20, 0.0  ;;  %v2328_v29 = vmax.f32 %v179_v21, 0.0  ;;  %v213_v34 = vmul.f32 %v212_v31, %v2284_v52  ;;  %v214_v35 = vmul.f32 %v212_v31, %v2286_v53 }
  0x53   :  { %v247_v32 = vadd.f32 %v245_v26, %v241_v24  ;;  %v248_v33 = vadd.f32 %v246_v27, %v242_v25  ;;  %v216_v40 = vstv %s2304_s30  ;;  %v222_v41 = vstv %s2306_s12  ;;  %s2425_s30 = sld [smem:[#allocation8 + $0x401]]  ;;  %s2427_s12 = sld [smem:[#allocation8 + $0x402]] }
  0x54   :  { %v194_v36 = vmul.f32 %v193_v11, %v2326_v28  ;;  %v195_v37 = vmul.f32 %v193_v11, %v2328_v29  ;;  %v251_v38 = vmul.f32 %v250_v19, %v2326_v28  ;;  %v252_v39 = vmul.f32 %v250_v19, %v2328_v29 }
  0x55   :  { %v228_v42 = vstv %s2312_s13  ;;  %v268_v43 = vstv %s2314_s14  ;;  %v217_v48 = vmul.f32 %v216_v40, %v2300_v8  ;;  %v218_v49 = vmul.f32 %v216_v40, %v2302_v9  ;;  %s2433_s13 = sld [smem:[#allocation9 + $0x8]] }
  0x56   :  { %v196_v44 = vadd.f32 %v194_v36, %v190_v22  ;;  %v197_v45 = vadd.f32 %v195_v37, %v191_v23  ;;  %v253_v46 = vadd.f32 %v251_v38, %v247_v32  ;;  %v254_v47 = vadd.f32 %v252_v39, %v248_v33  ;;  %s2435_s14 = sld [smem:[#allocation8 + $0x480]] }
  0x57   :  { %v223_v50 = vmul.f32 %v222_v41, %v2326_v28  ;;  %v224_v51 = vmul.f32 %v222_v41, %v2328_v29  ;;  %v219_v58 = vadd.f32 %v217_v48, %v213_v34  ;;  %v220_v59 = vadd.f32 %v218_v49, %v214_v35 }
  0x58   :  { %v200_v54 = vadd.f32 %v199_v16, %v196_v44  ;;  %v201_v55 = vadd.f32 %v199_v16, %v197_v45  ;;  %v257_v56 = vadd.f32 %v256_v30, %v253_v46  ;;  %v258_v57 = vadd.f32 %v256_v30, %v254_v47 }
  0x59   :  { %v269_v60 = vmul.f32 %v268_v43, %v2284_v52  ;;  %v270_v61 = vmul.f32 %v268_v43, %v2286_v53  ;;  %v225_v2 = vadd.f32 %v223_v50, %v219_v58  ;;  %v226_v3 = vadd.f32 %v224_v51, %v220_v59 }
  0x5a   :  { %v202_v62 = vmax.f32 %v200_v54, 0.0  ;;  %v203_v63 = vmax.f32 %v201_v55, 0.0  ;;  %v259_v0 = vmax.f32 %v257_v56, 0.0  ;;  %v260_v1 = vmax.f32 %v258_v57, 0.0 }
  0x5b   :  { %v272_v4 = vstv %s2334_s15  ;;  %v278_v5 = vstv %s2336_s16  ;;  %v229_v12 = vadd.f32 %v228_v42, %v225_v2  ;;  %v230_v13 = vadd.f32 %v228_v42, %v226_v3  ;;  %s2437_s15 = sld [smem:[#allocation8 + $0x481]]  ;;  %s2444_s16 = sld [smem:[#allocation8 + $0x482]] }
  0x5c   :  { %v204_v6 = vadd.f32 %v203_v63, %v202_v62  ;;  %v261_v7 = vadd.f32 %v260_v1, %v259_v0  ;;  %v273_v10 = vmul.f32 %v272_v4, %v2300_v8  ;;  %v274_v11 = vmul.f32 %v272_v4, %v2302_v9 }
  0x5d   :  { %v279_v14 = vmul.f32 %v278_v5, %v2326_v28  ;;  %v280_v15 = vmul.f32 %v278_v5, %v2328_v29  ;;  %v284_v18 = vstv %s2346_s3  ;;  %v296_v19 = vstv %s2348_s18  ;;  %s2448_s3 = sld [smem:[#allocation9 + $0x9]]  ;;  %s2450_s18 = sld [smem:[#allocation8 + $0x500]] }
  0x5e   :  { %205 = vadd.xlane.f32.xlu0 %v204_v6  ;;  %262 = vadd.xlane.f32.xlu1 %v261_v7  ;;  %v275_v16 = vadd.f32 %v273_v10, %v269_v60  ;;  %v276_v17 = vadd.f32 %v274_v11, %v270_v61  ;;  %v231_v20 = vmax.f32 %v229_v12, 0.0  ;;  %v232_v21 = vmax.f32 %v230_v13, 0.0 }
  0x5f   :  { %v297_v22 = vmul.f32 %v296_v19, %v2284_v52  ;;  %v298_v23 = vmul.f32 %v296_v19, %v2286_v53  ;;  %v300_v26 = vstv %s2354_s19  ;;  %v306_v27 = vstv %s2356_s20  ;;  %s2459_s19 = sld [smem:[#allocation8 + $0x501]]  ;;  %s2461_s20 = sld [smem:[#allocation8 + $0x502]] }
  0x60   :  { %v281_v24 = vadd.f32 %v279_v14, %v275_v16  ;;  %v282_v25 = vadd.f32 %v280_v15, %v276_v17  ;;  %v233_v30 = vadd.f32 %v232_v21, %v231_v20  ;;  %v301_v31 = vmul.f32 %v300_v26, %v2300_v8 }
  0x61   :  { %v302_v32 = vmul.f32 %v300_v26, %v2302_v9  ;;  %v307_v33 = vmul.f32 %v306_v27, %v2326_v28  ;;  %v308_v36 = vmul.f32 %v306_v27, %v2328_v29  ;;  %v312_v37 = vstv %s2360_s21  ;;  %s2467_s21 = sld [smem:[#allocation9 + $0xa]] }
  0x62   :  { %v285_v34 = vadd.f32 %v284_v18, %v281_v24  ;;  %v286_v35 = vadd.f32 %v284_v18, %v282_v25  ;;  %234 = vadd.xlane.f32.xlu0 %v233_v30  ;;  %v303_v38 = vadd.f32 %v301_v31, %v297_v22  ;;  %v324_v40 = vstv %s2364_s24  ;;  %s2471_s24 = sld [smem:[#allocation8 + $0x580]] }
  0x63   :  { %v304_v39 = vadd.f32 %v302_v32, %v298_v23  ;;  %v328_v41 = vstv %s2366_s0  ;;  %v325_v44 = vmul.f32 %v324_v40, %v2284_v52  ;;  %v326_v45 = vmul.f32 %v324_v40, %v2286_v53  ;;  %s2473_s0 = sld [smem:[#allocation8 + $0x581]] }
  0x64   :  { %v287_v42 = vmax.f32 %v285_v34, 0.0  ;;  %v288_v43 = vmax.f32 %v286_v35, 0.0  ;;  %v309_v46 = vadd.f32 %v307_v33, %v303_v38  ;;  %v329_v48 = vmul.f32 %v328_v41, %v2300_v8 }
  0x65   :  { %v310_v47 = vadd.f32 %v308_v36, %v304_v39  ;;  %v330_v49 = vmul.f32 %v328_v41, %v2302_v9  ;;  %v334_v51 = vstv %s2372_s4  ;;  %v340_v54 = vstv %s2376_s17  ;;  %s2477_s4 = sld [smem:[#allocation8 + $0x582]]  ;;  %s2479_s17 = sld [smem:[#allocation9 + $0xb]] }
  0x66   :  { %v289_v50 = vadd.f32 %v288_v43, %v287_v42  ;;  %v352_v55 = vstv %s2378_s22  ;;  %v313_v56 = vadd.f32 %v312_v37, %v309_v46  ;;  %v331_v58 = vadd.f32 %v329_v48, %v325_v44  ;;  %s2490_s22 = sld [smem:[#allocation8 + $0x600]] }
  0x67   :  { %v314_v57 = vadd.f32 %v312_v37, %v310_v47  ;;  %v332_v59 = vadd.f32 %v330_v49, %v326_v45  ;;  %v335_v60 = vmul.f32 %v334_v51, %v2326_v28  ;;  %v336_v61 = vmul.f32 %v334_v51, %v2328_v29 }
  0x68   :  { %290 = vadd.xlane.f32.xlu1 %v289_v50  ;;  %v353_v62 = vmul.f32 %v352_v55, %v2284_v52  ;;  %v354_v63 = vmul.f32 %v352_v55, %v2286_v53  ;;  %v315_v0 = vmax.f32 %v313_v56, 0.0  ;;  %v356_v2 = vstv %s2387_s23  ;;  %s2494_s23 = sld [smem:[#allocation8 + $0x601]] }
  0x69   :  { %v316_v1 = vmax.f32 %v314_v57, 0.0  ;;  %v362_v3 = vstv %s2389_s25  ;;  %v337_v4 = vadd.f32 %v335_v60, %v331_v58  ;;  %v338_v5 = vadd.f32 %v336_v61, %v332_v59  ;;  %s2496_s25 = sld [smem:[#allocation8 + $0x602]] }
  0x6a   :  { %v357_v6 = vmul.f32 %v356_v2, %v2300_v8  ;;  %v358_v7 = vmul.f32 %v356_v2, %v2302_v9  ;;  %v363_v11 = vmul.f32 %v362_v3, %v2326_v28  ;;  %v364_v12 = vmul.f32 %v362_v3, %v2328_v29 }
  0x6b   :  { %v317_v10 = vadd.f32 %v316_v1, %v315_v0  ;;  %v368_v13 = vstv %s2395_s2  ;;  %v341_v14 = vadd.f32 %v340_v54, %v337_v4  ;;  %v342_v15 = vadd.f32 %v340_v54, %v338_v5  ;;  %s2501_s2 = sld [smem:[#allocation9 + $0xc]] }
  0x6c   :  { %v359_v16 = vadd.f32 %v357_v6, %v353_v62  ;;  %v360_v17 = vadd.f32 %v358_v7, %v354_v63  ;;  %v380_v18 = vstv %s2399_s1  ;;  %v384_v19 = vstv %s2401_s26  ;;  %s2503_s1 = sld [smem:[#allocation8 + $0x680]]  ;;  %s2509_s26 = sld [smem:[#allocation8 + $0x681]] }
  0x6d   :  { %318 = vadd.xlane.f32.xlu0 %v317_v10  ;;  %v390_v20 = vstv %s2405_s27  ;;  %v396_v21 = vstv %s2407_s28  ;;  %v343_v22 = vmax.f32 %v341_v14, 0.0  ;;  %v344_v23 = vmax.f32 %v342_v15, 0.0  ;;  %s2511_s27 = sld [smem:[#allocation8 + $0x682]]  ;;  %s2520_s28 = sld [smem:[#allocation9 + $0xd]] }
  0x6e   :  { %v365_v24 = vadd.f32 %v363_v11, %v359_v16  ;;  %v366_v25 = vadd.f32 %v364_v12, %v360_v17  ;;  %v381_v26 = vmul.f32 %v380_v18, %v2284_v52  ;;  %v382_v27 = vmul.f32 %v380_v18, %v2286_v53 }
  0x6f   :  { %v385_v30 = vmul.f32 %v384_v19, %v2300_v8  ;;  %v386_v31 = vmul.f32 %v384_v19, %v2302_v9  ;;  %v345_v32 = vadd.f32 %v344_v23, %v343_v22  ;;  %v391_v35 = vmul.f32 %v390_v20, %v2326_v28 }
  0x70   :  { %v369_v33 = vadd.f32 %v368_v13, %v365_v24  ;;  %v370_v34 = vadd.f32 %v368_v13, %v366_v25  ;;  %v392_v38 = vmul.f32 %v390_v20, %v2328_v29  ;;  %v408_v39 = vstv %s2418_s29  ;;  %s2522_s29 = sld [smem:[#allocation8 + $0x700]] }
  0x71   :  { %v387_v36 = vadd.f32 %v385_v30, %v381_v26  ;;  %v388_v37 = vadd.f32 %v386_v31, %v382_v27  ;;  %346 = vadd.xlane.f32.xlu1 %v345_v32  ;;  %v409_v42 = vmul.f32 %v408_v39, %v2284_v52  ;;  %v410_v43 = vmul.f32 %v408_v39, %v2286_v53 }
  0x72   :  { %v371_v40 = vmax.f32 %v369_v33, 0.0  ;;  %v372_v41 = vmax.f32 %v370_v34, 0.0  ;;  %v412_v46 = vstv %s2425_s30  ;;  %v418_v47 = vstv %s2427_s12  ;;  %s2531_s30 = sld [smem:[#allocation8 + $0x701]]  ;;  %s2533_s12 = sld [smem:[#allocation8 + $0x702]] }
  0x73   :  { %v393_v44 = vadd.f32 %v391_v35, %v387_v36  ;;  %v394_v45 = vadd.f32 %v392_v38, %v388_v37  ;;  %v413_v49 = vmul.f32 %v412_v46, %v2300_v8  ;;  %v414_v50 = vmul.f32 %v412_v46, %v2302_v9 }
  0x74   :  { %v373_v48 = vadd.f32 %v372_v41, %v371_v40  ;;  %v419_v51 = vmul.f32 %v418_v47, %v2326_v28  ;;  %v420_v56 = vmul.f32 %v418_v47, %v2328_v29  ;;  %v424_v57 = vstv %s2433_s13  ;;  %s2539_s13 = sld [smem:[#allocation9 + $0xe]] }
  0x75   :  { %v397_v54 = vadd.f32 %v396_v21, %v393_v44  ;;  %v398_v55 = vadd.f32 %v396_v21, %v394_v45  ;;  %v415_v58 = vadd.f32 %v413_v49, %v409_v42  ;;  %v416_v59 = vadd.f32 %v414_v50, %v410_v43 }
  0x76   :  { %374 = vadd.xlane.f32.xlu0 %v373_v48  ;;  %v436_v60 = vstv %s2435_s14  ;;  %v440_v61 = vstv %s2437_s15  ;;  %v446_v7 = vstv %s2444_s16  ;;  %v452_v10 = vstv %s2448_s3  ;;  %s2543_s14 = sld [smem:[#allocation8 + $0x780]]  ;;  %s2545_s15 = sld [smem:[#allocation8 + $0x781]] }
  0x77   :  { %v399_v62 = vmax.f32 %v397_v54, 0.0  ;;  %v400_v63 = vmax.f32 %v398_v55, 0.0  ;;  %v437_v0 = vmul.f32 %v436_v60, %v2284_v52  ;;  %v438_v1 = vmul.f32 %v436_v60, %v2286_v53  ;;  %s2549_s16 = sld [smem:[#allocation8 + $0x782]]  ;;  %s2551_s3 = sld [smem:[#allocation9 + $0xf]] }
  0x78   :  { %v421_v2 = vadd.f32 %v419_v51, %v415_v58  ;;  %v422_v3 = vadd.f32 %v420_v56, %v416_v59  ;;  %v441_v4 = vmul.f32 %v440_v61, %v2300_v8  ;;  %v442_v5 = vmul.f32 %v440_v61, %v2302_v9 }
  0x79   :  { %v401_v6 = vadd.f32 %v400_v63, %v399_v62  ;;  %v464_v11 = vstv %s2450_s18  ;;  %v447_v16 = vmul.f32 %v446_v7, %v2326_v28  ;;  %v448_v17 = vmul.f32 %v446_v7, %v2328_v29  ;;  %s2562_s18 = sld [smem:[#allocation8 + $0x800]] }
  0x7a   :  { %v425_v12 = vadd.f32 %v424_v57, %v421_v2  ;;  %v426_v13 = vadd.f32 %v424_v57, %v422_v3  ;;  %v443_v14 = vadd.f32 %v441_v4, %v437_v0  ;;  %v444_v15 = vadd.f32 %v442_v5, %v438_v1 }
  0x7b   :  { %402 = vadd.xlane.f32.xlu1 %v401_v6  ;;  %v465_v18 = vmul.f32 %v464_v11, %v2284_v52  ;;  %v466_v19 = vmul.f32 %v464_v11, %v2286_v53  ;;  %v468_v22 = vstv %s2459_s19  ;;  %v474_v23 = vstv %s2461_s20  ;;  %s2569_s19 = sld [smem:[#allocation8 + $0x801]]  ;;  %s2571_s20 = sld [smem:[#allocation8 + $0x802]] }
  0x7c   :  { %v427_v20 = vmax.f32 %v425_v12, 0.0  ;;  %v428_v21 = vmax.f32 %v426_v13, 0.0  ;;  %v449_v24 = vadd.f32 %v447_v16, %v443_v14  ;;  %v450_v25 = vadd.f32 %v448_v17, %v444_v15 }
  0x7d   :  { %v469_v26 = vmul.f32 %v468_v22, %v2300_v8  ;;  %v470_v27 = vmul.f32 %v468_v22, %v2302_v9  ;;  %v475_v31 = vmul.f32 %v474_v23, %v2326_v28  ;;  %v476_v32 = vmul.f32 %v474_v23, %v2328_v29 }
  0x7e   :  { %v429_v30 = vadd.f32 %v428_v21, %v427_v20  ;;  %v480_v33 = vstv %s2467_s21  ;;  %v453_v34 = vadd.f32 %v452_v10, %v449_v24  ;;  %v454_v35 = vadd.f32 %v452_v10, %v450_v25  ;;  %s2577_s21 = sld [smem:[#allocation9 + $0x10]] }
  0x7f   :  { %v471_v36 = vadd.f32 %v469_v26, %v465_v18  ;;  %v472_v37 = vadd.f32 %v470_v27, %v466_v19  ;;  %v492_v38 = vstv %s2471_s24  ;;  %v496_v39 = vstv %s2473_s0  ;;  %s2579_s24 = sld [smem:[#allocation8 + $0x880]]  ;;  %s2581_s0 = sld [smem:[#allocation8 + $0x881]] }
  0x80   :  { %430 = vadd.xlane.f32.xlu0 %v429_v30  ;;  %v502_v40 = vstv %s2477_s4  ;;  %v508_v41 = vstv %s2479_s17  ;;  %v455_v42 = vmax.f32 %v453_v34, 0.0  ;;  %v456_v43 = vmax.f32 %v454_v35, 0.0  ;;  %s2588_s4 = sld [smem:[#allocation8 + $0x882]]  ;;  %s2592_s17 = sld [smem:[#allocation9 + $0x11]] }
  0x81   :  { %v477_v44 = vadd.f32 %v475_v31, %v471_v36  ;;  %v478_v45 = vadd.f32 %v476_v32, %v472_v37  ;;  %v493_v46 = vmul.f32 %v492_v38, %v2284_v52  ;;  %v494_v47 = vmul.f32 %v492_v38, %v2286_v53 }
  0x82   :  { %v497_v48 = vmul.f32 %v496_v39, %v2300_v8  ;;  %v498_v49 = vmul.f32 %v496_v39, %v2302_v9  ;;  %v457_v50 = vadd.f32 %v456_v43, %v455_v42  ;;  %v503_v55 = vmul.f32 %v502_v40, %v2326_v28 }
  0x83   :  { %v481_v51 = vadd.f32 %v480_v33, %v477_v44  ;;  %v482_v54 = vadd.f32 %v480_v33, %v478_v45  ;;  %v504_v58 = vmul.f32 %v502_v40, %v2328_v29  ;;  %v520_v59 = vstv %s2490_s22  ;;  %s2594_s22 = sld [smem:[#allocation8 + $0x900]] }
  0x84   :  { %v499_v56 = vadd.f32 %v497_v48, %v493_v46  ;;  %v500_v57 = vadd.f32 %v498_v49, %v494_v47  ;;  %458 = vadd.xlane.f32.xlu1 %v457_v50  ;;  %v521_v62 = vmul.f32 %v520_v59, %v2284_v52  ;;  %v522_v63 = vmul.f32 %v520_v59, %v2286_v53 }
  0x85   :  { %v483_v60 = vmax.f32 %v481_v51, 0.0  ;;  %v484_v61 = vmax.f32 %v482_v54, 0.0  ;;  %v524_v2 = vstv %s2494_s23  ;;  %v530_v3 = vstv %s2496_s25  ;;  %s2603_s23 = sld [smem:[#allocation8 + $0x901]]  ;;  %s2605_s25 = sld [smem:[#allocation8 + $0x902]] }
  0x86   :  { %v505_v0 = vadd.f32 %v503_v55, %v499_v56  ;;  %v506_v1 = vadd.f32 %v504_v58, %v500_v57  ;;  %v525_v5 = vmul.f32 %v524_v2, %v2300_v8  ;;  %v526_v6 = vmul.f32 %v524_v2, %v2302_v9 }
  0x87   :  { %v485_v4 = vadd.f32 %v484_v61, %v483_v60  ;;  %v531_v7 = vmul.f32 %v530_v3, %v2326_v28  ;;  %v532_v12 = vmul.f32 %v530_v3, %v2328_v29  ;;  %v536_v13 = vstv %s2501_s2  ;;  %s2611_s2 = sld [smem:[#allocation9 + $0x12]] }
  0x88   :  { %v509_v10 = vadd.f32 %v508_v41, %v505_v0  ;;  %v510_v11 = vadd.f32 %v508_v41, %v506_v1  ;;  %v527_v14 = vadd.f32 %v525_v5, %v521_v62  ;;  %v528_v15 = vadd.f32 %v526_v6, %v522_v63 }
  0x89   :  { %486 = vadd.xlane.f32.xlu0 %v485_v4  ;;  %v548_v16 = vstv %s2503_s1  ;;  %v552_v17 = vstv %s2509_s26  ;;  %v558_v27 = vstv %s2511_s27  ;;  %v564_v30 = vstv %s2520_s28  ;;  %s2615_s1 = sld [smem:[#allocation8 + $0x980]]  ;;  %s2617_s26 = sld [smem:[#allocation8 + $0x981]] }
  0x8a   :  { %v511_v18 = vmax.f32 %v509_v10, 0.0  ;;  %v512_v19 = vmax.f32 %v510_v11, 0.0  ;;  %v549_v20 = vmul.f32 %v548_v16, %v2284_v52  ;;  %v550_v21 = vmul.f32 %v548_v16, %v2286_v53  ;;  %s2621_s27 = sld [smem:[#allocation8 + $0x982]]  ;;  %s2623_s28 = sld [smem:[#allocation9 + $0x13]] }
  0x8b   :  { %v533_v22 = vadd.f32 %v531_v7, %v527_v14  ;;  %v534_v23 = vadd.f32 %v532_v12, %v528_v15  ;;  %v553_v24 = vmul.f32 %v552_v17, %v2300_v8  ;;  %v554_v25 = vmul.f32 %v552_v17, %v2302_v9 }
  0x8c   :  { %v513_v26 = vadd.f32 %v512_v19, %v511_v18  ;;  %v576_v31 = vstv %s2522_s29  ;;  %v559_v36 = vmul.f32 %v558_v27, %v2326_v28  ;;  %v560_v37 = vmul.f32 %v558_v27, %v2328_v29  ;;  %s2634_s29 = sld [smem:[#allocation8 + $0xa00]] }
  0x8d   :  { %v537_v32 = vadd.f32 %v536_v13, %v533_v22  ;;  %v538_v33 = vadd.f32 %v536_v13, %v534_v23  ;;  %v555_v34 = vadd.f32 %v553_v24, %v549_v20  ;;  %v556_v35 = vadd.f32 %v554_v25, %v550_v21 }
  0x8e   :  { %514 = vadd.xlane.f32.xlu1 %v513_v26  ;;  %v577_v38 = vmul.f32 %v576_v31, %v2284_v52  ;;  %v578_v39 = vmul.f32 %v576_v31, %v2286_v53  ;;  %v580_v42 = vstv %s2531_s30  ;;  %v586_v43 = vstv %s2533_s12  ;;  %s2641_s30 = sld [smem:[#allocation8 + $0xa01]]  ;;  %s2643_s12 = sld [smem:[#allocation8 + $0xa02]] }
  0x8f   :  { %v539_v40 = vmax.f32 %v537_v32, 0.0  ;;  %v540_v41 = vmax.f32 %v538_v33, 0.0  ;;  %v561_v44 = vadd.f32 %v559_v36, %v555_v34  ;;  %v562_v45 = vadd.f32 %v560_v37, %v556_v35 }
  0x90   :  { %v581_v46 = vmul.f32 %v580_v42, %v2300_v8  ;;  %v582_v47 = vmul.f32 %v580_v42, %v2302_v9  ;;  %v587_v49 = vmul.f32 %v586_v43, %v2326_v28  ;;  %v588_v50 = vmul.f32 %v586_v43, %v2328_v29 }
  0x91   :  { %v541_v48 = vadd.f32 %v540_v41, %v539_v40  ;;  %v592_v51 = vstv %s2539_s13  ;;  %v565_v54 = vadd.f32 %v564_v30, %v561_v44  ;;  %v566_v55 = vadd.f32 %v564_v30, %v562_v45  ;;  %s2649_s13 = sld [smem:[#allocation9 + $0x14]] }
  0x92   :  { %v583_v56 = vadd.f32 %v581_v46, %v577_v38  ;;  %v584_v57 = vadd.f32 %v582_v47, %v578_v39  ;;  %v604_v58 = vstv %s2543_s14  ;;  %v608_v59 = vstv %s2545_s15  ;;  %s2651_s14 = sld [smem:[#allocation8 + $0xa80]]  ;;  %s2653_s15 = sld [smem:[#allocation8 + $0xa81]] }
  0x93   :  { %542 = vadd.xlane.f32.xlu0 %v541_v48  ;;  %v614_v60 = vstv %s2549_s16  ;;  %v620_v61 = vstv %s2551_s3  ;;  %v567_v62 = vmax.f32 %v565_v54, 0.0  ;;  %v568_v63 = vmax.f32 %v566_v55, 0.0  ;;  %s2660_s16 = sld [smem:[#allocation8 + $0xa82]]  ;;  %s2664_s3 = sld [smem:[#allocation9 + $0x15]] }
  0x94   :  { %v589_v0 = vadd.f32 %v587_v49, %v583_v56  ;;  %v590_v1 = vadd.f32 %v588_v50, %v584_v57  ;;  %v605_v2 = vmul.f32 %v604_v58, %v2284_v52  ;;  %v606_v3 = vmul.f32 %v604_v58, %v2286_v53 }
  0x95   :  { %v609_v4 = vmul.f32 %v608_v59, %v2300_v8  ;;  %v610_v5 = vmul.f32 %v608_v59, %v2302_v9  ;;  %v569_v6 = vadd.f32 %v568_v63, %v567_v62  ;;  %v615_v11 = vmul.f32 %v614_v60, %v2326_v28 }
  0x96   :  { %v593_v7 = vadd.f32 %v592_v51, %v589_v0  ;;  %v594_v10 = vadd.f32 %v592_v51, %v590_v1  ;;  %v616_v14 = vmul.f32 %v614_v60, %v2328_v29  ;;  %v632_v15 = vstv %s2562_s18  ;;  %s2666_s18 = sld [smem:[#allocation8 + $0xb00]] }
  0x97   :  { %v611_v12 = vadd.f32 %v609_v4, %v605_v2  ;;  %v612_v13 = vadd.f32 %v610_v5, %v606_v3  ;;  %570 = vadd.xlane.f32.xlu1 %v569_v6  ;;  %v633_v18 = vmul.f32 %v632_v15, %v2284_v52  ;;  %v634_v19 = vmul.f32 %v632_v15, %v2286_v53 }
  0x98   :  { %v595_v16 = vmax.f32 %v593_v7, 0.0  ;;  %v596_v17 = vmax.f32 %v594_v10, 0.0  ;;  %v636_v22 = vstv %s2569_s19  ;;  %v642_v23 = vstv %s2571_s20  ;;  %s2675_s19 = sld [smem:[#allocation8 + $0xb01]]  ;;  %s2677_s20 = sld [smem:[#allocation8 + $0xb02]] }
  0x99   :  { %v617_v20 = vadd.f32 %v615_v11, %v611_v12  ;;  %v618_v21 = vadd.f32 %v616_v14, %v612_v13  ;;  %v637_v25 = vmul.f32 %v636_v22, %v2300_v8  ;;  %v638_v26 = vmul.f32 %v636_v22, %v2302_v9 }
  0x9a   :  { %v597_v24 = vadd.f32 %v596_v17, %v595_v16  ;;  %v643_v27 = vmul.f32 %v642_v23, %v2326_v28  ;;  %v644_v32 = vmul.f32 %v642_v23, %v2328_v29  ;;  %v648_v33 = vstv %s2577_s21  ;;  %s2683_s21 = sld [smem:[#allocation9 + $0x16]] }
  0x9b   :  { %v621_v30 = vadd.f32 %v620_v61, %v617_v20  ;;  %v622_v31 = vadd.f32 %v620_v61, %v618_v21  ;;  %v639_v34 = vadd.f32 %v637_v25, %v633_v18  ;;  %v640_v35 = vadd.f32 %v638_v26, %v634_v19 }
  0x9c   :  { %598 = vadd.xlane.f32.xlu0 %v597_v24  ;;  %v660_v36 = vstv %s2579_s24  ;;  %v664_v37 = vstv %s2581_s0  ;;  %v670_v47 = vstv %s2588_s4  ;;  %v676_v48 = vstv %s2592_s17  ;;  %s2687_s24 = sld [smem:[#allocation8 + $0xb80]]  ;;  %s2689_s0 = sld [smem:[#allocation8 + $0xb81]] }
  0x9d   :  { %v623_v38 = vmax.f32 %v621_v30, 0.0  ;;  %v624_v39 = vmax.f32 %v622_v31, 0.0  ;;  %v661_v40 = vmul.f32 %v660_v36, %v2284_v52  ;;  %v662_v41 = vmul.f32 %v660_v36, %v2286_v53  ;;  %s2693_s4 = sld [smem:[#allocation8 + $0xb82]]  ;;  %s2695_s17 = sld [smem:[#allocation9 + $0x17]] }
  0x9e   :  { %v645_v42 = vadd.f32 %v643_v27, %v639_v34  ;;  %v646_v43 = vadd.f32 %v644_v32, %v640_v35  ;;  %v665_v44 = vmul.f32 %v664_v37, %v2300_v8  ;;  %v666_v45 = vmul.f32 %v664_v37, %v2302_v9 }
  0x9f   :  { %v625_v46 = vadd.f32 %v624_v39, %v623_v38  ;;  %v688_v49 = vstv %s2594_s22  ;;  %v671_v56 = vmul.f32 %v670_v47, %v2326_v28  ;;  %v672_v57 = vmul.f32 %v670_v47, %v2328_v29  ;;  %s2706_s22 = sld [smem:[#allocation8 + $0xc00]] }
  0xa0   :  { %v649_v50 = vadd.f32 %v648_v33, %v645_v42  ;;  %v650_v51 = vadd.f32 %v648_v33, %v646_v43  ;;  %v667_v54 = vadd.f32 %v665_v44, %v661_v40  ;;  %v668_v55 = vadd.f32 %v666_v45, %v662_v41 }
  0xa1   :  { %626 = vadd.xlane.f32.xlu1 %v625_v46  ;;  %v689_v58 = vmul.f32 %v688_v49, %v2284_v52  ;;  %v690_v59 = vmul.f32 %v688_v49, %v2286_v53  ;;  %v692_v62 = vstv %s2603_s23  ;;  %v698_v63 = vstv %s2605_s25  ;;  %s2713_s23 = sld [smem:[#allocation8 + $0xc01]]  ;;  %s2715_s25 = sld [smem:[#allocation8 + $0xc02]] }
  0xa2   :  { %v651_v60 = vmax.f32 %v649_v50, 0.0  ;;  %v652_v61 = vmax.f32 %v650_v51, 0.0  ;;  %v673_v0 = vadd.f32 %v671_v56, %v667_v54  ;;  %v674_v1 = vadd.f32 %v672_v57, %v668_v55 }
  0xa3   :  { %v693_v2 = vmul.f32 %v692_v62, %v2300_v8  ;;  %v694_v3 = vmul.f32 %v692_v62, %v2302_v9  ;;  %v699_v5 = vmul.f32 %v698_v63, %v2326_v28  ;;  %v700_v6 = vmul.f32 %v698_v63, %v2328_v29 }
  0xa4   :  { %v653_v4 = vadd.f32 %v652_v61, %v651_v60  ;;  %v704_v7 = vstv %s2611_s2  ;;  %v677_v10 = vadd.f32 %v676_v48, %v673_v0  ;;  %v678_v11 = vadd.f32 %v676_v48, %v674_v1  ;;  %s2721_s2 = sld [smem:[#allocation9 + $0x18]] }
  0xa5   :  { %v695_v12 = vadd.f32 %v693_v2, %v689_v58  ;;  %v696_v13 = vadd.f32 %v694_v3, %v690_v59  ;;  %v716_v14 = vstv %s2615_s1  ;;  %v720_v15 = vstv %s2617_s26  ;;  %s2723_s1 = sld [smem:[#allocation8 + $0xc80]]  ;;  %s2725_s26 = sld [smem:[#allocation8 + $0xc81]] }
  0xa6   :  { %654 = vadd.xlane.f32.xlu0 %v653_v4  ;;  %v726_v16 = vstv %s2621_s27  ;;  %v732_v17 = vstv %s2623_s28  ;;  %v679_v18 = vmax.f32 %v677_v10, 0.0  ;;  %v680_v19 = vmax.f32 %v678_v11, 0.0  ;;  %s2732_s27 = sld [smem:[#allocation8 + $0xc82]]  ;;  %s2736_s28 = sld [smem:[#allocation9 + $0x19]] }
  0xa7   :  { %v701_v20 = vadd.f32 %v699_v5, %v695_v12  ;;  %v702_v21 = vadd.f32 %v700_v6, %v696_v13  ;;  %v717_v22 = vmul.f32 %v716_v14, %v2284_v52  ;;  %v718_v23 = vmul.f32 %v716_v14, %v2286_v53 }
  0xa8   :  { %v721_v24 = vmul.f32 %v720_v15, %v2300_v8  ;;  %v722_v25 = vmul.f32 %v720_v15, %v2302_v9  ;;  %v681_v26 = vadd.f32 %v680_v19, %v679_v18  ;;  %v727_v31 = vmul.f32 %v726_v16, %v2326_v28 }
  0xa9   :  { %v705_v27 = vadd.f32 %v704_v7, %v701_v20  ;;  %v706_v30 = vadd.f32 %v704_v7, %v702_v21  ;;  %v728_v34 = vmul.f32 %v726_v16, %v2328_v29  ;;  %v744_v35 = vstv %s2634_s29  ;;  %s2738_s29 = sld [smem:[#allocation8 + $0xd00]] }
  0xaa   :  { %v723_v32 = vadd.f32 %v721_v24, %v717_v22  ;;  %v724_v33 = vadd.f32 %v722_v25, %v718_v23  ;;  %682 = vadd.xlane.f32.xlu1 %v681_v26  ;;  %v745_v38 = vmul.f32 %v744_v35, %v2284_v52  ;;  %v746_v39 = vmul.f32 %v744_v35, %v2286_v53 }
  0xab   :  { %v707_v36 = vmax.f32 %v705_v27, 0.0  ;;  %v708_v37 = vmax.f32 %v706_v30, 0.0  ;;  %v748_v42 = vstv %s2641_s30  ;;  %v754_v43 = vstv %s2643_s12  ;;  %s2747_s30 = sld [smem:[#allocation8 + $0xd01]]  ;;  %s2749_s12 = sld [smem:[#allocation8 + $0xd02]] }
  0xac   :  { %v729_v40 = vadd.f32 %v727_v31, %v723_v32  ;;  %v730_v41 = vadd.f32 %v728_v34, %v724_v33  ;;  %v749_v45 = vmul.f32 %v748_v42, %v2300_v8  ;;  %v750_v46 = vmul.f32 %v748_v42, %v2302_v9 }
  0xad   :  { %v709_v44 = vadd.f32 %v708_v37, %v707_v36  ;;  %v755_v47 = vmul.f32 %v754_v43, %v2326_v28  ;;  %v756_v50 = vmul.f32 %v754_v43, %v2328_v29  ;;  %v760_v51 = vstv %s2649_s13  ;;  %s2755_s13 = sld [smem:[#allocation9 + $0x1a]] }
  0xae   :  { %v733_v48 = vadd.f32 %v732_v17, %v729_v40  ;;  %v734_v49 = vadd.f32 %v732_v17, %v730_v41  ;;  %v751_v54 = vadd.f32 %v749_v45, %v745_v38  ;;  %v752_v55 = vadd.f32 %v750_v46, %v746_v39 }
  0xaf   :  { %710 = vadd.xlane.f32.xlu0 %v709_v44  ;;  %v772_v56 = vstv %s2651_s14  ;;  %v776_v57 = vstv %s2653_s15  ;;  %v782_v3 = vstv %s2660_s16  ;;  %v788_v4 = vstv %s2664_s3  ;;  %s2759_s14 = sld [smem:[#allocation8 + $0xd80]]  ;;  %s2761_s15 = sld [smem:[#allocation8 + $0xd81]] }
  0xb0   :  { %v735_v58 = vmax.f32 %v733_v48, 0.0  ;;  %v736_v59 = vmax.f32 %v734_v49, 0.0  ;;  %v773_v60 = vmul.f32 %v772_v56, %v2284_v52  ;;  %v774_v61 = vmul.f32 %v772_v56, %v2286_v53  ;;  %s2765_s16 = sld [smem:[#allocation8 + $0xd82]]  ;;  %s2767_s3 = sld [smem:[#allocation9 + $0x1b]] }
  0xb1   :  { %v757_v62 = vadd.f32 %v755_v47, %v751_v54  ;;  %v758_v63 = vadd.f32 %v756_v50, %v752_v55  ;;  %v777_v0 = vmul.f32 %v776_v57, %v2300_v8  ;;  %v778_v1 = vmul.f32 %v776_v57, %v2302_v9 }
  0xb2   :  { %v737_v2 = vadd.f32 %v736_v59, %v735_v58  ;;  %v800_v5 = vstv %s2666_s18  ;;  %v783_v12 = vmul.f32 %v782_v3, %v2326_v28  ;;  %v784_v13 = vmul.f32 %v782_v3, %v2328_v29  ;;  %s2778_s18 = sld [smem:[#allocation8 + $0xe00]] }
  0xb3   :  { %v761_v6 = vadd.f32 %v760_v51, %v757_v62  ;;  %v762_v7 = vadd.f32 %v760_v51, %v758_v63  ;;  %v779_v10 = vadd.f32 %v777_v0, %v773_v60  ;;  %v780_v11 = vadd.f32 %v778_v1, %v774_v61 }
  0xb4   :  { %738 = vadd.xlane.f32.xlu1 %v737_v2  ;;  %v801_v14 = vmul.f32 %v800_v5, %v2284_v52  ;;  %v802_v15 = vmul.f32 %v800_v5, %v2286_v53  ;;  %v804_v18 = vstv %s2675_s19  ;;  %v810_v19 = vstv %s2677_s20  ;;  %s2785_s19 = sld [smem:[#allocation8 + $0xe01]]  ;;  %s2787_s20 = sld [smem:[#allocation8 + $0xe02]] }
  0xb5   :  { %v763_v16 = vmax.f32 %v761_v6, 0.0  ;;  %v764_v17 = vmax.f32 %v762_v7, 0.0  ;;  %v785_v20 = vadd.f32 %v783_v12, %v779_v10  ;;  %v786_v21 = vadd.f32 %v784_v13, %v780_v11 }
  0xb6   :  { %v805_v22 = vmul.f32 %v804_v18, %v2300_v8  ;;  %v806_v23 = vmul.f32 %v804_v18, %v2302_v9  ;;  %v811_v25 = vmul.f32 %v810_v19, %v2326_v28  ;;  %v812_v26 = vmul.f32 %v810_v19, %v2328_v29 }
  0xb7   :  { %v765_v24 = vadd.f32 %v764_v17, %v763_v16  ;;  %v816_v27 = vstv %s2683_s21  ;;  %v789_v30 = vadd.f32 %v788_v4, %v785_v20  ;;  %v790_v31 = vadd.f32 %v788_v4, %v786_v21  ;;  %s2793_s21 = sld [smem:[#allocation9 + $0x1c]] }
  0xb8   :  { %v807_v32 = vadd.f32 %v805_v22, %v801_v14  ;;  %v808_v33 = vadd.f32 %v806_v23, %v802_v15  ;;  %v828_v34 = vstv %s2687_s24  ;;  %v832_v35 = vstv %s2689_s0  ;;  %s2795_s24 = sld [smem:[#allocation8 + $0xe80]]  ;;  %s2797_s0 = sld [smem:[#allocation8 + $0xe81]] }
  0xb9   :  { %766 = vadd.xlane.f32.xlu0 %v765_v24  ;;  %v838_v36 = vstv %s2693_s4  ;;  %v844_v37 = vstv %s2695_s17  ;;  %v791_v38 = vmax.f32 %v789_v30, 0.0  ;;  %v792_v39 = vmax.f32 %v790_v31, 0.0  ;;  %s2804_s4 = sld [smem:[#allocation8 + $0xe82]]  ;;  %s2808_s17 = sld [smem:[#allocation9 + $0x1d]] }
  0xba   :  { %v813_v40 = vadd.f32 %v811_v25, %v807_v32  ;;  %v814_v41 = vadd.f32 %v812_v26, %v808_v33  ;;  %v829_v42 = vmul.f32 %v828_v34, %v2284_v52  ;;  %v830_v43 = vmul.f32 %v828_v34, %v2286_v53 }
  0xbb   :  { %v833_v44 = vmul.f32 %v832_v35, %v2300_v8  ;;  %v834_v45 = vmul.f32 %v832_v35, %v2302_v9  ;;  %v793_v46 = vadd.f32 %v792_v39, %v791_v38  ;;  %v839_v49 = vmul.f32 %v838_v36, %v2326_v28 }
  0xbc   :  { %v817_v47 = vadd.f32 %v816_v27, %v813_v40  ;;  %v818_v48 = vadd.f32 %v816_v27, %v814_v41  ;;  %v840_v54 = vmul.f32 %v838_v36, %v2328_v29  ;;  %v856_v55 = vstv %s2706_s22  ;;  %s2810_s22 = sld [smem:[#allocation8 + $0xf00]] }
  0xbd   :  { %v835_v50 = vadd.f32 %v833_v44, %v829_v42  ;;  %v836_v51 = vadd.f32 %v834_v45, %v830_v43  ;;  %794 = vadd.xlane.f32.xlu1 %v793_v46  ;;  %v857_v58 = vmul.f32 %v856_v55, %v2284_v52  ;;  %v858_v59 = vmul.f32 %v856_v55, %v2286_v53 }
  0xbe   :  { %v819_v56 = vmax.f32 %v817_v47, 0.0  ;;  %v820_v57 = vmax.f32 %v818_v48, 0.0  ;;  %v860_v62 = vstv %s2713_s23  ;;  %v866_v63 = vstv %s2715_s25  ;;  %s2819_s23 = sld [smem:[#allocation8 + $0xf01]]  ;;  %s2821_s25 = sld [smem:[#allocation8 + $0xf02]] }
  0xbf   :  { %v841_v60 = vadd.f32 %v839_v49, %v835_v50  ;;  %v842_v61 = vadd.f32 %v840_v54, %v836_v51  ;;  %v861_v1 = vmul.f32 %v860_v62, %v2300_v8  ;;  %v862_v2 = vmul.f32 %v860_v62, %v2302_v9 }
  0xc0   :  { %v821_v0 = vadd.f32 %v820_v57, %v819_v56  ;;  %v867_v3 = vmul.f32 %v866_v63, %v2326_v28  ;;  %v868_v6 = vmul.f32 %v866_v63, %v2328_v29  ;;  %v872_v7 = vstv %s2721_s2  ;;  %s2829_s2 = sld [smem:[#allocation9 + $0x1e]] }
  0xc1   :  { %v845_v4 = vadd.f32 %v844_v37, %v841_v60  ;;  %v846_v5 = vadd.f32 %v844_v37, %v842_v61  ;;  %v863_v10 = vadd.f32 %v861_v1, %v857_v58  ;;  %v864_v11 = vadd.f32 %v862_v2, %v858_v59 }
  0xc2   :  { %822 = vadd.xlane.f32.xlu0 %v821_v0  ;;  %v884_v12 = vstv %s2723_s1  ;;  %v888_v13 = vstv %s2725_s26  ;;  %v894_v23 = vstv %s2732_s27  ;;  %v900_v24 = vstv %s2736_s28  ;;  %s2831_s1 = sld [smem:[#allocation8 + $0xf80]]  ;;  %s2835_s26 = sld [smem:[#allocation8 + $0xf81]] }
  0xc3   :  { %v847_v14 = vmax.f32 %v845_v4, 0.0  ;;  %v848_v15 = vmax.f32 %v846_v5, 0.0  ;;  %v885_v16 = vmul.f32 %v884_v12, %v2284_v52  ;;  %v886_v17 = vmul.f32 %v884_v12, %v2286_v53  ;;  %s2837_s27 = sld [smem:[#allocation8 + $0xf82]]  ;;  %s2850_s28 = sld [smem:[#allocation9 + $0x1f]] }
  0xc4   :  { %v869_v18 = vadd.f32 %v867_v3, %v863_v10  ;;  %v870_v19 = vadd.f32 %v868_v6, %v864_v11  ;;  %v889_v20 = vmul.f32 %v888_v13, %v2300_v8  ;;  %v890_v21 = vmul.f32 %v888_v13, %v2302_v9 }
  0xc5   :  { %v849_v22 = vadd.f32 %v848_v15, %v847_v14  ;;  %v912_v25 = vstv %s2738_s29  ;;  %v895_v32 = vmul.f32 %v894_v23, %v2326_v28  ;;  %v896_v33 = vmul.f32 %v894_v23, %v2328_v29 }
  0xc6   :  { %v873_v26 = vadd.f32 %v872_v7, %v869_v18  ;;  %v874_v27 = vadd.f32 %v872_v7, %v870_v19  ;;  %v891_v30 = vadd.f32 %v889_v20, %v885_v16  ;;  %v892_v31 = vadd.f32 %v890_v21, %v886_v17 }
  0xc7   :  { %850 = vadd.xlane.f32.xlu1 %v849_v22  ;;  %v913_v34 = vmul.f32 %v912_v25, %v2284_v52  ;;  %v914_v35 = vmul.f32 %v912_v25, %v2286_v53  ;;  %v916_v38 = vstv %s2747_s30  ;;  %v922_v39 = vstv %s2749_s12 }
  0xc8   :  { %v875_v36 = vmax.f32 %v873_v26, 0.0  ;;  %v876_v37 = vmax.f32 %v874_v27, 0.0  ;;  %v897_v40 = vadd.f32 %v895_v32, %v891_v30  ;;  %v898_v41 = vadd.f32 %v896_v33, %v892_v31 }
  0xc9   :  { %v917_v42 = vmul.f32 %v916_v38, %v2300_v8  ;;  %v918_v43 = vmul.f32 %v916_v38, %v2302_v9  ;;  %v923_v45 = vmul.f32 %v922_v39, %v2326_v28  ;;  %v924_v46 = vmul.f32 %v922_v39, %v2328_v29 }
  0xca   :  { %v877_v44 = vadd.f32 %v876_v37, %v875_v36  ;;  %v928_v47 = vstv %s2755_s13  ;;  %v901_v48 = vadd.f32 %v900_v24, %v897_v40  ;;  %v902_v49 = vadd.f32 %v900_v24, %v898_v41 }
  0xcb   :  { %v919_v50 = vadd.f32 %v917_v42, %v913_v34  ;;  %v920_v51 = vadd.f32 %v918_v43, %v914_v35  ;;  %v940_v54 = vstv %s2759_s14  ;;  %v944_v55 = vstv %s2761_s15 }
  0xcc   :  { %878 = vadd.xlane.f32.xlu0 %v877_v44  ;;  %v950_v56 = vstv %s2765_s16  ;;  %v956_v57 = vstv %s2767_s3  ;;  %v903_v58 = vmax.f32 %v901_v48, 0.0  ;;  %v904_v59 = vmax.f32 %v902_v49, 0.0  ;;  %s2107_s3 = smov [#allocation12]  }
  0xcd   :  { %v925_v60 = vadd.f32 %v923_v45, %v919_v50  ;;  %v926_v61 = vadd.f32 %v924_v46, %v920_v51  ;;  %v941_v62 = vmul.f32 %v940_v54, %v2284_v52  ;;  %v942_v63 = vmul.f32 %v940_v54, %v2286_v53 }
  0xce   :  { %v945_v0 = vmul.f32 %v944_v55, %v2300_v8  ;;  %v946_v1 = vmul.f32 %v944_v55, %v2302_v9  ;;  %v905_v2 = vadd.f32 %v904_v59, %v903_v58  ;;  %v951_v5 = vmul.f32 %v950_v56, %v2326_v28 }
  0xcf   :  { %v929_v3 = vadd.f32 %v928_v47, %v925_v60  ;;  %v930_v4 = vadd.f32 %v928_v47, %v926_v61  ;;  %v952_v10 = vmul.f32 %v950_v56, %v2328_v29  ;;  %v968_v11 = vstv %s2778_s18  ;;  %s1685_s18 = sshll.u32 %s2107_s3, 4  ;;  %s1686_s18 = int_to_ptr.vmem [resolvable:$true] %s1685_s18 }
  0xd0   :  { %v947_v6 = vadd.f32 %v945_v0, %v941_v62  ;;  %v948_v7 = vadd.f32 %v946_v1, %v942_v63  ;;  %906 = vadd.xlane.f32.xlu1 %v905_v2  ;;  %v969_v14 = vmul.f32 %v968_v11, %v2284_v52  ;;  %v970_v15 = vmul.f32 %v968_v11, %v2286_v53  ;;  %p2051_p7 = scmp.lt.s32.totalorder %s1686_s18, %s1686_s18 }
  0xd1   :  { %v931_v12 = vmax.f32 %v929_v3, 0.0  ;;  %v932_v13 = vmax.f32 %v930_v4, 0.0  ;;  %v972_v18 = vstv %s2785_s19  ;;  %v978_v19 = vstv %s2787_s20 }
  0xd2   :  { %v953_v16 = vadd.f32 %v951_v5, %v947_v6  ;;  %v954_v17 = vadd.f32 %v952_v10, %v948_v7  ;;  %v973_v21 = vmul.f32 %v972_v18, %v2300_v8  ;;  %v974_v22 = vmul.f32 %v972_v18, %v2302_v9 }
  0xd3   :  { %v933_v20 = vadd.f32 %v932_v13, %v931_v12  ;;  %v979_v23 = vmul.f32 %v978_v19, %v2326_v28  ;;  %v980_v26 = vmul.f32 %v978_v19, %v2328_v29  ;;  %v984_v27 = vstv %s2793_s21 }
  0xd4   :  { %v957_v24 = vadd.f32 %v956_v57, %v953_v16  ;;  %v958_v25 = vadd.f32 %v956_v57, %v954_v17  ;;  %v975_v30 = vadd.f32 %v973_v21, %v969_v14  ;;  %v976_v31 = vadd.f32 %v974_v22, %v970_v15 }
  0xd5   :  { %934 = vadd.xlane.f32.xlu0 %v933_v20  ;;  %v996_v32 = vstv %s2795_s24  ;;  %v1000_v33 = vstv %s2797_s0  ;;  %v1006_v43 = vstv %s2804_s4  ;;  %v1012_v44 = vstv %s2808_s17 }
  0xd6   :  { %v959_v34 = vmax.f32 %v957_v24, 0.0  ;;  %v960_v35 = vmax.f32 %v958_v25, 0.0  ;;  %v997_v36 = vmul.f32 %v996_v32, %v2284_v52  ;;  %v998_v37 = vmul.f32 %v996_v32, %v2286_v53 }
  0xd7   :  { %v981_v38 = vadd.f32 %v979_v23, %v975_v30  ;;  %v982_v39 = vadd.f32 %v980_v26, %v976_v31  ;;  %v1001_v40 = vmul.f32 %v1000_v33, %v2300_v8  ;;  %v1002_v41 = vmul.f32 %v1000_v33, %v2302_v9 }
  0xd8   :  { %v961_v42 = vadd.f32 %v960_v35, %v959_v34  ;;  %v1024_v45 = vstv %s2810_s22  ;;  %v1007_v50 = vmul.f32 %v1006_v43, %v2326_v28  ;;  %v1008_v51 = vmul.f32 %v1006_v43, %v2328_v29 }
  0xd9   :  { %v985_v46 = vadd.f32 %v984_v27, %v981_v38  ;;  %v986_v47 = vadd.f32 %v984_v27, %v982_v39  ;;  %v1003_v48 = vadd.f32 %v1001_v40, %v997_v36  ;;  %v1004_v49 = vadd.f32 %v1002_v41, %v998_v37 }
  0xda   :  { %962 = vadd.xlane.f32.xlu1 %v961_v42  ;;  %v1025_v54 = vmul.f32 %v1024_v45, %v2284_v52  ;;  %v1026_v55 = vmul.f32 %v1024_v45, %v2286_v53  ;;  %v1028_v58 = vstv %s2819_s23  ;;  %v1034_v59 = vstv %s2821_s25  ;;  %v1942_v45 = vld [vmem:[%s3038_s5 + $0x4] ss:$16 sps:$4 sm:$0xff]  }
  0xdb   :  { %v987_v56 = vmax.f32 %v985_v46, 0.0  ;;  %v988_v57 = vmax.f32 %v986_v47, 0.0  ;;  %v1009_v60 = vadd.f32 %v1007_v50, %v1003_v48  ;;  %v1010_v61 = vadd.f32 %v1008_v51, %v1004_v49  ;;  %v1944_v46 = vld [vmem:[%s3038_s5 + $0xc] ss:$16 sps:$4 sm:$0xff]   ;;  %v1946_v47 = vld [vmem:[%s3038_s5] ss:$16 sps:$4 sm:$0xff]   ;;  %1155 = vmatprep.subr.bf16.mxu0 %v1942_v45 }
  0xdc   :  { %v1029_v62 = vmul.f32 %v1028_v58, %v2300_v8  ;;  %v1030_v63 = vmul.f32 %v1028_v58, %v2302_v9  ;;  %v1035_v1 = vmul.f32 %v1034_v59, %v2326_v28  ;;  %v1036_v2 = vmul.f32 %v1034_v59, %v2328_v29  ;;  %v1947_v48 = vld [vmem:[%s3038_s5 + $0x8] ss:$16 sps:$4 sm:$0xff]   ;;  %v1948_v49 = vld [vmem:[%s3038_s5 + $0x24] ss:$16 sps:$4 sm:$0xff]   ;;  %v1950_v50 = vld [vmem:[%s3038_s5 + $0x2c] ss:$16 sps:$4 sm:$0xff]   ;;  %1196 = vmatprep.subr.bf16.mxu1 %v1944_v46 }
  0xdd   :  { %v989_v0 = vadd.f32 %v988_v57, %v987_v56  ;;  %v1013_v3 = vadd.f32 %v1012_v44, %v1009_v60  ;;  %v1014_v4 = vadd.f32 %v1012_v44, %v1010_v61  ;;  %v1040_v7 = vstv %s2829_s2  ;;  %1156 = vmatpush1.bf16.msra.mxu0 %v1946_v47  ;;  %1197 = vmatpush1.bf16.msra.mxu1 %v1947_v48  ;;  %v1953_v56 = vld [vmem:[%s3038_s5 + $0x28] ss:$16 sps:$4 sm:$0xff]   ;;  %v1954_v60 = vld [vmem:[%s3040_s7 + $0x40] sm:$0xff]  }
  0xde   :  { %v1031_v5 = vadd.f32 %v1029_v62, %v1025_v54  ;;  %v1032_v6 = vadd.f32 %v1030_v63, %v1026_v55  ;;  %v1052_v10 = vstv %s2831_s1  ;;  %v1056_v11 = vstv %s2835_s26  ;;  %v1952_v55 = vld [vmem:[%s3038_s5 + $0x20] ss:$16 sps:$4 sm:$0xff]   ;;  %1157 = vmatprep.subr.bf16.mxu0 %v1948_v49  ;;  %1198 = vmatprep.subr.bf16.mxu1 %v1950_v50  ;;  %v1958_v50 = vld [vmem:[%s3040_s7 + $0x48] sm:$0xff]  }
  0xdf   :  { %990 = vadd.xlane.f32.xlu0 %v989_v0  ;;  %v1062_v12 = vstv %s2837_s27  ;;  %v1015_v13 = vmax.f32 %v1013_v3, 0.0  ;;  %v1016_v14 = vmax.f32 %v1014_v4, 0.0  ;;  %v1053_v17 = vmul.f32 %v1052_v10, %v2284_v52  ;;  %v1955_v61 = vld [vmem:[%s3040_s7 + $0xc0] sm:$0xff]  }
  0xe0   :  { %v1037_v15 = vadd.f32 %v1035_v1, %v1031_v5  ;;  %v1038_v16 = vadd.f32 %v1036_v2, %v1032_v6  ;;  %v1054_v18 = vmul.f32 %v1052_v10, %v2286_v53  ;;  %v1057_v19 = vmul.f32 %v1056_v11, %v2300_v8  ;;  %v1956_v47 = vld [vmem:[%s3040_s7] sm:$0xff]  }
  0xe1   :  { %v1058_v20 = vmul.f32 %v1056_v11, %v2302_v9  ;;  %v1017_v21 = vadd.f32 %v1016_v14, %v1015_v13  ;;  %v1063_v24 = vmul.f32 %v1062_v12, %v2326_v28  ;;  %v1064_v27 = vmul.f32 %v1062_v12, %v2328_v29  ;;  %1158 = vmatpush1.bf16.msra.mxu0 %v1952_v55  ;;  %v1957_v48 = vld [vmem:[%s3040_s7 + $0x80] sm:$0xff]   ;;  %v1961_v55 = vld [vmem:[%s3040_s7 + $0x88] sm:$0xff]  }
  0xe2   :  { %v1041_v22 = vadd.f32 %v1040_v7, %v1037_v15  ;;  %v1042_v23 = vadd.f32 %v1040_v7, %v1038_v16  ;;  %v1059_v25 = vadd.f32 %v1057_v19, %v1053_v17  ;;  %v1068_v32 = vstv %s2850_s28  ;;  %1199 = vmatpush1.bf16.msra.mxu1 %v1953_v56  ;;  %1887 = vmatprep.subr.bf16.mxu0 %v1954_v60  ;;  %v1962_v56 = vld [vmem:[%s3040_s7 + $0x50] sm:$0xff]   ;;  %v1966_v60 = vld [vmem:[%s3040_s7 + $0x58] sm:$0xff]  }
  0xe3   :  { %v1060_v26 = vadd.f32 %v1058_v20, %v1054_v18  ;;  %1018 = vadd.xlane.f32.xlu1 %v1017_v21  ;;  %v2106_v57 = vmov 0   ;;  %1909 = vmatprep.subr.bf16.mxu1 %v1955_v61  ;;  %v1967_v61 = vld [vmem:[%s3040_s7 + $0xd8] sm:$0xff]  }
  0xe4   :  { %v1043_v30 = vmax.f32 %v1041_v22, 0.0  ;;  %v1044_v31 = vmax.f32 %v1042_v23, 0.0  ;;  %v1065_v52 = vadd.f32 %v1063_v24, %v1059_v25  ;;  %1187 = vmatprep.mubr.bf16.mxu0 %v2106_v57  ;;  %1228 = vmatprep.mubr.bf16.mxu1 %v2106_v57  ;;  %v1963_v57 = vld [vmem:[%s3040_s7 + $0xd0] sm:$0xff]  }
  0xe5   :  { %v1066_v33 = vadd.f32 %v1064_v27, %v1060_v26 }
  0xe6   :  { %v1045_v53 = vadd.f32 %v1044_v31, %v1043_v30  ;;  %v1069_v34 = vadd.f32 %v1068_v32, %v1065_v52 }
  0xe7   :  { %v1070_v8 = vadd.f32 %v1068_v32, %v1066_v33 }
  0xe8   :  { %1046 = vadd.xlane.f32.xlu0 %v1045_v53  ;;  %v1071_v9 = vmax.f32 %v1069_v34, 0.0 }
  0xe9   :  { %v1072_v35 = vmax.f32 %v1070_v8, 0.0 }
  0xeb   :  { %v1073_v36 = vadd.f32 %v1072_v35, %v1071_v9  ;;  %v206_v37 = vpop.xlane.xlu0 %205  ;;  %v263_v38 = vpop.xlane.xlu1 %262 }
  0xec   :  { %v208_v28 = vmul.f32 0.00390625, %v206_v37  ;;  %v264_v40 = vmul.f32 0.00390625, %v263_v38 }
  0xed   :  { %1074 = vadd.xlane.f32.xlu1 %v1073_v36 }
  0xee   :  { %210 = vst.msk [vmem:[#allocation2] sm:$0xff] %vm209_vm0, %v208_v28  ;;  %vm657_vm0 = vcmask 138368  }
  0xef   :  { %v235_v29 = vpop.xlane.xlu0 %234 }
  0xf0   :  { %v236_v39 = vmul.f32 0.00390625, %v235_v29 }
  0xf2   :  { %238 = vst.msk [vmem:[#allocation2] sm:$0xff] %vm237_vm1, %v236_v39  ;;  %vm685_vm1 = vcmask 146568  }
  0xf3   :  { %266 = vst.msk [vmem:[#allocation2] sm:$0xff] %vm265_vm2, %v264_v40  ;;  %vm713_vm2 = vcmask 154768  }
  0xf5   :  { %v291_v41 = vpop.xlane.xlu1 %290 }
  0xf6   :  { %v292_v42 = vmul.f32 0.00390625, %v291_v41 }
  0xf8   :  { %294 = vst.msk [vmem:[#allocation2] sm:$0xff] %vm293_vm3, %v292_v42  ;;  %vm741_vm3 = vcmask 162968  }
  0xfa   :  { %v319_v43 = vpop.xlane.xlu0 %318 }
  0xfb   :  { %v320_v44 = vmul.f32 0.00390625, %v319_v43 }
  0xfd   :  { %322 = vst.msk [vmem:[#allocation2] sm:$0xff] %vm321_vm4, %v320_v44  ;;  %vm769_vm4 = vcmask 171168  }
  0xfe   :  { %v347_v51 = vpop.xlane.xlu1 %346 }
  0xff   :  { %v348_v54 = vmul.f32 0.00390625, %v347_v51  ;;  %v1959_v51 = vld [vmem:[%s3040_s7 + $0xc8] sm:$0xff]  }
 0x101   :  { %350 = vst.msk [vmem:[#allocation2] sm:$0xff] %vm349_vm5, %v348_v54  ;;  %vm797_vm5 = vcmask 179368   ;;  %v1960_v54 = vld [vmem:[%s3040_s7 + $0x8] sm:$0xff]  }
 0x103   :  { %v375_v58 = vpop.xlane.xlu0 %374 }
 0x104   :  { %v376_v59 = vmul.f32 0.00390625, %v375_v58  ;;  %v1964_v58 = vld [vmem:[%s3040_s7 + $0x10] sm:$0xff]  }
 0x106   :  { %378 = vst.msk [vmem:[#allocation2] sm:$0xff] %vm377_vm6, %v376_v59  ;;  %vm825_vm6 = vcmask 187568   ;;  %v1965_v59 = vld [vmem:[%s3040_s7 + $0x90] sm:$0xff]  }
 0x108   :  { %v403_v62 = vpop.xlane.xlu1 %402 }
 0x109   :  { %v404_v63 = vmul.f32 0.00390625, %v403_v62  ;;  %v1968_v62 = vld [vmem:[%s3040_s7 + $0x18] sm:$0xff]  }
 0x10b   :  { %406 = vst.msk [vmem:[#allocation2] sm:$0xff] %vm405_vm7, %v404_v63  ;;  %vm853_vm7 = vcmask 195768   ;;  %v1969_v63 = vld [vmem:[%s3040_s7 + $0x98] sm:$0xff]  }
 0x10d   :  { %v431_v0 = vpop.xlane.xlu0 %430 }
 0x10e   :  { %v432_v1 = vmul.f32 0.00390625, %v431_v0  ;;  %v1970_v0 = vld [vmem:[%s3040_s7 + $0x60] sm:$0xff]  }
 0x110   :  { %434 = vst.msk [vmem:[#allocation2] sm:$0xff] %vm433_vm8, %v432_v1  ;;  %vm881_vm8 = vcmask 203968   ;;  %v1971_v1 = vld [vmem:[%s3040_s7 + $0xe0] sm:$0xff]  }
 0x111   :  { %v459_v2 = vpop.xlane.xlu1 %458 }
 0x112   :  { %v460_v3 = vmul.f32 0.00390625, %v459_v2  ;;  %v1972_v2 = vld [vmem:[%s3040_s7 + $0x20] sm:$0xff]  }
 0x114   :  { %462 = vst.msk [vmem:[#allocation2] sm:$0xff] %vm461_vm9, %v460_v3  ;;  %vm909_vm9 = vcmask 212168   ;;  %v1973_v3 = vld [vmem:[%s3040_s7 + $0xa0] sm:$0xff]  }
 0x116   :  { %v487_v4 = vpop.xlane.xlu0 %486 }
 0x117   :  { %v488_v5 = vmul.f32 0.00390625, %v487_v4  ;;  %v1974_v4 = vld [vmem:[%s3040_s7 + $0x68] sm:$0xff]  }
 0x119   :  { %490 = vst.msk [vmem:[#allocation2] sm:$0xff] %vm489_vm10, %v488_v5  ;;  %vm937_vm10 = vcmask 220368   ;;  %v1975_v5 = vld [vmem:[%s3040_s7 + $0xe8] sm:$0xff]  }
 0x11b   :  { %v515_v6 = vpop.xlane.xlu1 %514 }
 0x11c   :  { %v516_v7 = vmul.f32 0.00390625, %v515_v6  ;;  %v1976_v6 = vld [vmem:[%s3040_s7 + $0x28] sm:$0xff]  }
 0x11e   :  { %518 = vst.msk [vmem:[#allocation2] sm:$0xff] %vm517_vm11, %v516_v7  ;;  %vm965_vm11 = vcmask 228568   ;;  %v1977_v7 = vld [vmem:[%s3040_s7 + $0xa8] sm:$0xff]  }
 0x120   :  { %v543_v10 = vpop.xlane.xlu0 %542 }
 0x121   :  { %v544_v11 = vmul.f32 0.00390625, %v543_v10  ;;  %v1978_v10 = vld [vmem:[%s3040_s7 + $0x70] sm:$0xff]  }
 0x123   :  { %546 = vst.msk [vmem:[#allocation2] sm:$0xff] %vm545_vm12, %v544_v11  ;;  %vm993_vm12 = vcmask 236768   ;;  %v1979_v11 = vld [vmem:[%s3040_s7 + $0xf0] sm:$0xff]  }
 0x124   :  { %v571_v12 = vpop.xlane.xlu1 %570 }
 0x125   :  { %v572_v13 = vmul.f32 0.00390625, %v571_v12  ;;  %v1980_v12 = vld [vmem:[%s3040_s7 + $0x30] sm:$0xff]  }
 0x127   :  { %574 = vst.msk [vmem:[#allocation2] sm:$0xff] %vm573_vm13, %v572_v13  ;;  %vm1021_vm13 = vcmask 244968   ;;  %v1981_v13 = vld [vmem:[%s3040_s7 + $0xb0] sm:$0xff]  }
 0x129   :  { %v599_v14 = vpop.xlane.xlu0 %598 }
 0x12a   :  { %v600_v15 = vmul.f32 0.00390625, %v599_v14  ;;  %v1982_v14 = vld [vmem:[%s3040_s7 + $0x78] sm:$0xff]  }
 0x12c   :  { %602 = vst.msk [vmem:[#allocation2] sm:$0xff] %vm601_vm14, %v600_v15  ;;  %vm1049_vm14 = vcmask 253168   ;;  %v1983_v15 = vld [vmem:[%s3040_s7 + $0xf8] sm:$0xff]  }
 0x12e   :  { %v627_v16 = vpop.xlane.xlu1 %626 }
 0x12f   :  { %v628_v17 = vmul.f32 0.00390625, %v627_v16  ;;  %v1984_v16 = vld [vmem:[%s3040_s7 + $0x38] sm:$0xff]  }
 0x131   :  { %630 = vst.msk [vmem:[#allocation2] sm:$0xff] %vm629_vm15, %v628_v17  ;;  %vm1077_vm15 = vcmask 261368   ;;  %v1985_v17 = vld [vmem:[%s3040_s7 + $0xb8] sm:$0xff]  }
 0x133   :  { %v655_v18 = vpop.xlane.xlu0 %654 }
 0x134   :  { %v656_v19 = vmul.f32 0.00390625, %v655_v18  ;;  %v1091_v18 = vlaneseq }
 0x136   :  { %658 = vst.msk [vmem:[#allocation2] sm:$0xff] %vm657_vm0, %v656_v19  ;;  %vm1151_vm0 = vcmask 261120   ;;  %v1092_v19 = vshrl.u32 %v1091_v18, 7 }
 0x137   :  { %v683_v20 = vpop.xlane.xlu1 %682 }
 0x138   :  { %v684_v21 = vmul.f32 0.00390625, %v683_v20  ;;  %v1093_v20 = vsub.s32 0, %v1092_v19 }
 0x13a   :  { %686 = vst.msk [vmem:[#allocation2] sm:$0xff] %vm685_vm1, %v684_v21  ;;  %v1101_v21 = vsub.s32 2, %v1092_v19  ;;  %vm1595_vm1 = vcmask 60416  }
 0x13c   :  { %v711_v22 = vpop.xlane.xlu0 %710 }
 0x13d   :  { %v712_v23 = vmul.f32 0.00390625, %v711_v22  ;;  %v1089_v22 = vld [vmem:[%s3039_s6] sm:$0xf] }
 0x13f   :  { %714 = vst.msk [vmem:[#allocation2] sm:$0xff] %vm713_vm2, %v712_v23  ;;  %v1097_v23 = vsub.s32 1, %v1092_v19  ;;  %vm1634_vm2 = vcmask 64516  }
 0x141   :  { %v739_v24 = vpop.xlane.xlu1 %738 }
 0x142   :  { %v740_v25 = vmul.f32 0.00390625, %v739_v24  ;;  %v1105_v24 = vsub.s32 3, %v1092_v19 }
 0x144   :  { %742 = vst.msk [vmem:[#allocation2] sm:$0xff] %vm741_vm3, %v740_v25  ;;  %v1094_v25 = vrot.slane %v1089_v22, %v1093_v20 }
 0x146   :  { %v767_v26 = vpop.xlane.xlu0 %766 }
 0x147   :  { %v768_v27 = vmul.f32 0.00390625, %v767_v26  ;;  %v1102_v26 = vrot.slane %v1089_v22, %v1101_v21 }
 0x149   :  { %770 = vst.msk [vmem:[#allocation2] sm:$0xff] %vm769_vm4, %v768_v27  ;;  %v1098_v27 = vrot.slane %v1089_v22, %v1097_v23 }
 0x14a   :  { %v795_v30 = vpop.xlane.xlu1 %794 }
 0x14b   :  { %v796_v31 = vmul.f32 0.00390625, %v795_v30  ;;  %v1106_v30 = vrot.slane %v1089_v22, %v1105_v24 }
 0x14d   :  { %798 = vst.msk [vmem:[#allocation2] sm:$0xff] %vm797_vm5, %v796_v31 }
 0x14f   :  { %v823_v32 = vpop.xlane.xlu0 %822 }
 0x150   :  { %v824_v52 = vmul.f32 0.00390625, %v823_v32 }
 0x152   :  { %826 = vst.msk [vmem:[#allocation2] sm:$0xff] %vm825_vm6, %v824_v52 }
 0x154   :  { %v851_v33 = vpop.xlane.xlu1 %850 }
 0x155   :  { %v852_v53 = vmul.f32 0.00390625, %v851_v33 }
 0x157   :  { %854 = vst.msk [vmem:[#allocation2] sm:$0xff] %vm853_vm7, %v852_v53 }
 0x159   :  { %v879_v34 = vpop.xlane.xlu0 %878 }
 0x15a   :  { %v880_v8 = vmul.f32 0.00390625, %v879_v34 }
 0x15c   :  { %882 = vst.msk [vmem:[#allocation2] sm:$0xff] %vm881_vm8, %v880_v8 }
 0x15d   :  { %v907_v9 = vpop.xlane.xlu1 %906 }
 0x15e   :  { %v908_v35 = vmul.f32 0.00390625, %v907_v9 }
 0x160   :  { %910 = vst.msk [vmem:[#allocation2] sm:$0xff] %vm909_vm9, %v908_v35 }
 0x162   :  { %v935_v36 = vpop.xlane.xlu0 %934 }
 0x163   :  { %v936_v37 = vmul.f32 0.00390625, %v935_v36 }
 0x165   :  { %938 = vst.msk [vmem:[#allocation2] sm:$0xff] %vm937_vm10, %v936_v37 }
 0x167   :  { %v963_v28 = vpop.xlane.xlu1 %962 }
 0x168   :  { %v964_v38 = vmul.f32 0.00390625, %v963_v28 }
 0x16a   :  { %966 = vst.msk [vmem:[#allocation2] sm:$0xff] %vm965_vm11, %v964_v38 }
 0x16c   :  { %v991_v29 = vpop.xlane.xlu0 %990 }
 0x16d   :  { %v992_v39 = vmul.f32 0.00390625, %v991_v29 }
 0x16f   :  { %994 = vst.msk [vmem:[#allocation2] sm:$0xff] %vm993_vm12, %v992_v39 }
 0x170   :  { %v1019_v40 = vpop.xlane.xlu1 %1018 }
 0x171   :  { %v1020_v41 = vmul.f32 0.00390625, %v1019_v40 }
 0x173   :  { %1022 = vst.msk [vmem:[#allocation2] sm:$0xff] %vm1021_vm13, %v1020_v41 }
 0x175   :  { %v1047_v42 = vpop.xlane.xlu0 %1046 }
 0x176   :  { %v1048_v43 = vmul.f32 0.00390625, %v1047_v42 }
 0x178   :  { %1050 = vst.msk [vmem:[#allocation2] sm:$0xff] %vm1049_vm14, %v1048_v43 }
 0x17a   :  { %v1075_v44 = vpop.xlane.xlu1 %1074 }
 0x17b   :  { %v1076_v45 = vmul.f32 0.00390625, %v1075_v44 }
 0x17d   :  { %1078 = vst.msk [vmem:[#allocation2] sm:$0xff] %vm1077_vm15, %v1076_v45 }
 0x184   :  { %v1079_v46 = vld [vmem:[#allocation2] sm:$0xff] }
 0x185   :  { %v1080_v49 = vpack.c.bf16 %v1079_v46, %v1079_v46 }
 0x187   :  { %1850 = vmatmul.mubr.msk.bf16.vlgmr.msra.gmra.mrb[0].mxu0 %vm1151_vm0, %v1080_v49  ;;  %1851 = vmatmul.mubr.msk.bf16.vlgmr.msra.gmra.mrb[0].mxu1 %vm1151_vm0, %v1080_v49 }
 0x188   :  { %1888 = vmatpush3.bf16.msra.mxu0 %v1956_v47  ;;  %1910 = vmatpush3.bf16.msra.mxu1 %v1957_v48  ;;  %v1852_v47 = vld [vmem:[%s3041_s8] ss:$0 sm:$0xff]  ;;  %s2046_s8 = scalar_lea.vmem %s1686_s18, 128 }
 0x189   :  { %1889 = vmatprep.subr.bf16.mxu0 %v1958_v50  ;;  %1911 = vmatprep.subr.bf16.mxu1 %v1959_v51  ;;  %p2047_p6 = scmp.ne.s32.totalorder %s1686_s18, %s2046_s8  ;;  %p2052_p8 = scmp.lt.s32.totalorder %s2046_s8, %s2046_s8 }
 0x18b   :  { %p2053_p9 = por %p2052_p8, %p2051_p7 }
 0x18c   :  { %1890 = vmatpush3.bf16.msra.mxu0 %v1960_v54  ;;  %1912 = vmatpush3.bf16.msra.mxu1 %v1961_v55 }
 0x18d   :  { %1891 = vmatprep.subr.bf16.mxu0 %v1962_v56  ;;  %1913 = vmatprep.subr.bf16.mxu1 %v1963_v57  ;;  %p2054_p10 = pnand %p2053_p9, %p2047_p6 }
 0x190   :  { %1892 = vmatpush3.bf16.msra.mxu0 %v1964_v58  ;;  %1914 = vmatpush3.bf16.msra.mxu1 %v1965_v59 }
 0x191   :  { %1893 = vmatprep.subr.bf16.mxu0 %v1966_v60  ;;  %1915 = vmatprep.subr.bf16.mxu1 %v1967_v61 }
 0x194   :  { %1894 = vmatpush3.bf16.msra.mxu0 %v1968_v62  ;;  %1916 = vmatpush3.bf16.msra.mxu1 %v1969_v63  ;;  %v1886_v63 = vld [vmem:[%s3042_s9] ss:$0 sm:$0xff] }
 0x195   :  { %1895 = vmatprep.subr.bf16.mxu0 %v1970_v0  ;;  %1917 = vmatprep.subr.bf16.mxu1 %v1971_v1 }
 0x198   :  { %1896 = vmatpush3.bf16.msra.mxu0 %v1972_v2  ;;  %1918 = vmatpush3.bf16.msra.mxu1 %v1973_v3 }
 0x199   :  { %1897 = vmatprep.subr.bf16.mxu0 %v1974_v4  ;;  %1919 = vmatprep.subr.bf16.mxu1 %v1975_v5 }
 0x19c   :  { %1898 = vmatpush3.bf16.msra.mxu0 %v1976_v6  ;;  %1920 = vmatpush3.bf16.msra.mxu1 %v1977_v7 }
 0x19d   :  { %1899 = vmatprep.subr.bf16.mxu0 %v1978_v10  ;;  %1921 = vmatprep.subr.bf16.mxu1 %v1979_v11 }
 0x1a0   :  { %1900 = vmatpush3.bf16.msra.mxu0 %v1980_v12  ;;  %1922 = vmatpush3.bf16.msra.mxu1 %v1981_v13 }
 0x1a1   :  { %1901 = vmatprep.subr.bf16.mxu0 %v1982_v14  ;;  %1923 = vmatprep.subr.bf16.mxu1 %v1983_v15 }
 0x1a4   :  { %1902 = vmatpush3.bf16.msra.mxu0 %v1984_v16  ;;  %1924 = vmatpush3.bf16.msra.mxu1 %v1985_v17 }
 0x25a   :  { %v1189_v31 = vpop.f32.mrb[0].mxu0  ;;  %v1230_v32 = vpop.f32.mrb[0].mxu1 }
 0x25b   :  { %v1190_v52 = vadd.f32 %v1189_v31, %v1094_v25  ;;  %v1231_v33 = vadd.f32 %v1230_v32, %v1102_v26  ;;  %v1191_v53 = vpop.f32.mrb[1].mxu0  ;;  %v1232_v34 = vpop.f32.mrb[1].mxu1 }
 0x25c   :  { %v1192_v8 = vadd.f32 %v1191_v53, %v1098_v27  ;;  %v1233_v9 = vadd.f32 %v1232_v34, %v1106_v30  ;;  %v1193_v35 = vpop.f32.mrb[2].mxu0  ;;  %v1234_v36 = vpop.f32.mrb[2].mxu1 }
 0x25d   :  { %v1237_v37 = vmax.f32 %v1190_v52, 0.0  ;;  %v1239_v28 = vmax.f32 %v1231_v33, 0.0  ;;  %v1194_v38 = vpop.f32.mrb[3].mxu0  ;;  %v1235_v29 = vpop.f32.mrb[3].mxu1 }
 0x25e   :  { %v1238_v39 = vmax.f32 %v1192_v8, 0.0  ;;  %v1240_v40 = vmax.f32 %v1233_v9, 0.0 }
 0x25f   :  { %v1241_v43 = vpack.c.bf16 %v1237_v37, %v1237_v37  ;;  %v1243_v44 = vpack.c.bf16 %v1239_v28, %v1239_v28 }
 0x260   :  { %v1242_v41 = vpack.c.bf16 %v1238_v39, %v1238_v39  ;;  %v1244_v42 = vpack.c.bf16 %v1240_v40, %v1240_v40 }
 0x262   :  { %1540 = vmatprep.mubr.bf16.mxu0 %v1242_v41  ;;  %1580 = vmatprep.mubr.bf16.mxu1 %v1244_v42 }
 0x263   :  { %1541 = vmatmul.mubr.bf16.vlgmr.msra.gmra.mrb[4].mxu0 %v1241_v43  ;;  %1581 = vmatmul.mubr.bf16.vlgmr.msra.gmra.mrb[4].mxu1 %v1243_v44 }
 0x336   :  { %v1903_v45 = vpop.f32.mrb[4].mxu0  ;;  %v1925_v46 = vpop.f32.mrb[4].mxu1 }
 0x337   :  { %v1904_v48 = vpop.f32.mrb[5].mxu0  ;;  %v1926_v49 = vpop.f32.mrb[5].mxu1 }
 0x338   :  { %v1905_v50 = vadd.f32 %v1904_v48, %v1903_v45  ;;  %v1927_v51 = vadd.f32 %v1926_v49, %v1925_v46  ;;  %v1906_v54 = vpop.f32.mrb[6].mxu0  ;;  %v1928_v55 = vpop.f32.mrb[6].mxu1 }
 0x339   :  { %v1907_v56 = vpop.f32.mrb[7].mxu0  ;;  %v1929_v57 = vpop.f32.mrb[7].mxu1 }
 0x33a   :  { %v1543_v58 = vadd.f32 %v1905_v50, %v1852_v47 }
 0x33c   :  { %v1583_v59 = vadd.f32 %v1927_v51, %v1543_v58 }
 0x33e   :  { %v1885_v60 = vmul.f32 -1.442695, %v1583_v59 }
 0x340   :  { %1986 = vpow2.f32 %v1885_v60 }
 0x34a   :  { %v1987_v61 = vpop.eup %1986 }
 0x34b   :  { %v1591_v62 = vadd.f32 1.0, %v1987_v61 }
 0x34d   :  { %1988 = vrcp.f32 %v1591_v62 }
 0x357   :  { %v2994_v0 = vpop.eup %1988 }
 0x358   :  { %v1603_v1 = vmul.f32 %v2994_v0, %v1886_v63  ;;  %1596 = vst.msk [vmem:[#allocation12] sm:$0xf] %vm1595_vm1, %v2994_v0 }
 0x359   :  { %1635 = vst.msk [vmem:[#allocation12] sm:$0xf0] %vm1634_vm2, %v2994_v0 }
 0x35a   :  { %2057 = shalt.err (!%p2054_p10)
}
 0x35b   :  { %s2058_s24 = scalar_lea.hbm %s3044_s11, 128 }
 0x35c   :  { %p2059_p11 = scmp.ne.s32.totalorder %s3044_s11, %s2058_s24  ;;  %p2062_p12 = scmp.lt.u32.totalorder %s2058_s24, %s3044_s11 }
 0x35e   :  { %p2064_p13 = pnand %p2062_p12, %p2059_p11 }
 0x360   :  { %2067 = shalt.err (!%p2064_p13)
}
 0x361   :  { %s2108_s23 = smov 64   ;;  %s2109_s25 = smov 4   ;;  %v1604_v2 = vsel %vm1595_vm1, %v1603_v1, -inf  ;;  %v1636_v3 = vsel %vm1634_vm2, %v1603_v1, -inf  ;;  %vm1631_vm3 = vcmask 57344  }
 0x362   :  { %1691 = dma.vmem_to_hbm [thread:$0]  %s1686_s18, 128, %s3044_s11, [#allocation13], %s2108_s23, %s2108_s23, %s2109_s25   ;;  %v1605_v4 = vrot.slane %v1604_v2, 4  ;;  %v1637_v5 = vrot.slane %v1636_v3, 4 }
 0x363   :  { %s2110_s11 = smov [#allocation11]  }
 0x364   :  { %v1606_v6 = vmax.f32 %v1604_v2, %v1605_v4  ;;  %v1638_v7 = vmax.f32 %v1636_v3, %v1637_v5  ;;  %s1676_s1 = sshll.u32 %s2110_s11, 4  ;;  %s1677_s1 = int_to_ptr.vmem [resolvable:$true] %s1676_s1 }
 0x365   :  { %s2068_s26 = scalar_lea.vmem %s1677_s1, 32  ;;  %p2073_p1 = scmp.lt.s32.totalorder %s1677_s1, %s1677_s1 }
 0x366   :  { %v1607_v10 = vrot.slane %v1606_v6, 2  ;;  %v1639_v11 = vrot.slane %v1638_v7, 2  ;;  %p2069_p0 = scmp.ne.s32.totalorder %s1677_s1, %s2068_s26  ;;  %p2074_p2 = scmp.lt.s32.totalorder %s2068_s26, %s2068_s26 }
 0x368   :  { %v1608_v12 = vmax.f32 %v1606_v6, %v1607_v10  ;;  %v1640_v13 = vmax.f32 %v1638_v7, %v1639_v11  ;;  %p2075_p3 = por %p2074_p2, %p2073_p1 }
 0x36a   :  { %v1609_v14 = vrot.slane %v1608_v12, 1  ;;  %v1641_v15 = vrot.slane %v1640_v13, 1  ;;  %p2076_p4 = pnand %p2075_p3, %p2069_p0 }
 0x36c   :  { %v1610_v16 = vmax.f32 %v1608_v12, %v1609_v14  ;;  %v1642_v17 = vmax.f32 %v1640_v13, %v1641_v15 }
 0x36e   :  { %v1611_v18 = vsub.f32 %v1603_v1, %v1610_v16  ;;  %v1643_v19 = vsub.f32 %v1603_v1, %v1642_v17 }
 0x370   :  { %v1612_v20 = vmul.f32 1.442695, %v1611_v18  ;;  %v1644_v21 = vmul.f32 1.442695, %v1643_v19 }
 0x372   :  { %1990 = vpow2.f32 %v1612_v20 }
 0x373   :  { %1992 = vpow2.f32 %v1644_v21 }
 0x37c   :  { %v1991_v22 = vpop.eup %1990 }
 0x37d   :  { %v1993_v23 = vpop.eup %1992  ;;  %v1614_v24 = vsel %vm1595_vm1, %v1991_v22, 0.0 }
 0x37e   :  { %v1615_v25 = vrot.slane %v1614_v24, 4  ;;  %v1647_v26 = vrot.slane %v1993_v23, 4 }
 0x380   :  { %v1616_v27 = vadd.f32 %v1615_v25, %v1614_v24  ;;  %v1649_v30 = vsel %vm1595_vm1, %v1647_v26, 0.0 }
 0x381   :  { %v1650_v31 = vrot.slane %v1649_v30, 4 }
 0x382   :  { %v1617_v32 = vrot.slane %v1616_v27, 2 }
 0x383   :  { %v1651_v52 = vadd.f32 %v1650_v31, %v1649_v30 }
 0x384   :  { %v1618_v33 = vadd.f32 %v1617_v32, %v1616_v27 }
 0x385   :  { %v1652_v53 = vrot.slane %v1651_v52, 2 }
 0x386   :  { %v1619_v34 = vrot.slane %v1618_v33, 1 }
 0x387   :  { %v1653_v8 = vadd.f32 %v1652_v53, %v1651_v52 }
 0x388   :  { %v1620_v9 = vadd.f32 %v1619_v34, %v1618_v33 }
 0x389   :  { %v1654_v35 = vrot.slane %v1653_v8, 1 }
 0x38a   :  { %1994 = vrcp.f32 %v1620_v9 }
 0x38b   :  { %v1655_v36 = vadd.f32 %v1654_v35, %v1653_v8 }
 0x38d   :  { %1996 = vrcp.f32 %v1655_v36 }
 0x394   :  { %v1995_v37 = vpop.eup %1994 }
 0x395   :  { %v1622_v28 = vmul.f32 %v1995_v37, %v1991_v22 }
 0x397   :  { %v1997_v38 = vpop.eup %1996  ;;  %v1623_v29 = vmul.f32 %v2994_v0, %v1622_v28 }
 0x398   :  { %v1657_v39 = vmul.f32 %v1997_v38, %v1993_v23 }
 0x399   :  { %v1624_v40 = vsel %vm1595_vm1, %v1623_v29, 0.0 }
 0x39a   :  { %v1625_v41 = vrot.slane %v1624_v40, 4  ;;  %v1658_v42 = vmul.f32 %v2994_v0, %v1657_v39 }
 0x39c   :  { %v1626_v43 = vadd.f32 %v1625_v41, %v1624_v40  ;;  %v1660_v44 = vrot.slane %v1658_v42, 4 }
 0x39e   :  { %v1627_v45 = vrot.slane %v1626_v43, 2  ;;  %v1662_v46 = vsel %vm1595_vm1, %v1660_v44, 0.0 }
 0x39f   :  { %v1663_v47 = vrot.slane %v1662_v46, 4 }
 0x3a0   :  { %v1628_v48 = vadd.f32 %v1627_v45, %v1626_v43 }
 0x3a1   :  { %v1664_v49 = vadd.f32 %v1663_v47, %v1662_v46 }
 0x3a2   :  { %v1629_v50 = vrot.slane %v1628_v48, 1 }
 0x3a3   :  { %v1665_v51 = vrot.slane %v1664_v49, 2 }
 0x3a4   :  { %v1630_v54 = vadd.f32 %v1629_v50, %v1628_v48 }
 0x3a5   :  { %v1666_v55 = vadd.f32 %v1665_v51, %v1664_v49 }
 0x3a6   :  { %1632 = vst.msk [vmem:[#allocation11] sm:$0x1] %vm1631_vm3, %v1630_v54 }
 0x3a7   :  { %v1667_v56 = vrot.slane %v1666_v55, 1 }
 0x3a9   :  { %v1668_v57 = vadd.f32 %v1667_v56, %v1666_v55 }
 0x3ab   :  { %1669 = vst.msk [vmem:[#allocation11 + $0x1] sm:$0x1] %vm1631_vm3, %v1668_v57 }
 0x3ac   :  { %2079 = shalt.err (!%p2076_p4)
}
 0x3ad   :  { %s2080_s29 = scalar_lea.hbm %s3043_s10, 32 }
 0x3ae   :  { %p2081_p5 = scmp.ne.s32.totalorder %s3043_s10, %s2080_s29  ;;  %p2084_p6 = scmp.lt.u32.totalorder %s2080_s29, %s3043_s10 }
 0x3b0   :  { %p2086_p7 = pnand %p2084_p6, %p2081_p5 }
 0x3b2   :  { %2089 = shalt.err (!%p2086_p7)
}
 0x3b3   :  { %1679 = dma.vmem_to_hbm [thread:$0]  %s1677_s1, 32, %s3043_s10, [#allocation4]  }
 0x3b4   :  { %2096 = dma.done.wait [#allocation4], 32  }
 0x3b5   :  { %2097 = vsyncadd [#allocation4], 4294967264 }
 0x3b6   :  { %2098 = dma.done.wait [#allocation13], 128  }
 0x3b7   :  { %2099 = vsyncadd [#allocation13], 4294967168 }
 0x3b8   :  { %1698 = vsyncpa [#allocation4], 1 }
 0x3b9   :  { %1699 = vsyncpa [#allocation13], 1 }
 0x3ba   :  { %1700 = vsyncpa [#allocation5], 1 }
 0x3bb   :  { %1701 = vsyncpa [#allocation7], 1 }
 0x3bc   :  { %1702 = vsyncpa [#allocation10], 1 }

</bundles_post_ra>
